<compile_context>
chip_gen: v7x
topology: tpu7x:2x2x1
jax: 0.10.0
libtpu: 0.0.40
codegen_flags: <defaults>
</compile_context>

<pallas_src>
import math

import jax
import jax.numpy as jnp
from jax import lax
from jax.experimental import pallas as pl
from jax.experimental.pallas import tpu as pltpu


def _round_up(x, m):
    return ((x + m - 1) // m) * m


# ---------------------------------------------------------------------------
# Fused kernel: all LSTM layers + Linear + Softmax in one pallas_call grid step.
#   x_ref       : (T*Bt, F)   bf16, time-major within the batch tile
#   per layer   : W_ih^T (D_in, 4Hp) bf16, W_hh^T (Hp, 4Hp) bf16, bias (1, 4Hp) f32
#                 gate column order [i, f, o, g], each gate padded to Hp lanes
#   head        : W^T (Hp, O) bf16, b (1, O) f32
#   out_ref     : (Bt, O)     f32 softmax probabilities
#   gx_scr      : (T*Bt, 4Hp) f32  hoisted input projection (current layer)
#   seq_scr     : (T*Bt, Hp)  f32  hidden sequence of current layer (input to next layer)
# ---------------------------------------------------------------------------
def _make_model_kernel(n_layers, hp, seq_len, bt):
    Hp, T, Bt = hp, seq_len, bt
    SIG = 3 * Hp                      # contiguous [i|f|o] sigmoid block

    def kernel(*refs):
        n_in = 1 + 3 * n_layers + 2
        n_scratch = 1 + (1 if n_layers > 1 else 0)
        assert len(refs) == n_in + 1 + n_scratch, (len(refs), n_in, n_scratch)
        x_ref = refs[0]
        layer_refs = refs[1:1 + 3 * n_layers]
        lin_w_ref = refs[1 + 3 * n_layers]
        lin_b_ref = refs[2 + 3 * n_layers]
        out_ref = refs[3 + 3 * n_layers]
        gx_scr = refs[4 + 3 * n_layers]
        seq_scr = refs[5 + 3 * n_layers] if n_layers > 1 else None

        h_last = None
        for layer in range(n_layers):
            wih_ref = layer_refs[3 * layer + 0]   # (D_in, 4Hp) bf16, pre-transposed
            whh_ref = layer_refs[3 * layer + 1]   # (Hp, 4Hp)   bf16, pre-transposed
            b_ref = layer_refs[3 * layer + 2]     # (1, 4Hp)    f32, b_ih + b_hh

            # Hoisted input projection for ALL timesteps at once (+ bias folded once).
            xin = x_ref[...] if layer == 0 else seq_scr[...].astype(jnp.bfloat16)
            gx_scr[...] = (
                jnp.dot(xin, wih_ref[...], preferred_element_type=jnp.float32)
                + b_ref[...]
            )

            whh = whh_ref[...]                    # resident across the time loop
            write_seq = layer < n_layers - 1

            def step(off, hb, c):
                # Only this small matmul + gate math is on the serial recurrence path.
                g = gx_scr[pl.ds(off, Bt), :] + jnp.dot(
                    hb, whh, preferred_element_type=jnp.float32)
                sig = jax.nn.sigmoid(g[:, :SIG])          # one EUP launch for i|f|o
                i_g = sig[:, 0 * Hp:1 * Hp]               # 128-lane-aligned slices
                f_g = sig[:, 1 * Hp:2 * Hp]
                o_g = sig[:, 2 * Hp:3 * Hp]
                g_g = jnp.tanh(g[:, SIG:])
                c_new = f_g * c + i_g * g_g
                h_new = o_g * jnp.tanh(c_new)
                if write_seq:
                    seq_scr[pl.ds(off, Bt), :] = h_new
                return h_new.astype(jnp.bfloat16), c_new

            hb = jnp.zeros((Bt, Hp), jnp.bfloat16)
            c = jnp.zeros((Bt, Hp), jnp.float32)
            if T <= 16:
                # Short fixed trip count -> fully unrolled static loop (LLO visibility).
                for t in range(T):
                    hb, c = step(t * Bt, hb, c)
            else:
                # Larger T: bound vreg live ranges / code size with a modest unroll.
                def body(t, carry):
                    hb_i, c_i = carry
                    off = pl.multiple_of(t * Bt, Bt)
                    return step(off, hb_i, c_i)
                hb, c = lax.fori_loop(0, T, body, (hb, c), unroll=4)
            h_last = hb

        # Fused Linear + Softmax(dim=1) head on the last layer's final hidden state.
        logits = (
            jnp.dot(h_last, lin_w_ref[...], preferred_element_type=jnp.float32)
            + lin_b_ref[...]
        )
        m = jnp.max(logits, axis=1, keepdims=True)
        e = jnp.exp(logits - m)
        s = jnp.sum(e, axis=1, keepdims=True)
        out_ref[...] = e * pl.reciprocal(s, approx=True)

    return kernel


def lstm_model_forward(kparams, x):
    B, T, F = x.shape
    Hp = kparams["Hp"]
    O = kparams["linear_w_t"].shape[1]
    n_layers = len(kparams["lstm"])

    # Batch tiling: >1 tile only when the batch is big enough to split across the two
    # v7x TensorCores; tiny batches stay single-tile (pure latency-bound regime).
    if B <= 8:
        n_bt, Bp = 1, 8
    else:
        n_bt = 2
        Bp = _round_up(B, 16)
    Bt = Bp // n_bt

    xp = x if Bp == B else jnp.pad(x, ((0, Bp - B), (0, 0), (0, 0)))
    # Layout: (n_bt, T, Bt, F) flattened -> rows for batch-tile i are contiguous,
    # time-major within the tile; cast to bf16 (MXU operand, halves DMA bytes).
    x2 = (xp.reshape(n_bt, Bt, T, F)
             .transpose(0, 2, 1, 3)
             .reshape(n_bt * T * Bt, F)
             .astype(jnp.bfloat16))

    args = [x2]
    in_specs = [pl.BlockSpec((T * Bt, F), lambda i: (i, 0))]
    for (w_ih_t, w_hh_t, b) in kparams["lstm"]:
        args += [w_ih_t, w_hh_t, b]
        in_specs += [
            pl.BlockSpec(w_ih_t.shape, lambda i: (0, 0)),
            pl.BlockSpec(w_hh_t.shape, lambda i: (0, 0)),
            pl.BlockSpec(b.shape, lambda i: (0, 0)),
        ]
    args += [kparams["linear_w_t"], kparams["linear_b"]]
    in_specs += [
        pl.BlockSpec(kparams["linear_w_t"].shape, lambda i: (0, 0)),
        pl.BlockSpec(kparams["linear_b"].shape, lambda i: (0, 0)),
    ]

    scratch_shapes = [pltpu.VMEM((T * Bt, 4 * Hp), jnp.float32)]      # hoisted x-projection
    if n_layers > 1:
        scratch_shapes.append(pltpu.VMEM((T * Bt, Hp), jnp.float32))  # inter-layer sequence

    # Explicit VMEM budget (default scoped limit is only 16/32 MiB on v5e/v6e).
    scratch_bytes = T * Bt * 4 * Hp * 4 + (T * Bt * Hp * 4 if n_layers > 1 else 0)
    io_bytes = sum(a.size * a.dtype.itemsize for a in args) + Bp * O * 4
    vmem_limit = int(min(max(2 * io_bytes + scratch_bytes + (8 << 20), 32 << 20),
                         100 << 20))

    kernel = _make_model_kernel(n_layers, Hp, T, Bt)
    out = pl.pallas_call(
        kernel,
        out_shape=jax.ShapeDtypeStruct((Bp, O), jnp.float32),
        grid_spec=pltpu.PrefetchScalarGridSpec(
            num_scalar_prefetch=0,
            grid=(n_bt,),
            in_specs=in_specs,
            out_specs=pl.BlockSpec((Bt, O), lambda i: (i, 0)),
            scratch_shapes=scratch_shapes,
        ),
        compiler_params=pltpu.CompilerParams(
            dimension_semantics=("parallel",),
            vmem_limit_bytes=vmem_limit),
    )(*args)
    return out[:B]


# ---------------------------------------------------------------------------
# Parameter init (raw PyTorch nn.LSTM / nn.Linear conventions, gate order [i,f,g,o])
# ---------------------------------------------------------------------------
def init_params(key, n_features, output_size, n_hidden, n_layers):
    params = {"lstm": []}
    bound = 1.0 / math.sqrt(n_hidden)
    for layer in range(n_layers):
        d_in = n_features if layer == 0 else n_hidden
        key, k1, k2, k3, k4 = jax.random.split(key, 5)
        w_ih = jax.random.uniform(k1, (4 * n_hidden, d_in), jnp.float32, -bound, bound)
        w_hh = jax.random.uniform(k2, (4 * n_hidden, n_hidden), jnp.float32, -bound, bound)
        b_ih = jax.random.uniform(k3, (4 * n_hidden,), jnp.float32, -bound, bound)
        b_hh = jax.random.uniform(k4, (4 * n_hidden,), jnp.float32, -bound, bound)
        params["lstm"].append((w_ih, w_hh, b_ih, b_hh))
    key, k5, k6 = jax.random.split(key, 3)
    params["linear_w"] = jax.random.uniform(
        k5, (output_size, n_hidden), jnp.float32, -bound, bound)
    params["linear_b"] = jax.random.uniform(
        k6, (output_size,), jnp.float32, -bound, bound)
    return params


def prepare_kernel_params(params, n_features):
    """Reorder gates [i,f,g,o] -> [i,f,o,g], pad each gate block (and the hidden input
    dim) to Hp = round_up(H,128) lanes, pre-transpose, and cast matmul weights to bf16."""
    w_hh0 = params["lstm"][0][1]
    H = w_hh0.shape[1]
    Hp = max(128, _round_up(H, 128))

    def layout_gates(w, d_in, d_pad):
        # w: (4H, d_in) torch rows [i,f,g,o] -> (d_pad, 4Hp), columns ordered [i,f,o,g].
        gates = [w[0 * H:1 * H], w[1 * H:2 * H], w[3 * H:4 * H], w[2 * H:3 * H]]
        out = jnp.zeros((4 * Hp, d_pad), jnp.float32)
        for k, gw in enumerate(gates):
            out = out.at[k * Hp:k * Hp + H, :d_in].set(gw)
        return jnp.transpose(out)

    def layout_bias(b):
        gates = [b[0 * H:1 * H], b[1 * H:2 * H], b[3 * H:4 * H], b[2 * H:3 * H]]
        out = jnp.zeros((4 * Hp,), jnp.float32)
        for k, gb in enumerate(gates):
            out = out.at[k * Hp:k * Hp + H].set(gb)
        return out.reshape(1, 4 * Hp)

    kp = {"lstm": [], "H": H, "Hp": Hp}
    for layer, (w_ih, w_hh, b_ih, b_hh) in enumerate(params["lstm"]):
        d_in = n_features if layer == 0 else H
        d_pad = n_features if layer == 0 else Hp
        kp["lstm"].append((
            layout_gates(w_ih, d_in, d_pad).astype(jnp.bfloat16),   # (d_pad, 4Hp)
            layout_gates(w_hh, H, Hp).astype(jnp.bfloat16),         # (Hp, 4Hp)
            layout_bias(b_ih + b_hh),                               # (1, 4Hp) f32
        ))
    O = params["linear_w"].shape[0]
    lw = jnp.zeros((O, Hp), jnp.float32).at[:, :H].set(params["linear_w"])
    kp["linear_w_t"] = jnp.transpose(lw).astype(jnp.bfloat16)       # (Hp, O)
    kp["linear_b"] = params["linear_b"].reshape(1, O)                # (1, O) f32
    return kp


# Pure-JAX f32 reference on the RAW params (gate order [i,f,g,o], batch_first).
def _reference_forward(params, x):
    # TODO(synk): inter-layer dropout is train-mode-only in PyTorch; eval forward is a no-op.
    seq = x
    for (w_ih, w_hh, b_ih, b_hh) in params["lstm"]:
        B, T, _ = seq.shape
        H = w_hh.shape[1]
        h = jnp.zeros((B, H), jnp.float32)
        c = jnp.zeros((B, H), jnp.float32)
        outs = []
        for t in range(T):
            gates = seq[:, t, :] @ w_ih.T + h @ w_hh.T + b_ih + b_hh
            i = jax.nn.sigmoid(gates[:, 0 * H:1 * H])
            f = jax.nn.sigmoid(gates[:, 1 * H:2 * H])
            g = jnp.tanh(gates[:, 2 * H:3 * H])
            o = jax.nn.sigmoid(gates[:, 3 * H:4 * H])
            c = f * c + i * g
            h = o * jnp.tanh(c)
            outs.append(h)
        seq = jnp.stack(outs, axis=1)
    logits = seq[:, -1, :] @ params["linear_w"].T + params["linear_b"]
    return jax.nn.softmax(logits, axis=1)


if __name__ == "__main__":
    B, T, F = 2, 8, 4
    n_hidden, n_layers, output_size = 32, 2, 5

    key = jax.random.PRNGKey(0)
    key, kx = jax.random.split(key)
    x = jax.random.normal(kx, (B, T, F), jnp.float32)
    params = init_params(key, F, output_size, n_hidden, n_layers)
    kparams = prepare_kernel_params(params, F)

    out = jax.block_until_ready(lstm_model_forward(kparams, x))

    ref = _reference_forward(params, x)
    assert out.shape == (B, output_size)
    # bf16 MXU operands -> relaxed tolerance vs. the f32 reference.
    assert jnp.allclose(out, ref, atol=3e-2, rtol=0.0), (
        "mismatch vs reference, max abs diff = "
        f"{float(jnp.max(jnp.abs(out - ref)))}")

    print("KERNEL_OK")
</pallas_src>

<mosaic_0001>
module attributes {stable_mosaic.version = 11 : i64} {
  func.func @kernel(%arg0: i32, %arg1: memref<64x4xbf16, #tpu.memory_space<vmem>>, %arg2: memref<4x512xbf16, #tpu.memory_space<vmem>>, %arg3: memref<128x512xbf16, #tpu.memory_space<vmem>>, %arg4: memref<1x512xf32, #tpu.memory_space<vmem>>, %arg5: memref<128x512xbf16, #tpu.memory_space<vmem>>, %arg6: memref<128x512xbf16, #tpu.memory_space<vmem>>, %arg7: memref<1x512xf32, #tpu.memory_space<vmem>>, %arg8: memref<128x5xbf16, #tpu.memory_space<vmem>>, %arg9: memref<1x5xf32, #tpu.memory_space<vmem>>, %arg10: memref<8x5xf32, #tpu.memory_space<vmem>>, %arg11: memref<64x512xf32, #tpu.memory_space<vmem>>, %arg12: memref<64x128xf32, #tpu.memory_space<vmem>>) attributes {dimension_semantics = [#tpu.dimension_semantics<parallel>], iteration_bounds = array<i64: 1>, scalar_prefetch = 0 : i64, scratch_operands = 2 : i64, tpu.core_type = #tpu.core_type<tc>, window_params = [{transform_indices = @transform_0, window_bounds = array<i64: 64, 4>}, {pipeline_mode = #tpu.pipeline_mode<synchronous>, transform_indices = @transform_1, window_bounds = array<i64: 4, 512>}, {pipeline_mode = #tpu.pipeline_mode<synchronous>, transform_indices = @transform_2, window_bounds = array<i64: 128, 512>}, {pipeline_mode = #tpu.pipeline_mode<synchronous>, transform_indices = @transform_3, window_bounds = array<i64: 1, 512>}, {pipeline_mode = #tpu.pipeline_mode<synchronous>, transform_indices = @transform_4, window_bounds = array<i64: 128, 512>}, {pipeline_mode = #tpu.pipeline_mode<synchronous>, transform_indices = @transform_5, window_bounds = array<i64: 128, 512>}, {pipeline_mode = #tpu.pipeline_mode<synchronous>, transform_indices = @transform_6, window_bounds = array<i64: 1, 512>}, {pipeline_mode = #tpu.pipeline_mode<synchronous>, transform_indices = @transform_7, window_bounds = array<i64: 128, 5>}, {pipeline_mode = #tpu.pipeline_mode<synchronous>, transform_indices = @transform_8, window_bounds = array<i64: 1, 5>}, {transform_indices = @transform_9, window_bounds = array<i64: 8, 5>}]} {
    %c0 = arith.constant 0 : index
    %c0_0 = arith.constant 0 : index
    %0 = vector.load %arg1[%c0, %c0_0] : memref<64x4xbf16, #tpu.memory_space<vmem>>, vector<64x4xbf16>
    %c0_1 = arith.constant 0 : index
    %c0_2 = arith.constant 0 : index
    %1 = vector.load %arg2[%c0_1, %c0_2] : memref<4x512xbf16, #tpu.memory_space<vmem>>, vector<4x512xbf16>
    %cst = arith.constant dense<0.000000e+00> : vector<64x512xf32>
    %2 = tpu.matmul %0, %1, %cst {dimension_numbers = #tpu.dot_dimension_numbers<[1], [0], [0], [1], [0, 0, 1, 1], [], []>} : vector<64x4xbf16>, vector<4x512xbf16>, vector<64x512xf32> -> vector<64x512xf32>
    %c0_3 = arith.constant 0 : index
    %c0_4 = arith.constant 0 : index
    %3 = vector.load %arg4[%c0_3, %c0_4] : memref<1x512xf32, #tpu.memory_space<vmem>>, vector<1x512xf32>
    %4 = vector.broadcast %3 : vector<1x512xf32> to vector<64x512xf32>
    %5 = arith.addf %2, %4 : vector<64x512xf32>
    %c0_5 = arith.constant 0 : index
    %c0_6 = arith.constant 0 : index
    %6 = vector.load %arg11[%c0_5, %c0_6] : memref<64x512xf32, #tpu.memory_space<vmem>>, vector<64x512xf32>
    tpu.vector_store %arg11[%c0_5, %c0_6], %5 {strides = array<i32>} : memref<64x512xf32, #tpu.memory_space<vmem>>, vector<64x512xf32>,
    %c0_7 = arith.constant 0 : index
    %c0_8 = arith.constant 0 : index
    %7 = vector.load %arg3[%c0_7, %c0_8] : memref<128x512xbf16, #tpu.memory_space<vmem>>, vector<128x512xbf16>
    %cst_9 = arith.constant 0.000000e+00 : bf16
    %8 = vector.broadcast %cst_9 : bf16 to vector<8x128xbf16>
    %cst_10 = arith.constant 0.000000e+00 : f32
    %9 = vector.broadcast %cst_10 : f32 to vector<8x128xf32>
    %c0_11 = arith.constant 0 : index
    %c0_12 = arith.constant 0 : index
    %10 = vector.load %arg11[%c0_11, %c0_12] : memref<64x512xf32, #tpu.memory_space<vmem>>, vector<8x512xf32>
    %cst_13 = arith.constant dense<0.000000e+00> : vector<8x512xf32>
    %11 = tpu.matmul %8, %7, %cst_13 {dimension_numbers = #tpu.dot_dimension_numbers<[1], [0], [0], [1], [0, 0, 1, 1], [], []>} : vector<8x128xbf16>, vector<128x512xbf16>, vector<8x512xf32> -> vector<8x512xf32>
    %12 = arith.addf %10, %11 : vector<8x512xf32>
    %13 = vector.extract_strided_slice %12 {offsets = [0, 0], sizes = [8, 384], strides = [1, 1]} : vector<8x512xf32> to vector<8x384xf32>
    %14 = arith.negf %13 : vector<8x384xf32>
    %15 = math.exp %14 : vector<8x384xf32>
    %cst_14 = arith.constant 1.000000e+00 : f32
    %16 = vector.broadcast %cst_14 : f32 to vector<8x384xf32>
    %17 = arith.addf %16, %15 : vector<8x384xf32>
    %18 = arith.divf %16, %17 : vector<8x384xf32>
    %19 = vector.extract_strided_slice %18 {offsets = [0, 0], sizes = [8, 128], strides = [1, 1]} : vector<8x384xf32> to vector<8x128xf32>
    %20 = vector.extract_strided_slice %18 {offsets = [0, 128], sizes = [8, 128], strides = [1, 1]} : vector<8x384xf32> to vector<8x128xf32>
    %21 = vector.extract_strided_slice %18 {offsets = [0, 256], sizes = [8, 128], strides = [1, 1]} : vector<8x384xf32> to vector<8x128xf32>
    %22 = vector.extract_strided_slice %12 {offsets = [0, 384], sizes = [8, 128], strides = [1, 1]} : vector<8x512xf32> to vector<8x128xf32>
    %23 = math.tanh %22 : vector<8x128xf32>
    %24 = arith.mulf %20, %9 : vector<8x128xf32>
    %25 = arith.mulf %19, %23 : vector<8x128xf32>
    %26 = arith.addf %24, %25 : vector<8x128xf32>
    %27 = math.tanh %26 : vector<8x128xf32>
    %28 = arith.mulf %21, %27 : vector<8x128xf32>
    %c0_15 = arith.constant 0 : index
    %c0_16 = arith.constant 0 : index
    %29 = vector.load %arg12[%c0_15, %c0_16] : memref<64x128xf32, #tpu.memory_space<vmem>>, vector<8x128xf32>
    tpu.vector_store %arg12[%c0_15, %c0_16], %28 {strides = array<i32>} : memref<64x128xf32, #tpu.memory_space<vmem>>, vector<8x128xf32>,
    %30 = arith.truncf %28 : vector<8x128xf32> to vector<8x128xbf16>
    %c8 = arith.constant 8 : index
    %c0_17 = arith.constant 0 : index
    %31 = vector.load %arg11[%c8, %c0_17] : memref<64x512xf32, #tpu.memory_space<vmem>>, vector<8x512xf32>
    %cst_18 = arith.constant dense<0.000000e+00> : vector<8x512xf32>
    %32 = tpu.matmul %30, %7, %cst_18 {dimension_numbers = #tpu.dot_dimension_numbers<[1], [0], [0], [1], [0, 0, 1, 1], [], []>} : vector<8x128xbf16>, vector<128x512xbf16>, vector<8x512xf32> -> vector<8x512xf32>
    %33 = arith.addf %31, %32 : vector<8x512xf32>
    %34 = vector.extract_strided_slice %33 {offsets = [0, 0], sizes = [8, 384], strides = [1, 1]} : vector<8x512xf32> to vector<8x384xf32>
    %35 = arith.negf %34 : vector<8x384xf32>
    %36 = math.exp %35 : vector<8x384xf32>
    %cst_19 = arith.constant 1.000000e+00 : f32
    %37 = vector.broadcast %cst_19 : f32 to vector<8x384xf32>
    %38 = arith.addf %37, %36 : vector<8x384xf32>
    %39 = arith.divf %37, %38 : vector<8x384xf32>
    %40 = vector.extract_strided_slice %39 {offsets = [0, 0], sizes = [8, 128], strides = [1, 1]} : vector<8x384xf32> to vector<8x128xf32>
    %41 = vector.extract_strided_slice %39 {offsets = [0, 128], sizes = [8, 128], strides = [1, 1]} : vector<8x384xf32> to vector<8x128xf32>
    %42 = vector.extract_strided_slice %39 {offsets = [0, 256], sizes = [8, 128], strides = [1, 1]} : vector<8x384xf32> to vector<8x128xf32>
    %43 = vector.extract_strided_slice %33 {offsets = [0, 384], sizes = [8, 128], strides = [1, 1]} : vector<8x512xf32> to vector<8x128xf32>
    %44 = math.tanh %43 : vector<8x128xf32>
    %45 = arith.mulf %41, %26 : vector<8x128xf32>
    %46 = arith.mulf %40, %44 : vector<8x128xf32>
    %47 = arith.addf %45, %46 : vector<8x128xf32>
    %48 = math.tanh %47 : vector<8x128xf32>
    %49 = arith.mulf %42, %48 : vector<8x128xf32>
    %c8_20 = arith.constant 8 : index
    %c0_21 = arith.constant 0 : index
    %50 = vector.load %arg12[%c8_20, %c0_21] : memref<64x128xf32, #tpu.memory_space<vmem>>, vector<8x128xf32>
    tpu.vector_store %arg12[%c8_20, %c0_21], %49 {strides = array<i32>} : memref<64x128xf32, #tpu.memory_space<vmem>>, vector<8x128xf32>,
    %51 = arith.truncf %49 : vector<8x128xf32> to vector<8x128xbf16>
    %c16 = arith.constant 16 : index
    %c0_22 = arith.constant 0 : index
    %52 = vector.load %arg11[%c16, %c0_22] : memref<64x512xf32, #tpu.memory_space<vmem>>, vector<8x512xf32>
    %cst_23 = arith.constant dense<0.000000e+00> : vector<8x512xf32>
    %53 = tpu.matmul %51, %7, %cst_23 {dimension_numbers = #tpu.dot_dimension_numbers<[1], [0], [0], [1], [0, 0, 1, 1], [], []>} : vector<8x128xbf16>, vector<128x512xbf16>, vector<8x512xf32> -> vector<8x512xf32>
    %54 = arith.addf %52, %53 : vector<8x512xf32>
    %55 = vector.extract_strided_slice %54 {offsets = [0, 0], sizes = [8, 384], strides = [1, 1]} : vector<8x512xf32> to vector<8x384xf32>
    %56 = arith.negf %55 : vector<8x384xf32>
    %57 = math.exp %56 : vector<8x384xf32>
    %cst_24 = arith.constant 1.000000e+00 : f32
    %58 = vector.broadcast %cst_24 : f32 to vector<8x384xf32>
    %59 = arith.addf %58, %57 : vector<8x384xf32>
    %60 = arith.divf %58, %59 : vector<8x384xf32>
    %61 = vector.extract_strided_slice %60 {offsets = [0, 0], sizes = [8, 128], strides = [1, 1]} : vector<8x384xf32> to vector<8x128xf32>
    %62 = vector.extract_strided_slice %60 {offsets = [0, 128], sizes = [8, 128], strides = [1, 1]} : vector<8x384xf32> to vector<8x128xf32>
    %63 = vector.extract_strided_slice %60 {offsets = [0, 256], sizes = [8, 128], strides = [1, 1]} : vector<8x384xf32> to vector<8x128xf32>
    %64 = vector.extract_strided_slice %54 {offsets = [0, 384], sizes = [8, 128], strides = [1, 1]} : vector<8x512xf32> to vector<8x128xf32>
    %65 = math.tanh %64 : vector<8x128xf32>
    %66 = arith.mulf %62, %47 : vector<8x128xf32>
    %67 = arith.mulf %61, %65 : vector<8x128xf32>
    %68 = arith.addf %66, %67 : vector<8x128xf32>
    %69 = math.tanh %68 : vector<8x128xf32>
    %70 = arith.mulf %63, %69 : vector<8x128xf32>
    %c16_25 = arith.constant 16 : index
    %c0_26 = arith.constant 0 : index
    %71 = vector.load %arg12[%c16_25, %c0_26] : memref<64x128xf32, #tpu.memory_space<vmem>>, vector<8x128xf32>
    tpu.vector_store %arg12[%c16_25, %c0_26], %70 {strides = array<i32>} : memref<64x128xf32, #tpu.memory_space<vmem>>, vector<8x128xf32>,
    %72 = arith.truncf %70 : vector<8x128xf32> to vector<8x128xbf16>
    %c24 = arith.constant 24 : index
    %c0_27 = arith.constant 0 : index
    %73 = vector.load %arg11[%c24, %c0_27] : memref<64x512xf32, #tpu.memory_space<vmem>>, vector<8x512xf32>
    %cst_28 = arith.constant dense<0.000000e+00> : vector<8x512xf32>
    %74 = tpu.matmul %72, %7, %cst_28 {dimension_numbers = #tpu.dot_dimension_numbers<[1], [0], [0], [1], [0, 0, 1, 1], [], []>} : vector<8x128xbf16>, vector<128x512xbf16>, vector<8x512xf32> -> vector<8x512xf32>
    %75 = arith.addf %73, %74 : vector<8x512xf32>
    %76 = vector.extract_strided_slice %75 {offsets = [0, 0], sizes = [8, 384], strides = [1, 1]} : vector<8x512xf32> to vector<8x384xf32>
    %77 = arith.negf %76 : vector<8x384xf32>
    %78 = math.exp %77 : vector<8x384xf32>
    %cst_29 = arith.constant 1.000000e+00 : f32
    %79 = vector.broadcast %cst_29 : f32 to vector<8x384xf32>
    %80 = arith.addf %79, %78 : vector<8x384xf32>
    %81 = arith.divf %79, %80 : vector<8x384xf32>
    %82 = vector.extract_strided_slice %81 {offsets = [0, 0], sizes = [8, 128], strides = [1, 1]} : vector<8x384xf32> to vector<8x128xf32>
    %83 = vector.extract_strided_slice %81 {offsets = [0, 128], sizes = [8, 128], strides = [1, 1]} : vector<8x384xf32> to vector<8x128xf32>
    %84 = vector.extract_strided_slice %81 {offsets = [0, 256], sizes = [8, 128], strides = [1, 1]} : vector<8x384xf32> to vector<8x128xf32>
    %85 = vector.extract_strided_slice %75 {offsets = [0, 384], sizes = [8, 128], strides = [1, 1]} : vector<8x512xf32> to vector<8x128xf32>
    %86 = math.tanh %85 : vector<8x128xf32>
    %87 = arith.mulf %83, %68 : vector<8x128xf32>
    %88 = arith.mulf %82, %86 : vector<8x128xf32>
    %89 = arith.addf %87, %88 : vector<8x128xf32>
    %90 = math.tanh %89 : vector<8x128xf32>
    %91 = arith.mulf %84, %90 : vector<8x128xf32>
    %c24_30 = arith.constant 24 : index
    %c0_31 = arith.constant 0 : index
    %92 = vector.load %arg12[%c24_30, %c0_31] : memref<64x128xf32, #tpu.memory_space<vmem>>, vector<8x128xf32>
    tpu.vector_store %arg12[%c24_30, %c0_31], %91 {strides = array<i32>} : memref<64x128xf32, #tpu.memory_space<vmem>>, vector<8x128xf32>,
    %93 = arith.truncf %91 : vector<8x128xf32> to vector<8x128xbf16>
    %c32 = arith.constant 32 : index
    %c0_32 = arith.constant 0 : index
    %94 = vector.load %arg11[%c32, %c0_32] : memref<64x512xf32, #tpu.memory_space<vmem>>, vector<8x512xf32>
    %cst_33 = arith.constant dense<0.000000e+00> : vector<8x512xf32>
    %95 = tpu.matmul %93, %7, %cst_33 {dimension_numbers = #tpu.dot_dimension_numbers<[1], [0], [0], [1], [0, 0, 1, 1], [], []>} : vector<8x128xbf16>, vector<128x512xbf16>, vector<8x512xf32> -> vector<8x512xf32>
    %96 = arith.addf %94, %95 : vector<8x512xf32>
    %97 = vector.extract_strided_slice %96 {offsets = [0, 0], sizes = [8, 384], strides = [1, 1]} : vector<8x512xf32> to vector<8x384xf32>
    %98 = arith.negf %97 : vector<8x384xf32>
    %99 = math.exp %98 : vector<8x384xf32>
    %cst_34 = arith.constant 1.000000e+00 : f32
    %100 = vector.broadcast %cst_34 : f32 to vector<8x384xf32>
    %101 = arith.addf %100, %99 : vector<8x384xf32>
    %102 = arith.divf %100, %101 : vector<8x384xf32>
    %103 = vector.extract_strided_slice %102 {offsets = [0, 0], sizes = [8, 128], strides = [1, 1]} : vector<8x384xf32> to vector<8x128xf32>
    %104 = vector.extract_strided_slice %102 {offsets = [0, 128], sizes = [8, 128], strides = [1, 1]} : vector<8x384xf32> to vector<8x128xf32>
    %105 = vector.extract_strided_slice %102 {offsets = [0, 256], sizes = [8, 128], strides = [1, 1]} : vector<8x384xf32> to vector<8x128xf32>
    %106 = vector.extract_strided_slice %96 {offsets = [0, 384], sizes = [8, 128], strides = [1, 1]} : vector<8x512xf32> to vector<8x128xf32>
    %107 = math.tanh %106 : vector<8x128xf32>
    %108 = arith.mulf %104, %89 : vector<8x128xf32>
    %109 = arith.mulf %103, %107 : vector<8x128xf32>
    %110 = arith.addf %108, %109 : vector<8x128xf32>
    %111 = math.tanh %110 : vector<8x128xf32>
    %112 = arith.mulf %105, %111 : vector<8x128xf32>
    %c32_35 = arith.constant 32 : index
    %c0_36 = arith.constant 0 : index
    %113 = vector.load %arg12[%c32_35, %c0_36] : memref<64x128xf32, #tpu.memory_space<vmem>>, vector<8x128xf32>
    tpu.vector_store %arg12[%c32_35, %c0_36], %112 {strides = array<i32>} : memref<64x128xf32, #tpu.memory_space<vmem>>, vector<8x128xf32>,
    %114 = arith.truncf %112 : vector<8x128xf32> to vector<8x128xbf16>
    %c40 = arith.constant 40 : index
    %c0_37 = arith.constant 0 : index
    %115 = vector.load %arg11[%c40, %c0_37] : memref<64x512xf32, #tpu.memory_space<vmem>>, vector<8x512xf32>
    %cst_38 = arith.constant dense<0.000000e+00> : vector<8x512xf32>
    %116 = tpu.matmul %114, %7, %cst_38 {dimension_numbers = #tpu.dot_dimension_numbers<[1], [0], [0], [1], [0, 0, 1, 1], [], []>} : vector<8x128xbf16>, vector<128x512xbf16>, vector<8x512xf32> -> vector<8x512xf32>
    %117 = arith.addf %115, %116 : vector<8x512xf32>
    %118 = vector.extract_strided_slice %117 {offsets = [0, 0], sizes = [8, 384], strides = [1, 1]} : vector<8x512xf32> to vector<8x384xf32>
    %119 = arith.negf %118 : vector<8x384xf32>
    %120 = math.exp %119 : vector<8x384xf32>
    %cst_39 = arith.constant 1.000000e+00 : f32
    %121 = vector.broadcast %cst_39 : f32 to vector<8x384xf32>
    %122 = arith.addf %121, %120 : vector<8x384xf32>
    %123 = arith.divf %121, %122 : vector<8x384xf32>
    %124 = vector.extract_strided_slice %123 {offsets = [0, 0], sizes = [8, 128], strides = [1, 1]} : vector<8x384xf32> to vector<8x128xf32>
    %125 = vector.extract_strided_slice %123 {offsets = [0, 128], sizes = [8, 128], strides = [1, 1]} : vector<8x384xf32> to vector<8x128xf32>
    %126 = vector.extract_strided_slice %123 {offsets = [0, 256], sizes = [8, 128], strides = [1, 1]} : vector<8x384xf32> to vector<8x128xf32>
    %127 = vector.extract_strided_slice %117 {offsets = [0, 384], sizes = [8, 128], strides = [1, 1]} : vector<8x512xf32> to vector<8x128xf32>
    %128 = math.tanh %127 : vector<8x128xf32>
    %129 = arith.mulf %125, %110 : vector<8x128xf32>
    %130 = arith.mulf %124, %128 : vector<8x128xf32>
    %131 = arith.addf %129, %130 : vector<8x128xf32>
    %132 = math.tanh %131 : vector<8x128xf32>
    %133 = arith.mulf %126, %132 : vector<8x128xf32>
    %c40_40 = arith.constant 40 : index
    %c0_41 = arith.constant 0 : index
    %134 = vector.load %arg12[%c40_40, %c0_41] : memref<64x128xf32, #tpu.memory_space<vmem>>, vector<8x128xf32>
    tpu.vector_store %arg12[%c40_40, %c0_41], %133 {strides = array<i32>} : memref<64x128xf32, #tpu.memory_space<vmem>>, vector<8x128xf32>,
    %135 = arith.truncf %133 : vector<8x128xf32> to vector<8x128xbf16>
    %c48 = arith.constant 48 : index
    %c0_42 = arith.constant 0 : index
    %136 = vector.load %arg11[%c48, %c0_42] : memref<64x512xf32, #tpu.memory_space<vmem>>, vector<8x512xf32>
    %cst_43 = arith.constant dense<0.000000e+00> : vector<8x512xf32>
    %137 = tpu.matmul %135, %7, %cst_43 {dimension_numbers = #tpu.dot_dimension_numbers<[1], [0], [0], [1], [0, 0, 1, 1], [], []>} : vector<8x128xbf16>, vector<128x512xbf16>, vector<8x512xf32> -> vector<8x512xf32>
    %138 = arith.addf %136, %137 : vector<8x512xf32>
    %139 = vector.extract_strided_slice %138 {offsets = [0, 0], sizes = [8, 384], strides = [1, 1]} : vector<8x512xf32> to vector<8x384xf32>
    %140 = arith.negf %139 : vector<8x384xf32>
    %141 = math.exp %140 : vector<8x384xf32>
    %cst_44 = arith.constant 1.000000e+00 : f32
    %142 = vector.broadcast %cst_44 : f32 to vector<8x384xf32>
    %143 = arith.addf %142, %141 : vector<8x384xf32>
    %144 = arith.divf %142, %143 : vector<8x384xf32>
    %145 = vector.extract_strided_slice %144 {offsets = [0, 0], sizes = [8, 128], strides = [1, 1]} : vector<8x384xf32> to vector<8x128xf32>
    %146 = vector.extract_strided_slice %144 {offsets = [0, 128], sizes = [8, 128], strides = [1, 1]} : vector<8x384xf32> to vector<8x128xf32>
    %147 = vector.extract_strided_slice %144 {offsets = [0, 256], sizes = [8, 128], strides = [1, 1]} : vector<8x384xf32> to vector<8x128xf32>
    %148 = vector.extract_strided_slice %138 {offsets = [0, 384], sizes = [8, 128], strides = [1, 1]} : vector<8x512xf32> to vector<8x128xf32>
    %149 = math.tanh %148 : vector<8x128xf32>
    %150 = arith.mulf %146, %131 : vector<8x128xf32>
    %151 = arith.mulf %145, %149 : vector<8x128xf32>
    %152 = arith.addf %150, %151 : vector<8x128xf32>
    %153 = math.tanh %152 : vector<8x128xf32>
    %154 = arith.mulf %147, %153 : vector<8x128xf32>
    %c48_45 = arith.constant 48 : index
    %c0_46 = arith.constant 0 : index
    %155 = vector.load %arg12[%c48_45, %c0_46] : memref<64x128xf32, #tpu.memory_space<vmem>>, vector<8x128xf32>
    tpu.vector_store %arg12[%c48_45, %c0_46], %154 {strides = array<i32>} : memref<64x128xf32, #tpu.memory_space<vmem>>, vector<8x128xf32>,
    %156 = arith.truncf %154 : vector<8x128xf32> to vector<8x128xbf16>
    %c56 = arith.constant 56 : index
    %c0_47 = arith.constant 0 : index
    %157 = vector.load %arg11[%c56, %c0_47] : memref<64x512xf32, #tpu.memory_space<vmem>>, vector<8x512xf32>
    %cst_48 = arith.constant dense<0.000000e+00> : vector<8x512xf32>
    %158 = tpu.matmul %156, %7, %cst_48 {dimension_numbers = #tpu.dot_dimension_numbers<[1], [0], [0], [1], [0, 0, 1, 1], [], []>} : vector<8x128xbf16>, vector<128x512xbf16>, vector<8x512xf32> -> vector<8x512xf32>
    %159 = arith.addf %157, %158 : vector<8x512xf32>
    %160 = vector.extract_strided_slice %159 {offsets = [0, 0], sizes = [8, 384], strides = [1, 1]} : vector<8x512xf32> to vector<8x384xf32>
    %161 = arith.negf %160 : vector<8x384xf32>
    %162 = math.exp %161 : vector<8x384xf32>
    %cst_49 = arith.constant 1.000000e+00 : f32
    %163 = vector.broadcast %cst_49 : f32 to vector<8x384xf32>
    %164 = arith.addf %163, %162 : vector<8x384xf32>
    %165 = arith.divf %163, %164 : vector<8x384xf32>
    %166 = vector.extract_strided_slice %165 {offsets = [0, 0], sizes = [8, 128], strides = [1, 1]} : vector<8x384xf32> to vector<8x128xf32>
    %167 = vector.extract_strided_slice %165 {offsets = [0, 128], sizes = [8, 128], strides = [1, 1]} : vector<8x384xf32> to vector<8x128xf32>
    %168 = vector.extract_strided_slice %165 {offsets = [0, 256], sizes = [8, 128], strides = [1, 1]} : vector<8x384xf32> to vector<8x128xf32>
    %169 = vector.extract_strided_slice %159 {offsets = [0, 384], sizes = [8, 128], strides = [1, 1]} : vector<8x512xf32> to vector<8x128xf32>
    %170 = math.tanh %169 : vector<8x128xf32>
    %171 = arith.mulf %167, %152 : vector<8x128xf32>
    %172 = arith.mulf %166, %170 : vector<8x128xf32>
    %173 = arith.addf %171, %172 : vector<8x128xf32>
    %174 = math.tanh %173 : vector<8x128xf32>
    %175 = arith.mulf %168, %174 : vector<8x128xf32>
    %c56_50 = arith.constant 56 : index
    %c0_51 = arith.constant 0 : index
    %176 = vector.load %arg12[%c56_50, %c0_51] : memref<64x128xf32, #tpu.memory_space<vmem>>, vector<8x128xf32>
    tpu.vector_store %arg12[%c56_50, %c0_51], %175 {strides = array<i32>} : memref<64x128xf32, #tpu.memory_space<vmem>>, vector<8x128xf32>,
    %c0_52 = arith.constant 0 : index
    %c0_53 = arith.constant 0 : index
    %177 = vector.load %arg12[%c0_52, %c0_53] : memref<64x128xf32, #tpu.memory_space<vmem>>, vector<64x128xf32>
    %178 = arith.truncf %177 : vector<64x128xf32> to vector<64x128xbf16>
    %c0_54 = arith.constant 0 : index
    %c0_55 = arith.constant 0 : index
    %179 = vector.load %arg5[%c0_54, %c0_55] : memref<128x512xbf16, #tpu.memory_space<vmem>>, vector<128x512xbf16>
    %cst_56 = arith.constant dense<0.000000e+00> : vector<64x512xf32>
    %180 = tpu.matmul %178, %179, %cst_56 {dimension_numbers = #tpu.dot_dimension_numbers<[1], [0], [0], [1], [0, 0, 1, 1], [], []>} : vector<64x128xbf16>, vector<128x512xbf16>, vector<64x512xf32> -> vector<64x512xf32>
    %c0_57 = arith.constant 0 : index
    %c0_58 = arith.constant 0 : index
    %181 = vector.load %arg7[%c0_57, %c0_58] : memref<1x512xf32, #tpu.memory_space<vmem>>, vector<1x512xf32>
    %182 = vector.broadcast %181 : vector<1x512xf32> to vector<64x512xf32>
    %183 = arith.addf %180, %182 : vector<64x512xf32>
    %c0_59 = arith.constant 0 : index
    %c0_60 = arith.constant 0 : index
    %184 = vector.load %arg11[%c0_59, %c0_60] : memref<64x512xf32, #tpu.memory_space<vmem>>, vector<64x512xf32>
    tpu.vector_store %arg11[%c0_59, %c0_60], %183 {strides = array<i32>} : memref<64x512xf32, #tpu.memory_space<vmem>>, vector<64x512xf32>,
    %c0_61 = arith.constant 0 : index
    %c0_62 = arith.constant 0 : index
    %185 = vector.load %arg6[%c0_61, %c0_62] : memref<128x512xbf16, #tpu.memory_space<vmem>>, vector<128x512xbf16>
    %cst_63 = arith.constant 0.000000e+00 : bf16
    %186 = vector.broadcast %cst_63 : bf16 to vector<8x128xbf16>
    %cst_64 = arith.constant 0.000000e+00 : f32
    %187 = vector.broadcast %cst_64 : f32 to vector<8x128xf32>
    %c0_65 = arith.constant 0 : index
    %c0_66 = arith.constant 0 : index
    %188 = vector.load %arg11[%c0_65, %c0_66] : memref<64x512xf32, #tpu.memory_space<vmem>>, vector<8x512xf32>
    %cst_67 = arith.constant dense<0.000000e+00> : vector<8x512xf32>
    %189 = tpu.matmul %186, %185, %cst_67 {dimension_numbers = #tpu.dot_dimension_numbers<[1], [0], [0], [1], [0, 0, 1, 1], [], []>} : vector<8x128xbf16>, vector<128x512xbf16>, vector<8x512xf32> -> vector<8x512xf32>
    %190 = arith.addf %188, %189 : vector<8x512xf32>
    %191 = vector.extract_strided_slice %190 {offsets = [0, 0], sizes = [8, 384], strides = [1, 1]} : vector<8x512xf32> to vector<8x384xf32>
    %192 = arith.negf %191 : vector<8x384xf32>
    %193 = math.exp %192 : vector<8x384xf32>
    %cst_68 = arith.constant 1.000000e+00 : f32
    %194 = vector.broadcast %cst_68 : f32 to vector<8x384xf32>
    %195 = arith.addf %194, %193 : vector<8x384xf32>
    %196 = arith.divf %194, %195 : vector<8x384xf32>
    %197 = vector.extract_strided_slice %196 {offsets = [0, 0], sizes = [8, 128], strides = [1, 1]} : vector<8x384xf32> to vector<8x128xf32>
    %198 = vector.extract_strided_slice %196 {offsets = [0, 128], sizes = [8, 128], strides = [1, 1]} : vector<8x384xf32> to vector<8x128xf32>
    %199 = vector.extract_strided_slice %196 {offsets = [0, 256], sizes = [8, 128], strides = [1, 1]} : vector<8x384xf32> to vector<8x128xf32>
    %200 = vector.extract_strided_slice %190 {offsets = [0, 384], sizes = [8, 128], strides = [1, 1]} : vector<8x512xf32> to vector<8x128xf32>
    %201 = math.tanh %200 : vector<8x128xf32>
    %202 = arith.mulf %198, %187 : vector<8x128xf32>
    %203 = arith.mulf %197, %201 : vector<8x128xf32>
    %204 = arith.addf %202, %203 : vector<8x128xf32>
    %205 = math.tanh %204 : vector<8x128xf32>
    %206 = arith.mulf %199, %205 : vector<8x128xf32>
    %207 = arith.truncf %206 : vector<8x128xf32> to vector<8x128xbf16>
    %c8_69 = arith.constant 8 : index
    %c0_70 = arith.constant 0 : index
    %208 = vector.load %arg11[%c8_69, %c0_70] : memref<64x512xf32, #tpu.memory_space<vmem>>, vector<8x512xf32>
    %cst_71 = arith.constant dense<0.000000e+00> : vector<8x512xf32>
    %209 = tpu.matmul %207, %185, %cst_71 {dimension_numbers = #tpu.dot_dimension_numbers<[1], [0], [0], [1], [0, 0, 1, 1], [], []>} : vector<8x128xbf16>, vector<128x512xbf16>, vector<8x512xf32> -> vector<8x512xf32>
    %210 = arith.addf %208, %209 : vector<8x512xf32>
    %211 = vector.extract_strided_slice %210 {offsets = [0, 0], sizes = [8, 384], strides = [1, 1]} : vector<8x512xf32> to vector<8x384xf32>
    %212 = arith.negf %211 : vector<8x384xf32>
    %213 = math.exp %212 : vector<8x384xf32>
    %cst_72 = arith.constant 1.000000e+00 : f32
    %214 = vector.broadcast %cst_72 : f32 to vector<8x384xf32>
    %215 = arith.addf %214, %213 : vector<8x384xf32>
    %216 = arith.divf %214, %215 : vector<8x384xf32>
    %217 = vector.extract_strided_slice %216 {offsets = [0, 0], sizes = [8, 128], strides = [1, 1]} : vector<8x384xf32> to vector<8x128xf32>
    %218 = vector.extract_strided_slice %216 {offsets = [0, 128], sizes = [8, 128], strides = [1, 1]} : vector<8x384xf32> to vector<8x128xf32>
    %219 = vector.extract_strided_slice %216 {offsets = [0, 256], sizes = [8, 128], strides = [1, 1]} : vector<8x384xf32> to vector<8x128xf32>
    %220 = vector.extract_strided_slice %210 {offsets = [0, 384], sizes = [8, 128], strides = [1, 1]} : vector<8x512xf32> to vector<8x128xf32>
    %221 = math.tanh %220 : vector<8x128xf32>
    %222 = arith.mulf %218, %204 : vector<8x128xf32>
    %223 = arith.mulf %217, %221 : vector<8x128xf32>
    %224 = arith.addf %222, %223 : vector<8x128xf32>
    %225 = math.tanh %224 : vector<8x128xf32>
    %226 = arith.mulf %219, %225 : vector<8x128xf32>
    %227 = arith.truncf %226 : vector<8x128xf32> to vector<8x128xbf16>
    %c16_73 = arith.constant 16 : index
    %c0_74 = arith.constant 0 : index
    %228 = vector.load %arg11[%c16_73, %c0_74] : memref<64x512xf32, #tpu.memory_space<vmem>>, vector<8x512xf32>
    %cst_75 = arith.constant dense<0.000000e+00> : vector<8x512xf32>
    %229 = tpu.matmul %227, %185, %cst_75 {dimension_numbers = #tpu.dot_dimension_numbers<[1], [0], [0], [1], [0, 0, 1, 1], [], []>} : vector<8x128xbf16>, vector<128x512xbf16>, vector<8x512xf32> -> vector<8x512xf32>
    %230 = arith.addf %228, %229 : vector<8x512xf32>
    %231 = vector.extract_strided_slice %230 {offsets = [0, 0], sizes = [8, 384], strides = [1, 1]} : vector<8x512xf32> to vector<8x384xf32>
    %232 = arith.negf %231 : vector<8x384xf32>
    %233 = math.exp %232 : vector<8x384xf32>
    %cst_76 = arith.constant 1.000000e+00 : f32
    %234 = vector.broadcast %cst_76 : f32 to vector<8x384xf32>
    %235 = arith.addf %234, %233 : vector<8x384xf32>
    %236 = arith.divf %234, %235 : vector<8x384xf32>
    %237 = vector.extract_strided_slice %236 {offsets = [0, 0], sizes = [8, 128], strides = [1, 1]} : vector<8x384xf32> to vector<8x128xf32>
    %238 = vector.extract_strided_slice %236 {offsets = [0, 128], sizes = [8, 128], strides = [1, 1]} : vector<8x384xf32> to vector<8x128xf32>
    %239 = vector.extract_strided_slice %236 {offsets = [0, 256], sizes = [8, 128], strides = [1, 1]} : vector<8x384xf32> to vector<8x128xf32>
    %240 = vector.extract_strided_slice %230 {offsets = [0, 384], sizes = [8, 128], strides = [1, 1]} : vector<8x512xf32> to vector<8x128xf32>
    %241 = math.tanh %240 : vector<8x128xf32>
    %242 = arith.mulf %238, %224 : vector<8x128xf32>
    %243 = arith.mulf %237, %241 : vector<8x128xf32>
    %244 = arith.addf %242, %243 : vector<8x128xf32>
    %245 = math.tanh %244 : vector<8x128xf32>
    %246 = arith.mulf %239, %245 : vector<8x128xf32>
    %247 = arith.truncf %246 : vector<8x128xf32> to vector<8x128xbf16>
    %c24_77 = arith.constant 24 : index
    %c0_78 = arith.constant 0 : index
    %248 = vector.load %arg11[%c24_77, %c0_78] : memref<64x512xf32, #tpu.memory_space<vmem>>, vector<8x512xf32>
    %cst_79 = arith.constant dense<0.000000e+00> : vector<8x512xf32>
    %249 = tpu.matmul %247, %185, %cst_79 {dimension_numbers = #tpu.dot_dimension_numbers<[1], [0], [0], [1], [0, 0, 1, 1], [], []>} : vector<8x128xbf16>, vector<128x512xbf16>, vector<8x512xf32> -> vector<8x512xf32>
    %250 = arith.addf %248, %249 : vector<8x512xf32>
    %251 = vector.extract_strided_slice %250 {offsets = [0, 0], sizes = [8, 384], strides = [1, 1]} : vector<8x512xf32> to vector<8x384xf32>
    %252 = arith.negf %251 : vector<8x384xf32>
    %253 = math.exp %252 : vector<8x384xf32>
    %cst_80 = arith.constant 1.000000e+00 : f32
    %254 = vector.broadcast %cst_80 : f32 to vector<8x384xf32>
    %255 = arith.addf %254, %253 : vector<8x384xf32>
    %256 = arith.divf %254, %255 : vector<8x384xf32>
    %257 = vector.extract_strided_slice %256 {offsets = [0, 0], sizes = [8, 128], strides = [1, 1]} : vector<8x384xf32> to vector<8x128xf32>
    %258 = vector.extract_strided_slice %256 {offsets = [0, 128], sizes = [8, 128], strides = [1, 1]} : vector<8x384xf32> to vector<8x128xf32>
    %259 = vector.extract_strided_slice %256 {offsets = [0, 256], sizes = [8, 128], strides = [1, 1]} : vector<8x384xf32> to vector<8x128xf32>
    %260 = vector.extract_strided_slice %250 {offsets = [0, 384], sizes = [8, 128], strides = [1, 1]} : vector<8x512xf32> to vector<8x128xf32>
    %261 = math.tanh %260 : vector<8x128xf32>
    %262 = arith.mulf %258, %244 : vector<8x128xf32>
    %263 = arith.mulf %257, %261 : vector<8x128xf32>
    %264 = arith.addf %262, %263 : vector<8x128xf32>
    %265 = math.tanh %264 : vector<8x128xf32>
    %266 = arith.mulf %259, %265 : vector<8x128xf32>
    %267 = arith.truncf %266 : vector<8x128xf32> to vector<8x128xbf16>
    %c32_81 = arith.constant 32 : index
    %c0_82 = arith.constant 0 : index
    %268 = vector.load %arg11[%c32_81, %c0_82] : memref<64x512xf32, #tpu.memory_space<vmem>>, vector<8x512xf32>
    %cst_83 = arith.constant dense<0.000000e+00> : vector<8x512xf32>
    %269 = tpu.matmul %267, %185, %cst_83 {dimension_numbers = #tpu.dot_dimension_numbers<[1], [0], [0], [1], [0, 0, 1, 1], [], []>} : vector<8x128xbf16>, vector<128x512xbf16>, vector<8x512xf32> -> vector<8x512xf32>
    %270 = arith.addf %268, %269 : vector<8x512xf32>
    %271 = vector.extract_strided_slice %270 {offsets = [0, 0], sizes = [8, 384], strides = [1, 1]} : vector<8x512xf32> to vector<8x384xf32>
    %272 = arith.negf %271 : vector<8x384xf32>
    %273 = math.exp %272 : vector<8x384xf32>
    %cst_84 = arith.constant 1.000000e+00 : f32
    %274 = vector.broadcast %cst_84 : f32 to vector<8x384xf32>
    %275 = arith.addf %274, %273 : vector<8x384xf32>
    %276 = arith.divf %274, %275 : vector<8x384xf32>
    %277 = vector.extract_strided_slice %276 {offsets = [0, 0], sizes = [8, 128], strides = [1, 1]} : vector<8x384xf32> to vector<8x128xf32>
    %278 = vector.extract_strided_slice %276 {offsets = [0, 128], sizes = [8, 128], strides = [1, 1]} : vector<8x384xf32> to vector<8x128xf32>
    %279 = vector.extract_strided_slice %276 {offsets = [0, 256], sizes = [8, 128], strides = [1, 1]} : vector<8x384xf32> to vector<8x128xf32>
    %280 = vector.extract_strided_slice %270 {offsets = [0, 384], sizes = [8, 128], strides = [1, 1]} : vector<8x512xf32> to vector<8x128xf32>
    %281 = math.tanh %280 : vector<8x128xf32>
    %282 = arith.mulf %278, %264 : vector<8x128xf32>
    %283 = arith.mulf %277, %281 : vector<8x128xf32>
    %284 = arith.addf %282, %283 : vector<8x128xf32>
    %285 = math.tanh %284 : vector<8x128xf32>
    %286 = arith.mulf %279, %285 : vector<8x128xf32>
    %287 = arith.truncf %286 : vector<8x128xf32> to vector<8x128xbf16>
    %c40_85 = arith.constant 40 : index
    %c0_86 = arith.constant 0 : index
    %288 = vector.load %arg11[%c40_85, %c0_86] : memref<64x512xf32, #tpu.memory_space<vmem>>, vector<8x512xf32>
    %cst_87 = arith.constant dense<0.000000e+00> : vector<8x512xf32>
    %289 = tpu.matmul %287, %185, %cst_87 {dimension_numbers = #tpu.dot_dimension_numbers<[1], [0], [0], [1], [0, 0, 1, 1], [], []>} : vector<8x128xbf16>, vector<128x512xbf16>, vector<8x512xf32> -> vector<8x512xf32>
    %290 = arith.addf %288, %289 : vector<8x512xf32>
    %291 = vector.extract_strided_slice %290 {offsets = [0, 0], sizes = [8, 384], strides = [1, 1]} : vector<8x512xf32> to vector<8x384xf32>
    %292 = arith.negf %291 : vector<8x384xf32>
    %293 = math.exp %292 : vector<8x384xf32>
    %cst_88 = arith.constant 1.000000e+00 : f32
    %294 = vector.broadcast %cst_88 : f32 to vector<8x384xf32>
    %295 = arith.addf %294, %293 : vector<8x384xf32>
    %296 = arith.divf %294, %295 : vector<8x384xf32>
    %297 = vector.extract_strided_slice %296 {offsets = [0, 0], sizes = [8, 128], strides = [1, 1]} : vector<8x384xf32> to vector<8x128xf32>
    %298 = vector.extract_strided_slice %296 {offsets = [0, 128], sizes = [8, 128], strides = [1, 1]} : vector<8x384xf32> to vector<8x128xf32>
    %299 = vector.extract_strided_slice %296 {offsets = [0, 256], sizes = [8, 128], strides = [1, 1]} : vector<8x384xf32> to vector<8x128xf32>
    %300 = vector.extract_strided_slice %290 {offsets = [0, 384], sizes = [8, 128], strides = [1, 1]} : vector<8x512xf32> to vector<8x128xf32>
    %301 = math.tanh %300 : vector<8x128xf32>
    %302 = arith.mulf %298, %284 : vector<8x128xf32>
    %303 = arith.mulf %297, %301 : vector<8x128xf32>
    %304 = arith.addf %302, %303 : vector<8x128xf32>
    %305 = math.tanh %304 : vector<8x128xf32>
    %306 = arith.mulf %299, %305 : vector<8x128xf32>
    %307 = arith.truncf %306 : vector<8x128xf32> to vector<8x128xbf16>
    %c48_89 = arith.constant 48 : index
    %c0_90 = arith.constant 0 : index
    %308 = vector.load %arg11[%c48_89, %c0_90] : memref<64x512xf32, #tpu.memory_space<vmem>>, vector<8x512xf32>
    %cst_91 = arith.constant dense<0.000000e+00> : vector<8x512xf32>
    %309 = tpu.matmul %307, %185, %cst_91 {dimension_numbers = #tpu.dot_dimension_numbers<[1], [0], [0], [1], [0, 0, 1, 1], [], []>} : vector<8x128xbf16>, vector<128x512xbf16>, vector<8x512xf32> -> vector<8x512xf32>
    %310 = arith.addf %308, %309 : vector<8x512xf32>
    %311 = vector.extract_strided_slice %310 {offsets = [0, 0], sizes = [8, 384], strides = [1, 1]} : vector<8x512xf32> to vector<8x384xf32>
    %312 = arith.negf %311 : vector<8x384xf32>
    %313 = math.exp %312 : vector<8x384xf32>
    %cst_92 = arith.constant 1.000000e+00 : f32
    %314 = vector.broadcast %cst_92 : f32 to vector<8x384xf32>
    %315 = arith.addf %314, %313 : vector<8x384xf32>
    %316 = arith.divf %314, %315 : vector<8x384xf32>
    %317 = vector.extract_strided_slice %316 {offsets = [0, 0], sizes = [8, 128], strides = [1, 1]} : vector<8x384xf32> to vector<8x128xf32>
    %318 = vector.extract_strided_slice %316 {offsets = [0, 128], sizes = [8, 128], strides = [1, 1]} : vector<8x384xf32> to vector<8x128xf32>
    %319 = vector.extract_strided_slice %316 {offsets = [0, 256], sizes = [8, 128], strides = [1, 1]} : vector<8x384xf32> to vector<8x128xf32>
    %320 = vector.extract_strided_slice %310 {offsets = [0, 384], sizes = [8, 128], strides = [1, 1]} : vector<8x512xf32> to vector<8x128xf32>
    %321 = math.tanh %320 : vector<8x128xf32>
    %322 = arith.mulf %318, %304 : vector<8x128xf32>
    %323 = arith.mulf %317, %321 : vector<8x128xf32>
    %324 = arith.addf %322, %323 : vector<8x128xf32>
    %325 = math.tanh %324 : vector<8x128xf32>
    %326 = arith.mulf %319, %325 : vector<8x128xf32>
    %327 = arith.truncf %326 : vector<8x128xf32> to vector<8x128xbf16>
    %c56_93 = arith.constant 56 : index
    %c0_94 = arith.constant 0 : index
    %328 = vector.load %arg11[%c56_93, %c0_94] : memref<64x512xf32, #tpu.memory_space<vmem>>, vector<8x512xf32>
    %cst_95 = arith.constant dense<0.000000e+00> : vector<8x512xf32>
    %329 = tpu.matmul %327, %185, %cst_95 {dimension_numbers = #tpu.dot_dimension_numbers<[1], [0], [0], [1], [0, 0, 1, 1], [], []>} : vector<8x128xbf16>, vector<128x512xbf16>, vector<8x512xf32> -> vector<8x512xf32>
    %330 = arith.addf %328, %329 : vector<8x512xf32>
    %331 = vector.extract_strided_slice %330 {offsets = [0, 0], sizes = [8, 384], strides = [1, 1]} : vector<8x512xf32> to vector<8x384xf32>
    %332 = arith.negf %331 : vector<8x384xf32>
    %333 = math.exp %332 : vector<8x384xf32>
    %cst_96 = arith.constant 1.000000e+00 : f32
    %334 = vector.broadcast %cst_96 : f32 to vector<8x384xf32>
    %335 = arith.addf %334, %333 : vector<8x384xf32>
    %336 = arith.divf %334, %335 : vector<8x384xf32>
    %337 = vector.extract_strided_slice %336 {offsets = [0, 0], sizes = [8, 128], strides = [1, 1]} : vector<8x384xf32> to vector<8x128xf32>
    %338 = vector.extract_strided_slice %336 {offsets = [0, 128], sizes = [8, 128], strides = [1, 1]} : vector<8x384xf32> to vector<8x128xf32>
    %339 = vector.extract_strided_slice %336 {offsets = [0, 256], sizes = [8, 128], strides = [1, 1]} : vector<8x384xf32> to vector<8x128xf32>
    %340 = vector.extract_strided_slice %330 {offsets = [0, 384], sizes = [8, 128], strides = [1, 1]} : vector<8x512xf32> to vector<8x128xf32>
    %341 = math.tanh %340 : vector<8x128xf32>
    %342 = arith.mulf %338, %324 : vector<8x128xf32>
    %343 = arith.mulf %337, %341 : vector<8x128xf32>
    %344 = arith.addf %342, %343 : vector<8x128xf32>
    %345 = math.tanh %344 : vector<8x128xf32>
    %346 = arith.mulf %339, %345 : vector<8x128xf32>
    %347 = arith.truncf %346 : vector<8x128xf32> to vector<8x128xbf16>
    %c0_97 = arith.constant 0 : index
    %c0_98 = arith.constant 0 : index
    %348 = vector.load %arg8[%c0_97, %c0_98] : memref<128x5xbf16, #tpu.memory_space<vmem>>, vector<128x5xbf16>
    %cst_99 = arith.constant dense<0.000000e+00> : vector<8x5xf32>
    %349 = tpu.matmul %347, %348, %cst_99 {dimension_numbers = #tpu.dot_dimension_numbers<[1], [0], [0], [1], [0, 0, 1, 1], [], []>} : vector<8x128xbf16>, vector<128x5xbf16>, vector<8x5xf32> -> vector<8x5xf32>
    %c0_100 = arith.constant 0 : index
    %c0_101 = arith.constant 0 : index
    %350 = vector.load %arg9[%c0_100, %c0_101] : memref<1x5xf32, #tpu.memory_space<vmem>>, vector<1x5xf32>
    %351 = vector.broadcast %350 : vector<1x5xf32> to vector<8x5xf32>
    %352 = arith.addf %349, %351 : vector<8x5xf32>
    %cst_102 = arith.constant dense<0xFF800000> : vector<8xf32>
    %353 = vector.multi_reduction <maximumf>, %352, %cst_102 [1] : vector<8x5xf32> to vector<8xf32>
    %354 = vector.shape_cast %353 : vector<8xf32> to vector<8x1xf32>
    %355 = vector.broadcast %354 : vector<8x1xf32> to vector<8x5xf32>
    %356 = arith.subf %352, %355 : vector<8x5xf32>
    %357 = math.exp %356 : vector<8x5xf32>
    %cst_103 = arith.constant dense<0.000000e+00> : vector<8xf32>
    %358 = vector.multi_reduction <add>, %357, %cst_103 [1] : vector<8x5xf32> to vector<8xf32>
    %359 = vector.shape_cast %358 : vector<8xf32> to vector<8x1xf32>
    %360 = tpu.reciprocal %359 {approx = true} : vector<8x1xf32> -> vector<8x1xf32>
    %361 = vector.broadcast %360 : vector<8x1xf32> to vector<8x5xf32>
    %362 = arith.mulf %357, %361 : vector<8x5xf32>
    %c0_104 = arith.constant 0 : index
    %c0_105 = arith.constant 0 : index
    %363 = vector.load %arg10[%c0_104, %c0_105] : memref<8x5xf32, #tpu.memory_space<vmem>>, vector<8x5xf32>
    tpu.vector_store %arg10[%c0_104, %c0_105], %362 {strides = array<i32>} : memref<8x5xf32, #tpu.memory_space<vmem>>, vector<8x5xf32>,
    return
  }
  func.func @transform_0(%arg0: i32) -> (i32, i32) {
    %c0_i32 = arith.constant 0 : i32
    %c0_i32_0 = arith.constant 0 : i32
    return %arg0, %c0_i32 : i32, i32
  }
  func.func @transform_1(%arg0: i32) -> (i32, i32) {
    %c0_i32 = arith.constant 0 : i32
    %c0_i32_0 = arith.constant 0 : i32
    %c0_i32_1 = arith.constant 0 : i32
    return %c0_i32, %c0_i32_0 : i32, i32
  }
  func.func @transform_2(%arg0: i32) -> (i32, i32) {
    %c0_i32 = arith.constant 0 : i32
    %c0_i32_0 = arith.constant 0 : i32
    %c0_i32_1 = arith.constant 0 : i32
    return %c0_i32, %c0_i32_0 : i32, i32
  }
  func.func @transform_3(%arg0: i32) -> (i32, i32) {
    %c0_i32 = arith.constant 0 : i32
    %c0_i32_0 = arith.constant 0 : i32
    %c0_i32_1 = arith.constant 0 : i32
    return %c0_i32, %c0_i32_0 : i32, i32
  }
  func.func @transform_4(%arg0: i32) -> (i32, i32) {
    %c0_i32 = arith.constant 0 : i32
    %c0_i32_0 = arith.constant 0 : i32
    %c0_i32_1 = arith.constant 0 : i32
    return %c0_i32, %c0_i32_0 : i32, i32
  }
  func.func @transform_5(%arg0: i32) -> (i32, i32) {
    %c0_i32 = arith.constant 0 : i32
    %c0_i32_0 = arith.constant 0 : i32
    %c0_i32_1 = arith.constant 0 : i32
    return %c0_i32, %c0_i32_0 : i32, i32
  }
  func.func @transform_6(%arg0: i32) -> (i32, i32) {
    %c0_i32 = arith.constant 0 : i32
    %c0_i32_0 = arith.constant 0 : i32
    %c0_i32_1 = arith.constant 0 : i32
    return %c0_i32, %c0_i32_0 : i32, i32
  }
  func.func @transform_7(%arg0: i32) -> (i32, i32) {
    %c0_i32 = arith.constant 0 : i32
    %c0_i32_0 = arith.constant 0 : i32
    %c0_i32_1 = arith.constant 0 : i32
    return %c0_i32, %c0_i32_0 : i32, i32
  }
  func.func @transform_8(%arg0: i32) -> (i32, i32) {
    %c0_i32 = arith.constant 0 : i32
    %c0_i32_0 = arith.constant 0 : i32
    %c0_i32_1 = arith.constant 0 : i32
    return %c0_i32, %c0_i32_0 : i32, i32
  }
  func.func @transform_9(%arg0: i32) -> (i32, i32) {
    %c0_i32 = arith.constant 0 : i32
    %c0_i32_0 = arith.constant 0 : i32
    return %arg0, %c0_i32 : i32, i32
  }
}

</mosaic_0001>

<bundles_post_ra>
// kernel: tpu_custom_call.1
= control target key start
LH: loop header
LB: loop body
LE: loop exit
PB: predicated region body
PF: predicated region fallthrough
CT: control target
= control target key end

     0   :  { %14 = vsyncpa [#allocation5], 0  ;;  %s5271_s0 = inlined_call_operand.vmem [shape: bf16[64,4], index: 0, kind: input, shape index: {}]   ;;  %s5272_s1 = inlined_call_operand.vmem [shape: bf16[4,512], index: 1, kind: input, shape index: {}]   ;;  %s5273_s2 = inlined_call_operand.hbm [shape: bf16[128,512], index: 2, kind: input, shape index: {}]   ;;  %s5274_s3 = inlined_call_operand.vmem [shape: f32[1,512], index: 3, kind: input, shape index: {}]   ;;  %s5275_s4 = inlined_call_operand.hbm [shape: bf16[128,512], index: 4, kind: input, shape index: {}]   ;;  %s5276_s5 = inlined_call_operand.hbm [shape: bf16[128,512], index: 5, kind: input, shape index: {}]   ;;  %s5277_s6 = inlined_call_operand.vmem [shape: f32[1,512], index: 6, kind: input, shape index: {}]   ;;  %s5278_s7 = inlined_call_operand.vmem [shape: bf16[128,5], index: 7, kind: input, shape index: {}]   ;;  %s5279_s8 = inlined_call_operand.vmem [shape: f32[1,5], index: 8, kind: input, shape index: {}]   ;;  %s5280_s9 = inlined_call_operand.hbm [shape: f32[8,5], index: 9, kind: output, shape index: {}]  }
   0x1   :  { %15 = vsyncpa [#allocation8], 0 }
   0x2   :  { %16 = vsyncpa [#allocation6], 0  ;;  %s3904_s30 = smov [#allocation7]   ;;  %s3905_s11 = smov [#allocation4]  }
   0x3   :  { %s40_s10 = sshll.u32 %s3904_s30, 4  ;;  %s26_s12 = sshll.u32 %s3905_s11, 4  ;;  %s41_s10 = int_to_ptr.vmem [resolvable:$true] %s40_s10  ;;  %s3964_s12 = int_to_ptr.vmem [resolvable:$true] %s26_s12 }
   0x4   :  { %s3810_s15 = scalar_lea.hbm %s5275_s4, 4096 }
   0x5   :  { %p3811_p0 = scmp.ne.s32.totalorder %s5275_s4, %s3810_s15  ;;  %p3814_p1 = scmp.lt.u32.totalorder %s3810_s15, %s5275_s4 }
   0x7   :  { %p3816_p2 = pnand %p3814_p1, %p3811_p0 }
   0x9   :  { %3819 = shalt.err (!%p3816_p2)
}
   0xa   :  { %s3820_s20 = scalar_lea.vmem %s41_s10, 4096  ;;  %p3825_p4 = scmp.lt.s32.totalorder %s41_s10, %s41_s10 }
   0xb   :  { %p3821_p3 = scmp.ne.s32.totalorder %s41_s10, %s3820_s20  ;;  %p3826_p5 = scmp.lt.s32.totalorder %s3820_s20, %s3820_s20 }
   0xd   :  { %p3827_p6 = por %p3826_p5, %p3825_p4 }
   0xf   :  { %p3828_p7 = pnand %p3827_p6, %p3821_p3 }
  0x11   :  { %3831 = shalt.err (!%p3828_p7)
}
  0x12   :  { %s3906_s21 = smov 256   ;;  %s3907_s22 = smov 16  }
  0x13   :  { %46 = dma.hbm_to_vmem [thread:$0]  %s5275_s4, 4096, %s41_s10, [#allocation8], %s3906_s21, %s3906_s21, %s3907_s22  }
  0x14   :  { %s3832_s27 = scalar_lea.hbm %s5273_s2, 4096 }
  0x15   :  { %p3833_p8 = scmp.ne.s32.totalorder %s5273_s2, %s3832_s27  ;;  %p3836_p9 = scmp.lt.u32.totalorder %s3832_s27, %s5273_s2 }
  0x17   :  { %p3838_p10 = pnand %p3836_p9, %p3833_p8 }
  0x19   :  { %3841 = shalt.err (!%p3838_p10)
}
  0x1a   :  { %s3842_s13 = scalar_lea.vmem %s3964_s12, 4096  ;;  %p3847_p12 = scmp.lt.s32.totalorder %s3964_s12, %s3964_s12 }
  0x1b   :  { %p3843_p11 = scmp.ne.s32.totalorder %s3964_s12, %s3842_s13  ;;  %p3848_p13 = scmp.lt.s32.totalorder %s3842_s13, %s3842_s13 }
  0x1d   :  { %p3849_p0 = por %p3848_p13, %p3847_p12 }
  0x1f   :  { %p3850_p1 = pnand %p3849_p0, %p3843_p11 }
  0x21   :  { %3853 = shalt.err (!%p3850_p1)
}
  0x22   :  { %32 = dma.hbm_to_vmem [thread:$0]  %s5273_s2, 4096, %s3964_s12, [#allocation5], %s3906_s21, %s3906_s21, %s3907_s22  }
  0x23   :  { %s3908_s14 = smov [#allocation9]   ;;  %s3854_s18 = scalar_lea.hbm %s5276_s5, 4096 }
  0x24   :  { %s52_s15 = sshll.u32 %s3908_s14, 4  ;;  %p3855_p2 = scmp.ne.s32.totalorder %s5276_s5, %s3854_s18  ;;  %s53_s15 = int_to_ptr.vmem [resolvable:$true] %s52_s15 }
  0x25   :  { %p3858_p3 = scmp.lt.u32.totalorder %s3854_s18, %s5276_s5 }
  0x27   :  { %p3860_p4 = pnand %p3858_p3, %p3855_p2 }
  0x29   :  { %3863 = shalt.err (!%p3860_p4)
}
  0x2a   :  { %s3864_s25 = scalar_lea.vmem %s53_s15, 4096  ;;  %p3869_p6 = scmp.lt.s32.totalorder %s53_s15, %s53_s15 }
  0x2b   :  { %p3865_p5 = scmp.ne.s32.totalorder %s53_s15, %s3864_s25  ;;  %p3870_p7 = scmp.lt.s32.totalorder %s3864_s25, %s3864_s25 }
  0x2d   :  { %p3871_p8 = por %p3870_p7, %p3869_p6 }
  0x2f   :  { %p3872_p9 = pnand %p3871_p8, %p3865_p5 }
  0x31   :  { %3875 = shalt.err (!%p3872_p9)
}
  0x32   :  { %58 = dma.hbm_to_vmem [thread:$0]  %s5276_s5, 4096, %s53_s15, [#allocation8], %s3906_s21, %s3906_s21, %s3907_s22  }
  0x33   :  { %3898 = dma.done.wait [#allocation5], 4096  }
  0x34   :  { %3899 = vsyncadd [#allocation5], 4294963200 }
  0x35   :  { %3900 = dma.done.wait [#allocation8], 8192  }
  0x36   :  { %3901 = vsyncadd [#allocation8], 4294959104  ;;  %v86_v0 = vlaneseq  ;;  %v3909_v1 = vmov 1983009808   ;;  %v5285_v3 = vmov 0   ;;  %v83_v7 = vld [vmem:[%s5272_s1] sm:$0xff] }
  0x37   :  { %v129_v2 = vunpack.c.l.s4 %v3909_v1  ;;  %202 = vmatprep.mubr.bf16.mxu0 %v5285_v3  ;;  %275 = vmatprep.mubr.bf16.mxu1 %v5285_v3  ;;  %vm157_vm0 = vcmask 1041408   ;;  %v127_v9 = vcombine.high %v83_v7, %v83_v7  ;;  %v4024_v13 = vld [vmem:[#allocation4 + $0x4] ss:$16 sps:$4 sm:$0xff]   ;;  %v4029_v17 = vld [vmem:[#allocation4 + $0xc] ss:$16 sps:$4 sm:$0xff]   ;;  %vm144_vm1 = vcmask 31744  }
  0x38   :  { %v4018_v4 = vshrl.u32 %v86_v0, 7  ;;  %v3330_v14 = vld [vmem:[%s5271_s0] sm:$0xff]   ;;  %v4036_v20 = vld [vmem:[#allocation4 + $0x8] ss:$16 sps:$4 sm:$0xff]   ;;  %v4040_v21 = vld [vmem:[#allocation4 + $0x2c] ss:$16 sps:$4 sm:$0xff]  }
  0x39   :  { %v130_v5 = vunpack.c.0.s8 %v129_v2  ;;  %v4031_v18 = vld [vmem:[#allocation4] ss:$16 sps:$4 sm:$0xff]   ;;  %v4034_v19 = vld [vmem:[#allocation4 + $0x24] ss:$16 sps:$4 sm:$0xff]   ;;  %v4051_v24 = vld [vmem:[#allocation4 + $0x28] ss:$16 sps:$4 sm:$0xff]  }
  0x3a   :  { %5289 = vst [vmem:[#allocation14_spill] sm:$0xff] %v4018_v4  ;;  %v4043_v22 = vld [vmem:[#allocation4 + $0x20] ss:$16 sps:$4 sm:$0xff]   ;;  %v4048_v23 = vld [vmem:[#allocation4 + $0x44] ss:$16 sps:$4 sm:$0xff]   ;;  %v3343_v25 = vld [vmem:[%s5271_s0 + $0x8] sm:$0xff]  }
  0x3b   :  { %v133_v6 = vsub.s32 %v130_v5, %v4018_v4  ;;  %v4058_v26 = vld [vmem:[#allocation4 + $0x4c] ss:$16 sps:$4 sm:$0xff]   ;;  %v4061_v27 = vld [vmem:[#allocation4 + $0x40] ss:$16 sps:$4 sm:$0xff]   ;;  %v4064_v28 = vld [vmem:[#allocation4 + $0x64] ss:$16 sps:$4 sm:$0xff]  }
  0x3c   :  { %v4067_v29 = vld [vmem:[#allocation4 + $0x48] ss:$16 sps:$4 sm:$0xff]   ;;  %v4071_v30 = vld [vmem:[#allocation4 + $0x6c] ss:$16 sps:$4 sm:$0xff]   ;;  %v4074_v31 = vld [vmem:[#allocation4 + $0x60] ss:$16 sps:$4 sm:$0xff]  }
  0x3d   :  { %v134_v8 = vrot.slane %v83_v7, %v133_v6  ;;  %v141_v12 = vrot.slane %v127_v9, %v133_v6  ;;  %v4079_v32 = vld [vmem:[#allocation4 + $0x84] ss:$16 sps:$4 sm:$0xff]   ;;  %v4082_v33 = vld [vmem:[#allocation4 + $0x68] ss:$16 sps:$4 sm:$0xff]   ;;  %v4089_v35 = vld [vmem:[#allocation4 + $0x8c] ss:$16 sps:$4 sm:$0xff]  }
  0x3e   :  { %v3356_v34 = vld [vmem:[%s5271_s0 + $0x10] sm:$0xff]   ;;  %v4098_v38 = vld [vmem:[#allocation4 + $0x88] ss:$16 sps:$4 sm:$0xff]   ;;  %v4104_v40 = vld [vmem:[#allocation4 + $0xac] ss:$16 sps:$4 sm:$0xff]   ;;  %v5284_v51 = vsub.s32 0, %v4018_v4 }
  0x3f   :  { %v142_v10 = vcombine.high %v134_v8, %v134_v8  ;;  %v159_v11 = vsel %vm157_vm0, %v134_v8, 0  ;;  %v143_v15 = vcombine.high %v141_v12, %v141_v12  ;;  %v165_v16 = vsel %vm157_vm0, %v141_v12, 0  ;;  %v4092_v36 = vld [vmem:[#allocation4 + $0x80] ss:$16 sps:$4 sm:$0xff]   ;;  %v4095_v37 = vld [vmem:[#allocation4 + $0xa4] ss:$16 sps:$4 sm:$0xff]  }
  0x40   :  { %v4102_v39 = vld [vmem:[#allocation4 + $0xa0] ss:$16 sps:$4 sm:$0xff]   ;;  %v4106_v41 = vld [vmem:[#allocation4 + $0xc4] ss:$16 sps:$4 sm:$0xff]   ;;  %v4110_v42 = vld [vmem:[#allocation4 + $0xa8] ss:$16 sps:$4 sm:$0xff]  }
  0x41   :  { %3127 = vmatprep.subr.msk.bf16.mxu0 %vm157_vm0, %v142_v10  ;;  %3132 = vmatprep.subr.msk.bf16.mxu1 %vm157_vm0, %v143_v15  ;;  %v3369_v43 = vld [vmem:[%s5271_s0 + $0x18] sm:$0xff]   ;;  %v4121_v45 = vld [vmem:[#allocation4 + $0xc0] ss:$16 sps:$4 sm:$0xff]   ;;  %v4124_v46 = vld [vmem:[#allocation4 + $0xe4] ss:$16 sps:$4 sm:$0xff]   ;;  %v5283_v52 = vsub.s32 2, %v4018_v4 }
  0x42   :  { %171 = vmatpush1.bf16.msra.mxu0 %v159_v11  ;;  %244 = vmatpush1.bf16.msra.mxu1 %v165_v16  ;;  %v4117_v44 = vld [vmem:[#allocation4 + $0xcc] ss:$16 sps:$4 sm:$0xff]   ;;  %v4127_v47 = vld [vmem:[#allocation4 + $0xc8] ss:$16 sps:$4 sm:$0xff]   ;;  %v4133_v49 = vld [vmem:[#allocation4 + $0xe0] ss:$16 sps:$4 sm:$0xff]  }
  0x43   :  { %544 = vmatprep.subr.bf16.mxu0 %v4024_v13  ;;  %585 = vmatprep.subr.bf16.mxu1 %v4029_v17  ;;  %v4130_v48 = vld [vmem:[#allocation4 + $0xec] ss:$16 sps:$4 sm:$0xff]   ;;  %v4139_v50 = vld [vmem:[#allocation4 + $0xe8] ss:$16 sps:$4 sm:$0xff]   ;;  %v84_v53 = vld [vmem:[%s5274_s3] sm:$0xf] }
  0x44   :  { %v5282_v54 = vsub.s32 1, %v4018_v4  ;;  %v5281_v55 = vsub.s32 3, %v4018_v4  ;;  %v4197_v57 = vrot.slane %v84_v53, %v5284_v51  ;;  %v4203_v59 = vrot.slane %v84_v53, %v5283_v52 }
  0x45   :  { %3128 = vmatmul.mubr.msk.bf16.vlgmr.msra.gmra.mrb[0].mxu0 %vm144_vm1, %v3330_v14  ;;  %3133 = vmatmul.mubr.msk.bf16.vlgmr.msra.gmra.mrb[0].mxu1 %vm144_vm1, %v3330_v14  ;;  %vm3912_vm2 = vmmov 0   ;;  %vm3094_vm3 = vcmask 39936  }
  0x46   :  { %545 = vmatpush1.bf16.msra.mxu0 %v4031_v18  ;;  %212 = vmatprep.mubr.bf16.mxu0 %v5285_v3  ;;  %v93_v60 = vrot.slane %v84_v53, %v5282_v54  ;;  %v4209_v63 = vrot.slane %v84_v53, %v5281_v55 }
  0x47   :  { %546 = vmatprep.subr.bf16.mxu0 %v4034_v19  ;;  %586 = vmatpush1.bf16.msra.mxu1 %v4036_v20 }
  0x48   :  { %285 = vmatprep.mubr.bf16.mxu1 %v5285_v3  ;;  %587 = vmatprep.subr.bf16.mxu1 %v4040_v21 }
  0x4a   :  { %547 = vmatpush1.bf16.msra.mxu0 %v4043_v22 }
  0x4b   :  { %548 = vmatprep.subr.bf16.mxu0 %v4048_v23  ;;  %588 = vmatpush1.bf16.msra.mxu1 %v4051_v24 }
  0x4c   :  { %589 = vmatprep.subr.bf16.mxu1 %v4058_v26 }
  0x4d   :  { %3129 = vmatmul.mubr.msk.bf16.gmra.mrb[4].mxu0 %vm144_vm1, %v3343_v25  ;;  %3134 = vmatmul.mubr.msk.bf16.gmra.mrb[4].mxu1 %vm144_vm1, %v3343_v25 }
  0x4e   :  { %549 = vmatpush1.bf16.msra.mxu0 %v4061_v27  ;;  %222 = vmatprep.mubr.bf16.mxu0 %v5285_v3 }
  0x4f   :  { %550 = vmatprep.subr.bf16.mxu0 %v4064_v28  ;;  %590 = vmatpush1.bf16.msra.mxu1 %v4067_v29 }
  0x50   :  { %295 = vmatprep.mubr.bf16.mxu1 %v5285_v3  ;;  %591 = vmatprep.subr.bf16.mxu1 %v4071_v30 }
  0x52   :  { %551 = vmatpush1.bf16.msra.mxu0 %v4074_v31 }
  0x53   :  { %552 = vmatprep.subr.bf16.mxu0 %v4079_v32  ;;  %592 = vmatpush1.bf16.msra.mxu1 %v4082_v33 }
  0x54   :  { %593 = vmatprep.subr.bf16.mxu1 %v4089_v35 }
  0x55   :  { %3130 = vmatmul.mubr.msk.bf16.gmra.mrb[8].mxu0 %vm144_vm1, %v3356_v34  ;;  %3135 = vmatmul.mubr.msk.bf16.gmra.mrb[8].mxu1 %vm144_vm1, %v3356_v34 }
  0x56   :  { %553 = vmatpush1.bf16.msra.mxu0 %v4092_v36  ;;  %232 = vmatprep.mubr.bf16.mxu0 %v5285_v3 }
  0x57   :  { %554 = vmatprep.subr.bf16.mxu0 %v4095_v37  ;;  %594 = vmatpush1.bf16.msra.mxu1 %v4098_v38 }
  0x58   :  { %305 = vmatprep.mubr.bf16.mxu1 %v5285_v3  ;;  %595 = vmatprep.subr.bf16.mxu1 %v4104_v40 }
  0x5a   :  { %555 = vmatpush1.bf16.msra.mxu0 %v4102_v39 }
  0x5b   :  { %556 = vmatprep.subr.bf16.mxu0 %v4106_v41  ;;  %596 = vmatpush1.bf16.msra.mxu1 %v4110_v42 }
  0x5c   :  { %597 = vmatprep.subr.bf16.mxu1 %v4117_v44 }
  0x5d   :  { %3131 = vmatmul.mubr.msk.bf16.gmra.mrb[12].mxu0 %vm144_vm1, %v3369_v43  ;;  %3136 = vmatmul.mubr.msk.bf16.gmra.mrb[12].mxu1 %vm144_vm1, %v3369_v43 }
  0x5e   :  { %557 = vmatpush1.bf16.msra.mxu0 %v4121_v45  ;;  %576 = vmatprep.mubr.bf16.mxu0 %v5285_v3 }
  0x5f   :  { %558 = vmatprep.subr.bf16.mxu0 %v4124_v46  ;;  %598 = vmatpush1.bf16.msra.mxu1 %v4127_v47 }
  0x60   :  { %617 = vmatprep.mubr.bf16.mxu1 %v5285_v3  ;;  %599 = vmatprep.subr.bf16.mxu1 %v4130_v48 }
  0x62   :  { %559 = vmatpush1.bf16.msra.mxu0 %v4133_v49 }
  0x63   :  { %660 = vmatprep.subr.bf16.mxu0 %v4024_v13  ;;  %600 = vmatpush1.bf16.msra.mxu1 %v4139_v50 }
  0x64   :  { %701 = vmatprep.subr.bf16.mxu1 %v4029_v17 }
  0x65   :  { %577 = vmatmul.mubr.bf16.vlgmr.msra.gmra.mrb[16].mxu0 %v5285_v3 }
  0x66   :  { %661 = vmatpush1.bf16.msra.mxu0 %v4031_v18  ;;  %692 = vmatprep.mubr.bf16.mxu0 %v5285_v3 }
  0x67   :  { %618 = vmatmul.mubr.bf16.vlgmr.msra.gmra.mrb[16].mxu1 %v5285_v3  ;;  %662 = vmatprep.subr.bf16.mxu0 %v4034_v19 }
  0x68   :  { %702 = vmatpush1.bf16.msra.mxu1 %v4036_v20  ;;  %733 = vmatprep.mubr.bf16.mxu1 %v5285_v3 }
  0x69   :  { %703 = vmatprep.subr.bf16.mxu1 %v4040_v21 }
  0x6a   :  { %663 = vmatpush1.bf16.msra.mxu0 %v4043_v22 }
  0x6b   :  { %664 = vmatprep.subr.bf16.mxu0 %v4048_v23 }
  0x6c   :  { %704 = vmatpush1.bf16.msra.mxu1 %v4051_v24 }
  0x6d   :  { %705 = vmatprep.subr.bf16.mxu1 %v4058_v26 }
  0x6e   :  { %665 = vmatpush1.bf16.msra.mxu0 %v4061_v27 }
  0x6f   :  { %666 = vmatprep.subr.bf16.mxu0 %v4064_v28 }
  0x70   :  { %706 = vmatpush1.bf16.msra.mxu1 %v4067_v29 }
  0x71   :  { %707 = vmatprep.subr.bf16.mxu1 %v4071_v30 }
  0x72   :  { %667 = vmatpush1.bf16.msra.mxu0 %v4074_v31 }
  0x73   :  { %668 = vmatprep.subr.bf16.mxu0 %v4079_v32 }
  0x74   :  { %708 = vmatpush1.bf16.msra.mxu1 %v4082_v33 }
  0x75   :  { %709 = vmatprep.subr.bf16.mxu1 %v4089_v35 }
  0x76   :  { %669 = vmatpush1.bf16.msra.mxu0 %v4092_v36 }
  0x77   :  { %670 = vmatprep.subr.bf16.mxu0 %v4095_v37 }
  0x78   :  { %710 = vmatpush1.bf16.msra.mxu1 %v4098_v38 }
  0x79   :  { %711 = vmatprep.subr.bf16.mxu1 %v4104_v40 }
  0x7a   :  { %671 = vmatpush1.bf16.msra.mxu0 %v4102_v39 }
  0x7b   :  { %672 = vmatprep.subr.bf16.mxu0 %v4106_v41 }
  0x7c   :  { %712 = vmatpush1.bf16.msra.mxu1 %v4110_v42 }
  0x7d   :  { %713 = vmatprep.subr.bf16.mxu1 %v4117_v44 }
  0x7e   :  { %673 = vmatpush1.bf16.msra.mxu0 %v4121_v45 }
  0x7f   :  { %674 = vmatprep.subr.bf16.mxu0 %v4124_v46 }
  0x80   :  { %714 = vmatpush1.bf16.msra.mxu1 %v4127_v47 }
  0x81   :  { %715 = vmatprep.subr.bf16.mxu1 %v4130_v48 }
  0x82   :  { %675 = vmatpush1.bf16.msra.mxu0 %v4133_v49 }
  0x83   :  { %776 = vmatprep.subr.bf16.mxu0 %v4024_v13 }
  0x84   :  { %716 = vmatpush1.bf16.msra.mxu1 %v4139_v50 }
  0x85   :  { %817 = vmatprep.subr.bf16.mxu1 %v4029_v17 }
 0x118   :  { %v4193_v56 = vpop.f32.mrb[0].mxu0  ;;  %v277_v62 = vpop.f32.mrb[0].mxu1 }
 0x119   :  { %v4199_v58 = vpop.f32.mrb[1].mxu0  ;;  %v279_v2 = vpop.f32.mrb[1].mxu1 }
 0x11a   :  { %v208_v61 = vpop.f32.mrb[2].mxu0  ;;  %v281_v6 = vpop.f32.mrb[2].mxu1 }
 0x11b   :  { %v4212_v0 = vadd.f32 %v208_v61, %v4197_v57  ;;  %v210_v1 = vpop.f32.mrb[3].mxu0  ;;  %v4217_v7 = vadd.f32 %v281_v6, %v4203_v59  ;;  %v283_v8 = vpop.f32.mrb[3].mxu1 }
 0x11c   :  { %v4214_v5 = vadd.f32 %v210_v1, %v93_v60  ;;  %v4220_v9 = vadd.f32 %v283_v8, %v4209_v63 }
 0x120   :  { %v214_v10 = vpop.f32.mrb[4].mxu0  ;;  %v287_v16 = vpop.f32.mrb[4].mxu1 }
 0x121   :  { %v4223_v11 = vadd.f32 %v214_v10, %v4197_v57  ;;  %v216_v12 = vpop.f32.mrb[5].mxu0  ;;  %v4231_v43 = vadd.f32 %v287_v16, %v4203_v59  ;;  %v289_v53 = vpop.f32.mrb[5].mxu1 }
 0x122   :  { %v4225_v14 = vadd.f32 %v216_v12, %v93_v60  ;;  %v218_v15 = vpop.f32.mrb[6].mxu0  ;;  %v4236_v1 = vadd.f32 %v289_v53, %v4209_v63  ;;  %v291_v6 = vpop.f32.mrb[6].mxu1 }
 0x123   :  { %v4228_v25 = vadd.f32 %v218_v15, %v4197_v57  ;;  %v220_v34 = vpop.f32.mrb[7].mxu0  ;;  %v4239_v8 = vadd.f32 %v291_v6, %v4203_v59  ;;  %v293_v10 = vpop.f32.mrb[7].mxu1 }
 0x124   :  { %v4233_v61 = vadd.f32 %v220_v34, %v93_v60  ;;  %5292 = vst [vmem:[#allocation17_spill] sm:$0xff] %v4236_v1  ;;  %v4242_v12 = vadd.f32 %v293_v10, %v4209_v63 }
 0x125   :  { %5290 = vst [vmem:[#allocation15_spill] sm:$0xff] %v4228_v25  ;;  %5293 = vst [vmem:[#allocation18_spill] sm:$0xff] %v4239_v8 }
 0x126   :  { %5291 = vst [vmem:[#allocation16_spill] sm:$0xff] %v4233_v61  ;;  %5294 = vst [vmem:[#allocation19_spill] sm:$0xff] %v4242_v12 }
 0x128   :  { %v224_v15 = vpop.f32.mrb[8].mxu0  ;;  %v297_v52 = vpop.f32.mrb[8].mxu1 }
 0x129   :  { %v4245_v55 = vadd.f32 %v224_v15, %v4197_v57  ;;  %v226_v16 = vpop.f32.mrb[9].mxu0  ;;  %v4253_v6 = vadd.f32 %v297_v52, %v4203_v59  ;;  %v299_v3 = vpop.f32.mrb[9].mxu1 }
 0x12a   :  { %v4247_v54 = vadd.f32 %v226_v16, %v93_v60  ;;  %v228_v34 = vpop.f32.mrb[10].mxu0  ;;  %v4258_v10 = vadd.f32 %v299_v3, %v4209_v63  ;;  %v301_v15 = vpop.f32.mrb[10].mxu1 }
 0x12b   :  { %5295 = vst [vmem:[#allocation20_spill] sm:$0xff] %v4245_v55  ;;  %v4250_v53 = vadd.f32 %v228_v34, %v4197_v57  ;;  %v230_v51 = vpop.f32.mrb[11].mxu0  ;;  %5298 = vst [vmem:[#allocation23_spill] sm:$0xff] %v4253_v6  ;;  %v4261_v55 = vadd.f32 %v301_v15, %v4203_v59  ;;  %v303_v16 = vpop.f32.mrb[11].mxu1 }
 0x12c   :  { %5296 = vst [vmem:[#allocation21_spill] sm:$0xff] %v4247_v54  ;;  %v4255_v4 = vadd.f32 %v230_v51, %v93_v60  ;;  %5300 = vst [vmem:[#allocation25_spill] sm:$0xff] %v4258_v10  ;;  %v4264_v54 = vadd.f32 %v303_v16, %v4209_v63 }
 0x12d   :  { %5297 = vst [vmem:[#allocation22_spill] sm:$0xff] %v4250_v53  ;;  %5301 = vst [vmem:[#allocation26_spill] sm:$0xff] %v4261_v55 }
 0x12e   :  { %5299 = vst [vmem:[#allocation24_spill] sm:$0xff] %v4255_v4  ;;  %5302 = vst [vmem:[#allocation27_spill] sm:$0xff] %v4264_v54 }
 0x130   :  { %v234_v34 = vpop.f32.mrb[12].mxu0  ;;  %v307_v4 = vpop.f32.mrb[12].mxu1 }
 0x131   :  { %v4267_v53 = vadd.f32 %v234_v34, %v4197_v57  ;;  %v236_v52 = vpop.f32.mrb[13].mxu0  ;;  %v4275_v15 = vadd.f32 %v307_v4, %v4203_v59  ;;  %v309_v55 = vpop.f32.mrb[13].mxu1  ;;  %v207_v4 = vadd.f32 %v4199_v58, %v93_v60 }
 0x132   :  { %v4269_v6 = vadd.f32 %v236_v52, %v93_v60  ;;  %v238_v51 = vpop.f32.mrb[14].mxu0  ;;  %v4280_v16 = vadd.f32 %v309_v55, %v4209_v63  ;;  %v311_v34 = vpop.f32.mrb[14].mxu1  ;;  %v280_v55 = vadd.f32 %v279_v2, %v4209_v63 }
 0x133   :  { %5303 = vst [vmem:[#allocation28_spill] sm:$0xff] %v4267_v53  ;;  %v4272_v3 = vadd.f32 %v238_v51, %v4197_v57  ;;  %v240_v10 = vpop.f32.mrb[15].mxu0  ;;  %5306 = vst [vmem:[#allocation31_spill] sm:$0xff] %v4275_v15  ;;  %v4283_v53 = vadd.f32 %v311_v34, %v4203_v59  ;;  %v313_v52 = vpop.f32.mrb[15].mxu1  ;;  %v205_v51 = vadd.f32 %v4193_v56, %v4197_v57 }
 0x134   :  { %5304 = vst [vmem:[#allocation29_spill] sm:$0xff] %v4269_v6  ;;  %v4277_v12 = vadd.f32 %v240_v10, %v93_v60  ;;  %5308 = vst [vmem:[#allocation33_spill] sm:$0xff] %v4280_v16  ;;  %v4286_v6 = vadd.f32 %v313_v52, %v4209_v63  ;;  %v278_v10 = vadd.f32 %v277_v62, %v4203_v59 }
 0x135   :  { %5305 = vst [vmem:[#allocation30_spill] sm:$0xff] %v4272_v3  ;;  %5309 = vst [vmem:[#allocation34_spill] sm:$0xff] %v4283_v53 }
 0x136   :  { %5307 = vst [vmem:[#allocation32_spill] sm:$0xff] %v4277_v12  ;;  %5310 = vst [vmem:[#allocation35_spill] sm:$0xff] %v4286_v6 }
 0x138   :  { %v578_v3 = vpop.f32.mrb[16].mxu0 }
 0x139   :  { %v626_v12 = vadd.f32 %v578_v3, %v205_v51  ;;  %v580_v15 = vpop.f32.mrb[17].mxu0 }
 0x13a   :  { %v627_v16 = vadd.f32 %v580_v15, %v207_v4  ;;  %v582_v54 = vpop.f32.mrb[18].mxu0  ;;  %v619_v34 = vpop.f32.mrb[16].mxu1 }
 0x13b   :  { %v3169_v53 = vmul.f32 -1.442695, %v626_v12  ;;  %v628_v61 = vadd.f32 %v619_v34, %v278_v10  ;;  %v583_v8 = vpop.f32.mrb[19].mxu0  ;;  %v621_v52 = vpop.f32.mrb[17].mxu1 }
 0x13c   :  { %v3170_v6 = vmul.f32 -1.442695, %v627_v16  ;;  %v629_v25 = vadd.f32 %v621_v52, %v280_v55  ;;  %v623_v1 = vpop.f32.mrb[18].mxu1  ;;  %v5311_v16 = vmov 0  }
 0x13d   :  { %3486 = vpow2.f32 %v3169_v53  ;;  %v624_v56 = vpop.f32.mrb[19].mxu1  ;;  %v3171_v57 = vmul.f32 -1.442695, %v628_v61 }
 0x13e   :  { %3488 = vpow2.f32 %v3170_v6 }
 0x13f   :  { %3490 = vpow2.f32 %v3171_v57 }
 0x140   :  { %3492 = vtanh.f32 %v629_v25 }
 0x147   :  { %v3487_v58 = vpop.eup %3486 }
 0x148   :  { %v3489_v59 = vpop.eup %3488  ;;  %v639_v60 = vadd.f32 1.0, %v3487_v58 }
 0x149   :  { %v640_v62 = vadd.f32 1.0, %v3489_v59  ;;  %v3491_v54 = vpop.eup %3490 }
 0x14a   :  { %3494 = vrcp.f32 %v639_v60  ;;  %v3493_v63 = vpop.eup %3492  ;;  %v641_v12 = vadd.f32 1.0, %v3491_v54 }
 0x14b   :  { %3496 = vrcp.f32 %v640_v62 }
 0x14c   :  { %3498 = vrcp.f32 %v641_v12 }
 0x154   :  { %v3495_v2 = vpop.eup %3494 }
 0x155   :  { %v3497_v8 = vpop.eup %3496  ;;  %v650_v3 = vmul.f32 %v3495_v2, %v3493_v63 }
 0x156   :  { %v649_v15 = vmul.f32 0.0, %v3497_v8  ;;  %v3499_v61 = vpop.eup %3498 }
 0x158   :  { %v4293_v1 = vadd.f32 %v650_v3, %v649_v15 }
 0x15a   :  { %3500 = vtanh.f32 %v4293_v1 }
 0x164   :  { %v3501_v53 = vpop.eup %3500 }
 0x165   :  { %v4296_v6 = vmul.f32 %v3501_v53, %v3499_v61 }
 0x167   :  { %v655_v25 = vpack.c.bf16 %v4296_v6, %v4296_v6 }
 0x169   :  { %693 = vmatmul.mubr.bf16.vlgmr.msra.gmra.mrb[20].mxu0 %v655_v25  ;;  %734 = vmatmul.mubr.bf16.vlgmr.msra.gmra.mrb[20].mxu1 %v655_v25 }
 0x16a   :  { %777 = vmatpush1.bf16.msra.mxu0 %v4031_v18  ;;  %818 = vmatpush1.bf16.msra.mxu1 %v4036_v20 }
 0x16b   :  { %778 = vmatprep.subr.bf16.mxu0 %v4034_v19  ;;  %819 = vmatprep.subr.bf16.mxu1 %v4040_v21 }
 0x16c   :  { %808 = vmatprep.mubr.bf16.mxu0 %v5311_v16  ;;  %849 = vmatprep.mubr.bf16.mxu1 %v5311_v16 }
 0x16e   :  { %779 = vmatpush1.bf16.msra.mxu0 %v4043_v22  ;;  %820 = vmatpush1.bf16.msra.mxu1 %v4051_v24 }
 0x16f   :  { %780 = vmatprep.subr.bf16.mxu0 %v4048_v23  ;;  %821 = vmatprep.subr.bf16.mxu1 %v4058_v26 }
 0x172   :  { %781 = vmatpush1.bf16.msra.mxu0 %v4061_v27  ;;  %822 = vmatpush1.bf16.msra.mxu1 %v4067_v29 }
 0x173   :  { %782 = vmatprep.subr.bf16.mxu0 %v4064_v28  ;;  %823 = vmatprep.subr.bf16.mxu1 %v4071_v30 }
 0x176   :  { %783 = vmatpush1.bf16.msra.mxu0 %v4074_v31  ;;  %824 = vmatpush1.bf16.msra.mxu1 %v4082_v33 }
 0x177   :  { %784 = vmatprep.subr.bf16.mxu0 %v4079_v32  ;;  %825 = vmatprep.subr.bf16.mxu1 %v4089_v35 }
 0x17a   :  { %785 = vmatpush1.bf16.msra.mxu0 %v4092_v36  ;;  %826 = vmatpush1.bf16.msra.mxu1 %v4098_v38 }
 0x17b   :  { %786 = vmatprep.subr.bf16.mxu0 %v4095_v37  ;;  %827 = vmatprep.subr.bf16.mxu1 %v4104_v40 }
 0x17e   :  { %787 = vmatpush1.bf16.msra.mxu0 %v4102_v39  ;;  %828 = vmatpush1.bf16.msra.mxu1 %v4110_v42 }
 0x17f   :  { %788 = vmatprep.subr.bf16.mxu0 %v4106_v41  ;;  %829 = vmatprep.subr.bf16.mxu1 %v4117_v44 }
 0x182   :  { %789 = vmatpush1.bf16.msra.mxu0 %v4121_v45  ;;  %830 = vmatpush1.bf16.msra.mxu1 %v4127_v47 }
 0x183   :  { %790 = vmatprep.subr.bf16.mxu0 %v4124_v46  ;;  %831 = vmatprep.subr.bf16.mxu1 %v4130_v48 }
 0x186   :  { %791 = vmatpush1.bf16.msra.mxu0 %v4133_v49  ;;  %832 = vmatpush1.bf16.msra.mxu1 %v4139_v50 }
 0x187   :  { %892 = vmatprep.subr.bf16.mxu0 %v4024_v13  ;;  %933 = vmatprep.subr.bf16.mxu1 %v4029_v17 }
 0x23c   :  { %v694_v51 = vpop.f32.mrb[20].mxu0  ;;  %v735_v4 = vpop.f32.mrb[20].mxu1 }
 0x23d   :  { %v742_v10 = vadd.f32 %v694_v51, %v4212_v0  ;;  %v744_v55 = vadd.f32 %v735_v4, %v4217_v7  ;;  %v696_v34 = vpop.f32.mrb[21].mxu0  ;;  %v737_v52 = vpop.f32.mrb[21].mxu1 }
 0x23e   :  { %v743_v56 = vadd.f32 %v696_v34, %v4214_v5  ;;  %v745_v57 = vadd.f32 %v737_v52, %v4220_v9  ;;  %v698_v58 = vpop.f32.mrb[22].mxu0  ;;  %v739_v59 = vpop.f32.mrb[22].mxu1 }
 0x23f   :  { %v3172_v60 = vmul.f32 -1.442695, %v742_v10  ;;  %v699_v62 = vpop.f32.mrb[23].mxu0  ;;  %v740_v54 = vpop.f32.mrb[23].mxu1  ;;  %v3174_v2 = vmul.f32 -1.442695, %v744_v55 }
 0x240   :  { %v3173_v63 = vmul.f32 -1.442695, %v743_v56  ;;  %v5312_v62 = vld [vmem:[#allocation17_spill] sm:$0xff] }
 0x241   :  { %3502 = vpow2.f32 %v3172_v60 }
 0x242   :  { %3504 = vpow2.f32 %v3173_v63 }
 0x243   :  { %3506 = vtanh.f32 %v745_v57 }
 0x244   :  { %3508 = vpow2.f32 %v3174_v2 }
 0x24b   :  { %v3503_v8 = vpop.eup %3502 }
 0x24c   :  { %v755_v12 = vadd.f32 1.0, %v3503_v8  ;;  %v3505_v0 = vpop.eup %3504 }
 0x24d   :  { %v756_v7 = vadd.f32 1.0, %v3505_v0  ;;  %v3507_v5 = vpop.eup %3506 }
 0x24e   :  { %3510 = vrcp.f32 %v755_v12  ;;  %v3509_v3 = vpop.eup %3508 }
 0x24f   :  { %3512 = vrcp.f32 %v756_v7  ;;  %v757_v53 = vadd.f32 1.0, %v3509_v3 }
 0x251   :  { %3514 = vrcp.f32 %v757_v53 }
 0x258   :  { %v3511_v9 = vpop.eup %3510 }
 0x259   :  { %v766_v15 = vmul.f32 %v3511_v9, %v3507_v5  ;;  %v3513_v61 = vpop.eup %3512 }
 0x25a   :  { %v765_v25 = vmul.f32 %v3513_v61, %v4293_v1 }
 0x25b   :  { %v3515_v4 = vpop.eup %3514 }
 0x25c   :  { %v4339_v51 = vadd.f32 %v766_v15, %v765_v25 }
 0x25e   :  { %3516 = vtanh.f32 %v4339_v51 }
 0x268   :  { %v3517_v10 = vpop.eup %3516 }
 0x269   :  { %v4342_v55 = vmul.f32 %v3517_v10, %v3515_v4 }
 0x26b   :  { %v771_v34 = vpack.c.bf16 %v4342_v55, %v4342_v55 }
 0x26d   :  { %809 = vmatmul.mubr.bf16.vlgmr.msra.gmra.mrb[24].mxu0 %v771_v34  ;;  %850 = vmatmul.mubr.bf16.vlgmr.msra.gmra.mrb[24].mxu1 %v771_v34 }
 0x26e   :  { %893 = vmatpush1.bf16.msra.mxu0 %v4031_v18  ;;  %934 = vmatpush1.bf16.msra.mxu1 %v4036_v20 }
 0x26f   :  { %894 = vmatprep.subr.bf16.mxu0 %v4034_v19  ;;  %935 = vmatprep.subr.bf16.mxu1 %v4040_v21 }
 0x270   :  { %924 = vmatprep.mubr.bf16.mxu0 %v5311_v16  ;;  %965 = vmatprep.mubr.bf16.mxu1 %v5311_v16 }
 0x272   :  { %895 = vmatpush1.bf16.msra.mxu0 %v4043_v22  ;;  %936 = vmatpush1.bf16.msra.mxu1 %v4051_v24 }
 0x273   :  { %896 = vmatprep.subr.bf16.mxu0 %v4048_v23  ;;  %937 = vmatprep.subr.bf16.mxu1 %v4058_v26 }
 0x276   :  { %897 = vmatpush1.bf16.msra.mxu0 %v4061_v27  ;;  %938 = vmatpush1.bf16.msra.mxu1 %v4067_v29 }
 0x277   :  { %898 = vmatprep.subr.bf16.mxu0 %v4064_v28  ;;  %939 = vmatprep.subr.bf16.mxu1 %v4071_v30 }
 0x27a   :  { %899 = vmatpush1.bf16.msra.mxu0 %v4074_v31  ;;  %940 = vmatpush1.bf16.msra.mxu1 %v4082_v33 }
 0x27b   :  { %900 = vmatprep.subr.bf16.mxu0 %v4079_v32  ;;  %941 = vmatprep.subr.bf16.mxu1 %v4089_v35 }
 0x27e   :  { %901 = vmatpush1.bf16.msra.mxu0 %v4092_v36  ;;  %942 = vmatpush1.bf16.msra.mxu1 %v4098_v38 }
 0x27f   :  { %902 = vmatprep.subr.bf16.mxu0 %v4095_v37  ;;  %943 = vmatprep.subr.bf16.mxu1 %v4104_v40 }
 0x282   :  { %903 = vmatpush1.bf16.msra.mxu0 %v4102_v39  ;;  %944 = vmatpush1.bf16.msra.mxu1 %v4110_v42 }
 0x283   :  { %904 = vmatprep.subr.bf16.mxu0 %v4106_v41  ;;  %945 = vmatprep.subr.bf16.mxu1 %v4117_v44 }
 0x286   :  { %905 = vmatpush1.bf16.msra.mxu0 %v4121_v45  ;;  %946 = vmatpush1.bf16.msra.mxu1 %v4127_v47 }
 0x287   :  { %906 = vmatprep.subr.bf16.mxu0 %v4124_v46  ;;  %947 = vmatprep.subr.bf16.mxu1 %v4130_v48 }
 0x28a   :  { %907 = vmatpush1.bf16.msra.mxu0 %v4133_v49  ;;  %948 = vmatpush1.bf16.msra.mxu1 %v4139_v50 }
 0x28b   :  { %1008 = vmatprep.subr.bf16.mxu0 %v4024_v13  ;;  %1049 = vmatprep.subr.bf16.mxu1 %v4029_v17 }
 0x340   :  { %v810_v1 = vpop.f32.mrb[24].mxu0  ;;  %v851_v52 = vpop.f32.mrb[24].mxu1 }
 0x341   :  { %v858_v56 = vadd.f32 %v810_v1, %v4223_v11  ;;  %v860_v57 = vadd.f32 %v851_v52, %v4231_v43  ;;  %v812_v58 = vpop.f32.mrb[25].mxu0  ;;  %v853_v59 = vpop.f32.mrb[25].mxu1 }
 0x342   :  { %v859_v60 = vadd.f32 %v812_v58, %v4225_v14  ;;  %v861_v54 = vadd.f32 %v853_v59, %v5312_v62  ;;  %v814_v63 = vpop.f32.mrb[26].mxu0  ;;  %v855_v2 = vpop.f32.mrb[26].mxu1 }
 0x343   :  { %v3175_v8 = vmul.f32 -1.442695, %v858_v56  ;;  %v815_v12 = vpop.f32.mrb[27].mxu0  ;;  %v856_v0 = vpop.f32.mrb[27].mxu1  ;;  %v3177_v17 = vmul.f32 -1.442695, %v860_v57 }
 0x344   :  { %v3176_v13 = vmul.f32 -1.442695, %v859_v60 }
 0x345   :  { %3518 = vpow2.f32 %v3175_v8 }
 0x346   :  { %3520 = vpow2.f32 %v3176_v13 }
 0x347   :  { %3522 = vtanh.f32 %v861_v54 }
 0x348   :  { %3524 = vpow2.f32 %v3177_v17 }
 0x34f   :  { %v3519_v7 = vpop.eup %3518 }
 0x350   :  { %v871_v5 = vadd.f32 1.0, %v3519_v7  ;;  %v3521_v11 = vpop.eup %3520 }
 0x351   :  { %v872_v43 = vadd.f32 1.0, %v3521_v11  ;;  %v3523_v14 = vpop.eup %3522  ;;  %v4445_v11 = vld [vmem:[#allocation4 + $0x8] ss:$16 sps:$4 sm:$0xff]  }
 0x352   :  { %3526 = vrcp.f32 %v871_v5  ;;  %v3525_v3 = vpop.eup %3524  ;;  %v4442_v5 = vld [vmem:[#allocation4] ss:$16 sps:$4 sm:$0xff]  }
 0x353   :  { %3528 = vrcp.f32 %v872_v43  ;;  %v873_v53 = vadd.f32 1.0, %v3525_v3  ;;  %v4448_v43 = vld [vmem:[#allocation4 + $0x24] ss:$16 sps:$4 sm:$0xff]   ;;  %v4456_v3 = vld [vmem:[#allocation4 + $0x20] ss:$16 sps:$4 sm:$0xff]  }
 0x355   :  { %3530 = vrcp.f32 %v873_v53  ;;  %v4468_v53 = vld [vmem:[#allocation4 + $0x40] ss:$16 sps:$4 sm:$0xff]  }
 0x35c   :  { %v3527_v9 = vpop.eup %3526 }
 0x35d   :  { %v882_v15 = vmul.f32 %v3527_v9, %v3523_v14  ;;  %v3529_v61 = vpop.eup %3528  ;;  %v4451_v14 = vld [vmem:[#allocation4 + $0x2c] ss:$16 sps:$4 sm:$0xff]   ;;  %v4459_v9 = vld [vmem:[#allocation4 + $0x28] ss:$16 sps:$4 sm:$0xff]  }
 0x35e   :  { %v881_v25 = vmul.f32 %v3529_v61, %v4339_v51  ;;  %v4465_v61 = vld [vmem:[#allocation4 + $0x4c] ss:$16 sps:$4 sm:$0xff]  }
 0x35f   :  { %v3531_v10 = vpop.eup %3530 }
 0x360   :  { %v4385_v4 = vadd.f32 %v882_v15, %v881_v25  ;;  %v4462_v15 = vld [vmem:[#allocation4 + $0x44] ss:$16 sps:$4 sm:$0xff]   ;;  %v4471_v25 = vld [vmem:[#allocation4 + $0x48] ss:$16 sps:$4 sm:$0xff]  }
 0x362   :  { %3532 = vtanh.f32 %v4385_v4 }
 0x36c   :  { %v3533_v34 = vpop.eup %3532 }
 0x36d   :  { %v4388_v1 = vmul.f32 %v3533_v34, %v3531_v10  ;;  %v4477_v10 = vld [vmem:[#allocation4 + $0x6c] ss:$16 sps:$4 sm:$0xff]   ;;  %v4480_v34 = vld [vmem:[#allocation4 + $0x60] ss:$16 sps:$4 sm:$0xff]  }
 0x36f   :  { %v887_v52 = vpack.c.bf16 %v4388_v1, %v4388_v1 }
 0x371   :  { %925 = vmatmul.mubr.bf16.vlgmr.msra.gmra.mrb[28].mxu0 %v887_v52  ;;  %966 = vmatmul.mubr.bf16.vlgmr.msra.gmra.mrb[28].mxu1 %v887_v52  ;;  %v4483_v52 = vld [vmem:[#allocation4 + $0x68] ss:$16 sps:$4 sm:$0xff]  }
 0x372   :  { %1009 = vmatpush1.bf16.msra.mxu0 %v4031_v18  ;;  %1050 = vmatpush1.bf16.msra.mxu1 %v4036_v20  ;;  %v4424_v18 = vld [vmem:[#allocation4 + $0x4] ss:$16 sps:$4 sm:$0xff]  }
 0x373   :  { %1010 = vmatprep.subr.bf16.mxu0 %v4034_v19  ;;  %1051 = vmatprep.subr.bf16.mxu1 %v4040_v21  ;;  %v4427_v19 = vld [vmem:[#allocation4 + $0xc] ss:$16 sps:$4 sm:$0xff]  }
 0x374   :  { %1040 = vmatprep.mubr.bf16.mxu0 %v5311_v16  ;;  %1081 = vmatprep.mubr.bf16.mxu1 %v5311_v16 }
 0x376   :  { %1011 = vmatpush1.bf16.msra.mxu0 %v4043_v22  ;;  %1052 = vmatpush1.bf16.msra.mxu1 %v4051_v24  ;;  %v5313_v22 = vld [vmem:[#allocation15_spill] sm:$0xff]  ;;  %v5314_v24 = vld [vmem:[#allocation18_spill] sm:$0xff] }
 0x377   :  { %1012 = vmatprep.subr.bf16.mxu0 %v4048_v23  ;;  %1053 = vmatprep.subr.bf16.mxu1 %v4058_v26 }
 0x37a   :  { %1013 = vmatpush1.bf16.msra.mxu0 %v4061_v27  ;;  %1054 = vmatpush1.bf16.msra.mxu1 %v4067_v29  ;;  %v5315_v29 = vld [vmem:[#allocation16_spill] sm:$0xff] }
 0x37b   :  { %1014 = vmatprep.subr.bf16.mxu0 %v4064_v28  ;;  %1055 = vmatprep.subr.bf16.mxu1 %v4071_v30 }
 0x37e   :  { %1015 = vmatpush1.bf16.msra.mxu0 %v4074_v31  ;;  %1056 = vmatpush1.bf16.msra.mxu1 %v4082_v33  ;;  %v5316_v31 = vld [vmem:[#allocation19_spill] sm:$0xff] }
 0x37f   :  { %1016 = vmatprep.subr.bf16.mxu0 %v4079_v32  ;;  %1057 = vmatprep.subr.bf16.mxu1 %v4089_v35 }
 0x382   :  { %1017 = vmatpush1.bf16.msra.mxu0 %v4092_v36  ;;  %1058 = vmatpush1.bf16.msra.mxu1 %v4098_v38 }
 0x383   :  { %1018 = vmatprep.subr.bf16.mxu0 %v4095_v37  ;;  %1059 = vmatprep.subr.bf16.mxu1 %v4104_v40 }
 0x386   :  { %1019 = vmatpush1.bf16.msra.mxu0 %v4102_v39  ;;  %1060 = vmatpush1.bf16.msra.mxu1 %v4110_v42 }
 0x387   :  { %1020 = vmatprep.subr.bf16.mxu0 %v4106_v41  ;;  %1061 = vmatprep.subr.bf16.mxu1 %v4117_v44 }
 0x38a   :  { %1021 = vmatpush1.bf16.msra.mxu0 %v4121_v45  ;;  %1062 = vmatpush1.bf16.msra.mxu1 %v4127_v47 }
 0x38b   :  { %1022 = vmatprep.subr.bf16.mxu0 %v4124_v46  ;;  %1063 = vmatprep.subr.bf16.mxu1 %v4130_v48 }
 0x38e   :  { %1023 = vmatpush1.bf16.msra.mxu0 %v4133_v49  ;;  %1064 = vmatpush1.bf16.msra.mxu1 %v4139_v50 }
 0x38f   :  { %1124 = vmatprep.subr.bf16.mxu0 %v4424_v18  ;;  %1165 = vmatprep.subr.bf16.mxu1 %v4427_v19 }
 0x444   :  { %v926_v20 = vpop.f32.mrb[28].mxu0  ;;  %v967_v21 = vpop.f32.mrb[28].mxu1 }
 0x445   :  { %v974_v23 = vadd.f32 %v926_v20, %v5313_v22  ;;  %v976_v26 = vadd.f32 %v967_v21, %v5314_v24  ;;  %v928_v27 = vpop.f32.mrb[29].mxu0  ;;  %v969_v28 = vpop.f32.mrb[29].mxu1  ;;  %v4486_v20 = vld [vmem:[#allocation4 + $0x84] ss:$16 sps:$4 sm:$0xff]   ;;  %v4489_v21 = vld [vmem:[#allocation4 + $0x8c] ss:$16 sps:$4 sm:$0xff]  }
 0x446   :  { %v975_v30 = vadd.f32 %v928_v27, %v5315_v29  ;;  %v977_v32 = vadd.f32 %v969_v28, %v5316_v31  ;;  %v930_v33 = vpop.f32.mrb[30].mxu0  ;;  %v971_v35 = vpop.f32.mrb[30].mxu1  ;;  %v4492_v22 = vld [vmem:[#allocation4 + $0x80] ss:$16 sps:$4 sm:$0xff]   ;;  %v4498_v24 = vld [vmem:[#allocation4 + $0xa4] ss:$16 sps:$4 sm:$0xff]  }
 0x447   :  { %v3178_v36 = vmul.f32 -1.442695, %v974_v23  ;;  %v931_v37 = vpop.f32.mrb[31].mxu0  ;;  %v972_v38 = vpop.f32.mrb[31].mxu1  ;;  %v3180_v41 = vmul.f32 -1.442695, %v976_v26 }
 0x448   :  { %v3179_v39 = vmul.f32 -1.442695, %v975_v30  ;;  %v4495_v23 = vld [vmem:[#allocation4 + $0x88] ss:$16 sps:$4 sm:$0xff]   ;;  %v4502_v26 = vld [vmem:[#allocation4 + $0xa0] ss:$16 sps:$4 sm:$0xff]  }
 0x449   :  { %3534 = vpow2.f32 %v3178_v36  ;;  %v4506_v27 = vld [vmem:[#allocation4 + $0xc4] ss:$16 sps:$4 sm:$0xff]   ;;  %v5317_v28 = vld [vmem:[#allocation20_spill] sm:$0xff] }
 0x44a   :  { %3536 = vpow2.f32 %v3179_v39  ;;  %v5318_v29 = vld [vmem:[#allocation23_spill] sm:$0xff]  ;;  %v5319_v31 = vld [vmem:[#allocation21_spill] sm:$0xff] }
 0x44b   :  { %3538 = vtanh.f32 %v977_v32  ;;  %v5320_v32 = vld [vmem:[#allocation25_spill] sm:$0xff] }
 0x44c   :  { %3540 = vpow2.f32 %v3180_v41 }
 0x453   :  { %v3535_v51 = vpop.eup %3534 }
 0x454   :  { %v987_v56 = vadd.f32 1.0, %v3535_v51  ;;  %v3537_v57 = vpop.eup %3536 }
 0x455   :  { %v988_v58 = vadd.f32 1.0, %v3537_v57  ;;  %v3539_v59 = vpop.eup %3538 }
 0x456   :  { %3542 = vrcp.f32 %v987_v56  ;;  %v3541_v60 = vpop.eup %3540 }
 0x457   :  { %3544 = vrcp.f32 %v988_v58  ;;  %v989_v2 = vadd.f32 1.0, %v3541_v60 }
 0x459   :  { %3546 = vrcp.f32 %v989_v2 }
 0x460   :  { %v3543_v62 = vpop.eup %3542 }
 0x461   :  { %v998_v54 = vmul.f32 %v3543_v62, %v3539_v59  ;;  %v3545_v63 = vpop.eup %3544 }
 0x462   :  { %v997_v8 = vmul.f32 %v3545_v63, %v4385_v4  ;;  %v4474_v4 = vld [vmem:[#allocation4 + $0x64] ss:$16 sps:$4 sm:$0xff]  }
 0x463   :  { %v3547_v0 = vpop.eup %3546 }
 0x464   :  { %v4435_v12 = vadd.f32 %v998_v54, %v997_v8 }
 0x466   :  { %3548 = vtanh.f32 %v4435_v12 }
 0x470   :  { %v3549_v13 = vpop.eup %3548 }
 0x471   :  { %v4438_v17 = vmul.f32 %v3549_v13, %v3547_v0 }
 0x473   :  { %v1003_v7 = vpack.c.bf16 %v4438_v17, %v4438_v17 }
 0x475   :  { %1041 = vmatmul.mubr.bf16.vlgmr.msra.gmra.mrb[32].mxu0 %v1003_v7  ;;  %1082 = vmatmul.mubr.bf16.vlgmr.msra.gmra.mrb[32].mxu1 %v1003_v7 }
 0x476   :  { %1125 = vmatpush1.bf16.msra.mxu0 %v4442_v5  ;;  %1166 = vmatpush1.bf16.msra.mxu1 %v4445_v11 }
 0x477   :  { %1126 = vmatprep.subr.bf16.mxu0 %v4448_v43  ;;  %1167 = vmatprep.subr.bf16.mxu1 %v4451_v14 }
 0x478   :  { %1156 = vmatprep.mubr.bf16.mxu0 %v5311_v16  ;;  %1197 = vmatprep.mubr.bf16.mxu1 %v5311_v16 }
 0x47a   :  { %1127 = vmatpush1.bf16.msra.mxu0 %v4456_v3  ;;  %1168 = vmatpush1.bf16.msra.mxu1 %v4459_v9 }
 0x47b   :  { %1128 = vmatprep.subr.bf16.mxu0 %v4462_v15  ;;  %1169 = vmatprep.subr.bf16.mxu1 %v4465_v61 }
 0x47e   :  { %1129 = vmatpush1.bf16.msra.mxu0 %v4468_v53  ;;  %1170 = vmatpush1.bf16.msra.mxu1 %v4471_v25 }
 0x47f   :  { %1130 = vmatprep.subr.bf16.mxu0 %v4474_v4  ;;  %1171 = vmatprep.subr.bf16.mxu1 %v4477_v10 }
 0x482   :  { %1131 = vmatpush1.bf16.msra.mxu0 %v4480_v34  ;;  %1172 = vmatpush1.bf16.msra.mxu1 %v4483_v52 }
 0x483   :  { %1132 = vmatprep.subr.bf16.mxu0 %v4486_v20  ;;  %1173 = vmatprep.subr.bf16.mxu1 %v4489_v21 }
 0x486   :  { %1133 = vmatpush1.bf16.msra.mxu0 %v4492_v22  ;;  %1174 = vmatpush1.bf16.msra.mxu1 %v4495_v23 }
 0x487   :  { %1134 = vmatprep.subr.bf16.mxu0 %v4498_v24  ;;  %1175 = vmatprep.subr.bf16.mxu1 %v4104_v40 }
 0x48a   :  { %1135 = vmatpush1.bf16.msra.mxu0 %v4502_v26  ;;  %1176 = vmatpush1.bf16.msra.mxu1 %v4110_v42 }
 0x48b   :  { %1136 = vmatprep.subr.bf16.mxu0 %v4506_v27  ;;  %1177 = vmatprep.subr.bf16.mxu1 %v4117_v44 }
 0x48e   :  { %1137 = vmatpush1.bf16.msra.mxu0 %v4121_v45  ;;  %1178 = vmatpush1.bf16.msra.mxu1 %v4127_v47 }
 0x48f   :  { %1138 = vmatprep.subr.bf16.mxu0 %v4124_v46  ;;  %1179 = vmatprep.subr.bf16.mxu1 %v4130_v48 }
 0x492   :  { %1139 = vmatpush1.bf16.msra.mxu0 %v4133_v49  ;;  %1180 = vmatpush1.bf16.msra.mxu1 %v4139_v50 }
 0x493   :  { %1240 = vmatprep.subr.bf16.mxu0 %v4424_v18  ;;  %1281 = vmatprep.subr.bf16.mxu1 %v4427_v19 }
 0x548   :  { %v1042_v40 = vpop.f32.mrb[32].mxu0  ;;  %v1083_v42 = vpop.f32.mrb[32].mxu1 }
 0x549   :  { %v1090_v44 = vadd.f32 %v1042_v40, %v5317_v28  ;;  %v1092_v45 = vadd.f32 %v1083_v42, %v5318_v29  ;;  %v1044_v30 = vpop.f32.mrb[33].mxu0  ;;  %v1085_v47 = vpop.f32.mrb[33].mxu1  ;;  %v4555_v40 = vld [vmem:[#allocation4 + $0xa8] ss:$16 sps:$4 sm:$0xff]   ;;  %v4559_v42 = vld [vmem:[#allocation4 + $0xcc] ss:$16 sps:$4 sm:$0xff]  }
 0x54a   :  { %v1091_v46 = vadd.f32 %v1044_v30, %v5319_v31  ;;  %v1093_v48 = vadd.f32 %v1085_v47, %v5320_v32  ;;  %v1046_v33 = vpop.f32.mrb[34].mxu0  ;;  %v1087_v49 = vpop.f32.mrb[34].mxu1  ;;  %v4562_v28 = vld [vmem:[#allocation4 + $0xc0] ss:$16 sps:$4 sm:$0xff]   ;;  %v4568_v29 = vld [vmem:[#allocation4 + $0xe4] ss:$16 sps:$4 sm:$0xff]  }
 0x54b   :  { %v3181_v35 = vmul.f32 -1.442695, %v1090_v44  ;;  %v1047_v50 = vpop.f32.mrb[35].mxu0  ;;  %v1088_v36 = vpop.f32.mrb[35].mxu1  ;;  %v3183_v38 = vmul.f32 -1.442695, %v1092_v45 }
 0x54c   :  { %v3182_v37 = vmul.f32 -1.442695, %v1091_v46  ;;  %v4565_v44 = vld [vmem:[#allocation4 + $0xc8] ss:$16 sps:$4 sm:$0xff]   ;;  %v4571_v45 = vld [vmem:[#allocation4 + $0xec] ss:$16 sps:$4 sm:$0xff]  }
 0x54d   :  { %3550 = vpow2.f32 %v3181_v35  ;;  %v4574_v30 = vld [vmem:[#allocation4 + $0xe0] ss:$16 sps:$4 sm:$0xff]   ;;  %v4577_v47 = vld [vmem:[#allocation4 + $0xe8] ss:$16 sps:$4 sm:$0xff]  }
 0x54e   :  { %3552 = vpow2.f32 %v3182_v37  ;;  %v5321_v32 = vld [vmem:[#allocation22_spill] sm:$0xff]  ;;  %v5323_v36 = vld [vmem:[#allocation24_spill] sm:$0xff] }
 0x54f   :  { %3554 = vtanh.f32 %v1093_v48  ;;  %v5322_v33 = vld [vmem:[#allocation26_spill] sm:$0xff] }
 0x550   :  { %3556 = vpow2.f32 %v3183_v38  ;;  %v5324_v38 = vld [vmem:[#allocation27_spill] sm:$0xff] }
 0x557   :  { %v3551_v39 = vpop.eup %3550 }
 0x558   :  { %v1103_v41 = vadd.f32 1.0, %v3551_v39  ;;  %v3553_v51 = vpop.eup %3552 }
 0x559   :  { %v1104_v56 = vadd.f32 1.0, %v3553_v51  ;;  %v3555_v57 = vpop.eup %3554 }
 0x55a   :  { %3558 = vrcp.f32 %v1103_v41  ;;  %v3557_v58 = vpop.eup %3556 }
 0x55b   :  { %3560 = vrcp.f32 %v1104_v56  ;;  %v1105_v54 = vadd.f32 1.0, %v3557_v58 }
 0x55d   :  { %3562 = vrcp.f32 %v1105_v54 }
 0x564   :  { %v3559_v59 = vpop.eup %3558 }
 0x565   :  { %v1114_v60 = vmul.f32 %v3559_v59, %v3555_v57  ;;  %v3561_v62 = vpop.eup %3560 }
 0x566   :  { %v1113_v63 = vmul.f32 %v3561_v62, %v4435_v12  ;;  %v4551_v12 = vld [vmem:[#allocation4 + $0xac] ss:$16 sps:$4 sm:$0xff]  }
 0x567   :  { %v3563_v8 = vpop.eup %3562 }
 0x568   :  { %v4523_v2 = vadd.f32 %v1114_v60, %v1113_v63 }
 0x56a   :  { %3564 = vtanh.f32 %v4523_v2 }
 0x574   :  { %v3565_v0 = vpop.eup %3564 }
 0x575   :  { %v4526_v13 = vmul.f32 %v3565_v0, %v3563_v8 }
 0x577   :  { %v1119_v7 = vpack.c.bf16 %v4526_v13, %v4526_v13 }
 0x579   :  { %1157 = vmatmul.mubr.bf16.vlgmr.msra.gmra.mrb[36].mxu0 %v1119_v7  ;;  %1198 = vmatmul.mubr.bf16.vlgmr.msra.gmra.mrb[36].mxu1 %v1119_v7 }
 0x57a   :  { %1241 = vmatpush1.bf16.msra.mxu0 %v4442_v5  ;;  %1282 = vmatpush1.bf16.msra.mxu1 %v4445_v11 }
 0x57b   :  { %1242 = vmatprep.subr.bf16.mxu0 %v4448_v43  ;;  %1283 = vmatprep.subr.bf16.mxu1 %v4451_v14 }
 0x57c   :  { %1272 = vmatprep.mubr.bf16.mxu0 %v5311_v16  ;;  %1313 = vmatprep.mubr.bf16.mxu1 %v5311_v16 }
 0x57e   :  { %1243 = vmatpush1.bf16.msra.mxu0 %v4456_v3  ;;  %1284 = vmatpush1.bf16.msra.mxu1 %v4459_v9 }
 0x57f   :  { %1244 = vmatprep.subr.bf16.mxu0 %v4462_v15  ;;  %1285 = vmatprep.subr.bf16.mxu1 %v4465_v61 }
 0x582   :  { %1245 = vmatpush1.bf16.msra.mxu0 %v4468_v53  ;;  %1286 = vmatpush1.bf16.msra.mxu1 %v4471_v25 }
 0x583   :  { %1246 = vmatprep.subr.bf16.mxu0 %v4474_v4  ;;  %1287 = vmatprep.subr.bf16.mxu1 %v4477_v10 }
 0x586   :  { %1247 = vmatpush1.bf16.msra.mxu0 %v4480_v34  ;;  %1288 = vmatpush1.bf16.msra.mxu1 %v4483_v52 }
 0x587   :  { %1248 = vmatprep.subr.bf16.mxu0 %v4486_v20  ;;  %1289 = vmatprep.subr.bf16.mxu1 %v4489_v21 }
 0x58a   :  { %1249 = vmatpush1.bf16.msra.mxu0 %v4492_v22  ;;  %1290 = vmatpush1.bf16.msra.mxu1 %v4495_v23 }
 0x58b   :  { %1250 = vmatprep.subr.bf16.mxu0 %v4498_v24  ;;  %1291 = vmatprep.subr.bf16.mxu1 %v4551_v12 }
 0x58e   :  { %1251 = vmatpush1.bf16.msra.mxu0 %v4502_v26  ;;  %1292 = vmatpush1.bf16.msra.mxu1 %v4555_v40 }
 0x58f   :  { %1252 = vmatprep.subr.bf16.mxu0 %v4506_v27  ;;  %1293 = vmatprep.subr.bf16.mxu1 %v4559_v42 }
 0x592   :  { %1253 = vmatpush1.bf16.msra.mxu0 %v4562_v28  ;;  %1294 = vmatpush1.bf16.msra.mxu1 %v4565_v44 }
 0x593   :  { %1254 = vmatprep.subr.bf16.mxu0 %v4568_v29  ;;  %1295 = vmatprep.subr.bf16.mxu1 %v4571_v45 }
 0x596   :  { %1255 = vmatpush1.bf16.msra.mxu0 %v4574_v30  ;;  %1296 = vmatpush1.bf16.msra.mxu1 %v4577_v47 }
 0x597   :  { %1356 = vmatprep.subr.bf16.mxu0 %v4424_v18  ;;  %1397 = vmatprep.subr.bf16.mxu1 %v4427_v19 }
 0x64c   :  { %v1158_v31 = vpop.f32.mrb[36].mxu0  ;;  %v1199_v46 = vpop.f32.mrb[36].mxu1 }
 0x64d   :  { %v1206_v48 = vadd.f32 %v1158_v31, %v5321_v32  ;;  %v1208_v49 = vadd.f32 %v1199_v46, %v5322_v33  ;;  %v1160_v35 = vpop.f32.mrb[37].mxu0  ;;  %v1201_v50 = vpop.f32.mrb[37].mxu1 }
 0x64e   :  { %v1207_v37 = vadd.f32 %v1160_v35, %v5323_v36  ;;  %v1209_v39 = vadd.f32 %v1201_v50, %v5324_v38  ;;  %v1162_v41 = vpop.f32.mrb[38].mxu0  ;;  %v1203_v51 = vpop.f32.mrb[38].mxu1 }
 0x64f   :  { %v3184_v56 = vmul.f32 -1.442695, %v1206_v48  ;;  %v1163_v57 = vpop.f32.mrb[39].mxu0  ;;  %v1204_v58 = vpop.f32.mrb[39].mxu1  ;;  %v3186_v19 = vmul.f32 -1.442695, %v1208_v49 }
 0x650   :  { %v3185_v18 = vmul.f32 -1.442695, %v1207_v37  ;;  %v3382_v51 = vld [vmem:[#allocation7] ss:$16 sps:$4 sm:$0xff]   ;;  %v3390_v58 = vld [vmem:[#allocation7 + $0x24] ss:$16 sps:$4 sm:$0xff]  }
 0x651   :  { %3566 = vpow2.f32 %v3184_v56  ;;  %v3385_v56 = vld [vmem:[#allocation7 + $0x8] ss:$16 sps:$4 sm:$0xff]  }
 0x652   :  { %3568 = vpow2.f32 %v3185_v18  ;;  %v3393_v18 = vld [vmem:[#allocation7 + $0x2c] ss:$16 sps:$4 sm:$0xff]  }
 0x653   :  { %3570 = vtanh.f32 %v1209_v39 }
 0x654   :  { %3572 = vpow2.f32 %v3186_v19  ;;  %v3388_v19 = vld [vmem:[#allocation7 + $0x20] ss:$16 sps:$4 sm:$0xff]  }
 0x65b   :  { %v3567_v59 = vpop.eup %3566 }
 0x65c   :  { %v1219_v60 = vadd.f32 1.0, %v3567_v59  ;;  %v3569_v62 = vpop.eup %3568  ;;  %v3391_v59 = vld [vmem:[#allocation7 + $0x28] ss:$16 sps:$4 sm:$0xff]  }
 0x65d   :  { %v1220_v54 = vadd.f32 1.0, %v3569_v62  ;;  %v3571_v63 = vpop.eup %3570  ;;  %v3399_v62 = vld [vmem:[#allocation7 + $0x4c] ss:$16 sps:$4 sm:$0xff]  }
 0x65e   :  { %3574 = vrcp.f32 %v1219_v60  ;;  %v3573_v8 = vpop.eup %3572  ;;  %v3396_v60 = vld [vmem:[#allocation7 + $0x44] ss:$16 sps:$4 sm:$0xff]  }
 0x65f   :  { %3576 = vrcp.f32 %v1220_v54  ;;  %v1221_v46 = vadd.f32 1.0, %v3573_v8  ;;  %v3394_v54 = vld [vmem:[#allocation7 + $0x40] ss:$16 sps:$4 sm:$0xff]   ;;  %v3402_v8 = vld [vmem:[#allocation7 + $0x64] ss:$16 sps:$4 sm:$0xff]  }
 0x661   :  { %3578 = vrcp.f32 %v1221_v46  ;;  %v3408_v46 = vld [vmem:[#allocation7 + $0x84] ss:$16 sps:$4 sm:$0xff]  }
 0x668   :  { %v3575_v0 = vpop.eup %3574 }
 0x669   :  { %v1230_v7 = vmul.f32 %v3575_v0, %v3571_v63  ;;  %v3577_v31 = vpop.eup %3576  ;;  %v3397_v63 = vld [vmem:[#allocation7 + $0x48] ss:$16 sps:$4 sm:$0xff]   ;;  %v3405_v0 = vld [vmem:[#allocation7 + $0x6c] ss:$16 sps:$4 sm:$0xff]  }
 0x66a   :  { %v1229_v32 = vmul.f32 %v3577_v31, %v4523_v2  ;;  %v3403_v31 = vld [vmem:[#allocation7 + $0x68] ss:$16 sps:$4 sm:$0xff]  }
 0x66b   :  { %v3579_v33 = vpop.eup %3578 }
 0x66c   :  { %v4587_v48 = vadd.f32 %v1230_v7, %v1229_v32  ;;  %v3400_v7 = vld [vmem:[#allocation7 + $0x60] ss:$16 sps:$4 sm:$0xff]   ;;  %v3411_v32 = vld [vmem:[#allocation7 + $0x8c] ss:$16 sps:$4 sm:$0xff]  }
 0x66e   :  { %3580 = vtanh.f32 %v4587_v48 }
 0x678   :  { %v3581_v49 = vpop.eup %3580 }
 0x679   :  { %v4590_v35 = vmul.f32 %v3581_v49, %v3579_v33  ;;  %v3409_v33 = vld [vmem:[#allocation7 + $0x88] ss:$16 sps:$4 sm:$0xff]   ;;  %v3414_v49 = vld [vmem:[#allocation7 + $0xa4] ss:$16 sps:$4 sm:$0xff]  }
 0x67b   :  { %v1235_v50 = vpack.c.bf16 %v4590_v35, %v4590_v35 }
 0x67d   :  { %1273 = vmatmul.mubr.bf16.vlgmr.msra.gmra.mrb[40].mxu0 %v1235_v50  ;;  %1314 = vmatmul.mubr.bf16.vlgmr.msra.gmra.mrb[40].mxu1 %v1235_v50  ;;  %v3417_v50 = vld [vmem:[#allocation7 + $0xac] ss:$16 sps:$4 sm:$0xff]  }
 0x67e   :  { %1357 = vmatpush1.bf16.msra.mxu0 %v4442_v5  ;;  %1398 = vmatpush1.bf16.msra.mxu1 %v4445_v11  ;;  %v3384_v5 = vld [vmem:[#allocation7 + $0x4] ss:$16 sps:$4 sm:$0xff]   ;;  %v3387_v11 = vld [vmem:[#allocation7 + $0xc] ss:$16 sps:$4 sm:$0xff]  }
 0x67f   :  { %1358 = vmatprep.subr.bf16.mxu0 %v4448_v43  ;;  %1399 = vmatprep.subr.bf16.mxu1 %v4451_v14 }
 0x680   :  { %1388 = vmatprep.mubr.bf16.mxu0 %v5311_v16  ;;  %1429 = vmatprep.mubr.bf16.mxu1 %v5311_v16 }
 0x682   :  { %1359 = vmatpush1.bf16.msra.mxu0 %v4456_v3  ;;  %1400 = vmatpush1.bf16.msra.mxu1 %v4459_v9  ;;  %v5325_v3 = vld [vmem:[#allocation28_spill] sm:$0xff] }
 0x683   :  { %1360 = vmatprep.subr.bf16.mxu0 %v4462_v15  ;;  %1401 = vmatprep.subr.bf16.mxu1 %v4465_v61  ;;  %v5326_v15 = vld [vmem:[#allocation31_spill] sm:$0xff] }
 0x686   :  { %1361 = vmatpush1.bf16.msra.mxu0 %v4468_v53  ;;  %1402 = vmatpush1.bf16.msra.mxu1 %v4471_v25 }
 0x687   :  { %1362 = vmatprep.subr.bf16.mxu0 %v4474_v4  ;;  %1403 = vmatprep.subr.bf16.mxu1 %v4477_v10  ;;  %v5327_v4 = vld [vmem:[#allocation29_spill] sm:$0xff] }
 0x68a   :  { %1363 = vmatpush1.bf16.msra.mxu0 %v4480_v34  ;;  %1404 = vmatpush1.bf16.msra.mxu1 %v4483_v52  ;;  %v5328_v34 = vld [vmem:[#allocation33_spill] sm:$0xff] }
 0x68b   :  { %1364 = vmatprep.subr.bf16.mxu0 %v4486_v20  ;;  %1405 = vmatprep.subr.bf16.mxu1 %v4489_v21 }
 0x68e   :  { %1365 = vmatpush1.bf16.msra.mxu0 %v4492_v22  ;;  %1406 = vmatpush1.bf16.msra.mxu1 %v4495_v23 }
 0x68f   :  { %1366 = vmatprep.subr.bf16.mxu0 %v4498_v24  ;;  %1407 = vmatprep.subr.bf16.mxu1 %v4551_v12 }
 0x692   :  { %1367 = vmatpush1.bf16.msra.mxu0 %v4502_v26  ;;  %1408 = vmatpush1.bf16.msra.mxu1 %v4555_v40 }
 0x693   :  { %1368 = vmatprep.subr.bf16.mxu0 %v4506_v27  ;;  %1409 = vmatprep.subr.bf16.mxu1 %v4559_v42 }
 0x696   :  { %1369 = vmatpush1.bf16.msra.mxu0 %v4562_v28  ;;  %1410 = vmatpush1.bf16.msra.mxu1 %v4565_v44 }
 0x697   :  { %1370 = vmatprep.subr.bf16.mxu0 %v4568_v29  ;;  %1411 = vmatprep.subr.bf16.mxu1 %v4571_v45 }
 0x69a   :  { %1371 = vmatpush1.bf16.msra.mxu0 %v4574_v30  ;;  %1412 = vmatpush1.bf16.msra.mxu1 %v4577_v47 }
 0x69b   :  { %1693 = vmatprep.subr.bf16.mxu0 %v3384_v5  ;;  %1766 = vmatprep.subr.bf16.mxu1 %v3387_v11  ;;  %v3412_v5 = vld [vmem:[#allocation7 + $0xa0] ss:$16 sps:$4 sm:$0xff]   ;;  %v3415_v11 = vld [vmem:[#allocation7 + $0xa8] ss:$16 sps:$4 sm:$0xff]  }
 0x750   :  { %v1274_v43 = vpop.f32.mrb[40].mxu0  ;;  %v1315_v14 = vpop.f32.mrb[40].mxu1 }
 0x751   :  { %v1322_v9 = vadd.f32 %v1274_v43, %v5325_v3  ;;  %v1324_v61 = vadd.f32 %v1315_v14, %v5326_v15  ;;  %v1276_v53 = vpop.f32.mrb[41].mxu0  ;;  %v1317_v25 = vpop.f32.mrb[41].mxu1  ;;  %v3420_v43 = vld [vmem:[#allocation7 + $0xc4] ss:$16 sps:$4 sm:$0xff]   ;;  %v3423_v14 = vld [vmem:[#allocation7 + $0xcc] ss:$16 sps:$4 sm:$0xff]  }
 0x752   :  { %v1323_v10 = vadd.f32 %v1276_v53, %v5327_v4  ;;  %v1325_v52 = vadd.f32 %v1317_v25, %v5328_v34  ;;  %v1278_v20 = vpop.f32.mrb[42].mxu0  ;;  %v1319_v21 = vpop.f32.mrb[42].mxu1  ;;  %v3418_v3 = vld [vmem:[#allocation7 + $0xc0] ss:$16 sps:$4 sm:$0xff]   ;;  %v3426_v15 = vld [vmem:[#allocation7 + $0xe4] ss:$16 sps:$4 sm:$0xff]   ;;  %v1475_v4 = vpack.c.bf16 %v4342_v55, %v4296_v6  ;;  %v1477_v34 = vpack.c.bf16 %v4590_v35, %v4526_v13 }
 0x753   :  { %v3187_v22 = vmul.f32 -1.442695, %v1322_v9  ;;  %v1279_v23 = vpop.f32.mrb[43].mxu0  ;;  %v1320_v24 = vpop.f32.mrb[43].mxu1  ;;  %v3189_v27 = vmul.f32 -1.442695, %v1324_v61 }
 0x754   :  { %v3188_v26 = vmul.f32 -1.442695, %v1323_v10  ;;  %v3421_v9 = vld [vmem:[#allocation7 + $0xc8] ss:$16 sps:$4 sm:$0xff]   ;;  %v3429_v61 = vld [vmem:[#allocation7 + $0xec] ss:$16 sps:$4 sm:$0xff]   ;;  %v1476_v10 = vpack.c.bf16 %v4438_v17, %v4388_v1 }
 0x755   :  { %3582 = vpow2.f32 %v3187_v22  ;;  %v3424_v53 = vld [vmem:[#allocation7 + $0xe0] ss:$16 sps:$4 sm:$0xff]   ;;  %v3427_v25 = vld [vmem:[#allocation7 + $0xe8] ss:$16 sps:$4 sm:$0xff]   ;;  %v4652_v6 = vld [vmem:[#allocation9 + $0x4] ss:$16 sps:$4 sm:$0xff]  }
 0x756   :  { %3584 = vpow2.f32 %v3188_v26  ;;  %v4654_v55 = vld [vmem:[#allocation9 + $0xc] ss:$16 sps:$4 sm:$0xff]   ;;  %v4656_v1 = vld [vmem:[#allocation9] ss:$16 sps:$4 sm:$0xff]   ;;  %v4658_v17 = vld [vmem:[#allocation9 + $0x8] ss:$16 sps:$4 sm:$0xff]  }
 0x757   :  { %3586 = vtanh.f32 %v1325_v52  ;;  %v4664_v13 = vld [vmem:[#allocation9 + $0x24] ss:$16 sps:$4 sm:$0xff]   ;;  %v4666_v35 = vld [vmem:[#allocation9 + $0x2c] ss:$16 sps:$4 sm:$0xff]   ;;  %v4668_v52 = vld [vmem:[#allocation9 + $0x20] ss:$16 sps:$4 sm:$0xff]  }
 0x758   :  { %3588 = vpow2.f32 %v3189_v27  ;;  %v4670_v20 = vld [vmem:[#allocation9 + $0x28] ss:$16 sps:$4 sm:$0xff]   ;;  %v4676_v21 = vld [vmem:[#allocation9 + $0x44] ss:$16 sps:$4 sm:$0xff]   ;;  %v4678_v22 = vld [vmem:[#allocation9 + $0x4c] ss:$16 sps:$4 sm:$0xff]  }
 0x759   :  { %v4680_v23 = vld [vmem:[#allocation9 + $0x40] ss:$16 sps:$4 sm:$0xff]   ;;  %v4682_v24 = vld [vmem:[#allocation9 + $0x48] ss:$16 sps:$4 sm:$0xff]   ;;  %v4688_v26 = vld [vmem:[#allocation9 + $0x64] ss:$16 sps:$4 sm:$0xff]  }
 0x75a   :  { %v4690_v27 = vld [vmem:[#allocation9 + $0x6c] ss:$16 sps:$4 sm:$0xff]  }
 0x75f   :  { %v3583_v2 = vpop.eup %3582 }
 0x760   :  { %v1335_v12 = vadd.f32 1.0, %v3583_v2  ;;  %v3585_v40 = vpop.eup %3584  ;;  %v4692_v2 = vld [vmem:[#allocation9 + $0x60] ss:$16 sps:$4 sm:$0xff]  }
 0x761   :  { %v1336_v42 = vadd.f32 1.0, %v3585_v40  ;;  %v3587_v28 = vpop.eup %3586  ;;  %v4700_v40 = vld [vmem:[#allocation9 + $0x84] ss:$16 sps:$4 sm:$0xff]  }
 0x762   :  { %3590 = vrcp.f32 %v1335_v12  ;;  %v3589_v44 = vpop.eup %3588  ;;  %v4694_v12 = vld [vmem:[#allocation9 + $0x68] ss:$16 sps:$4 sm:$0xff]  }
 0x763   :  { %3592 = vrcp.f32 %v1336_v42  ;;  %v1337_v47 = vadd.f32 1.0, %v3589_v44  ;;  %v4702_v42 = vld [vmem:[#allocation9 + $0x8c] ss:$16 sps:$4 sm:$0xff]   ;;  %v4706_v44 = vld [vmem:[#allocation9 + $0x88] ss:$16 sps:$4 sm:$0xff]  }
 0x765   :  { %3594 = vrcp.f32 %v1337_v47  ;;  %v4718_v47 = vld [vmem:[#allocation9 + $0xa8] ss:$16 sps:$4 sm:$0xff]  }
 0x76c   :  { %v3591_v29 = vpop.eup %3590 }
 0x76d   :  { %v1346_v45 = vmul.f32 %v3591_v29, %v3587_v28  ;;  %v3593_v30 = vpop.eup %3592  ;;  %v4704_v28 = vld [vmem:[#allocation9 + $0x80] ss:$16 sps:$4 sm:$0xff]   ;;  %v4712_v29 = vld [vmem:[#allocation9 + $0xa4] ss:$16 sps:$4 sm:$0xff]  }
 0x76e   :  { %v1345_v36 = vmul.f32 %v3593_v30, %v4587_v48  ;;  %v3406_v48 = vld [vmem:[#allocation7 + $0x80] ss:$16 sps:$4 sm:$0xff]  }
 0x76f   :  { %v3595_v38 = vpop.eup %3594  ;;  %v4716_v30 = vld [vmem:[#allocation9 + $0xa0] ss:$16 sps:$4 sm:$0xff]  }
 0x770   :  { %v4631_v37 = vadd.f32 %v1346_v45, %v1345_v36  ;;  %v4714_v45 = vld [vmem:[#allocation9 + $0xac] ss:$16 sps:$4 sm:$0xff]   ;;  %v4724_v36 = vld [vmem:[#allocation9 + $0xc4] ss:$16 sps:$4 sm:$0xff]  }
 0x772   :  { %3596 = vtanh.f32 %v4631_v37 }
 0x77c   :  { %v3597_v39 = vpop.eup %3596 }
 0x77d   :  { %v4634_v41 = vmul.f32 %v3597_v39, %v3595_v38  ;;  %v4726_v38 = vld [vmem:[#allocation9 + $0xcc] ss:$16 sps:$4 sm:$0xff]   ;;  %v4728_v39 = vld [vmem:[#allocation9 + $0xc0] ss:$16 sps:$4 sm:$0xff]  }
 0x77f   :  { %v1351_v57 = vpack.c.bf16 %v4634_v41, %v4634_v41 }
 0x781   :  { %1389 = vmatmul.mubr.bf16.vlgmr.msra.gmra.mrb[44].mxu0 %v1351_v57  ;;  %1430 = vmatmul.mubr.bf16.vlgmr.msra.gmra.mrb[44].mxu1 %v1351_v57  ;;  %v4738_v57 = vld [vmem:[#allocation9 + $0xec] ss:$16 sps:$4 sm:$0xff]  }
 0x782   :  { %1694 = vmatpush1.bf16.msra.mxu0 %v3382_v51  ;;  %1767 = vmatpush1.bf16.msra.mxu1 %v3385_v56  ;;  %v4730_v51 = vld [vmem:[#allocation9 + $0xc8] ss:$16 sps:$4 sm:$0xff]   ;;  %v4736_v56 = vld [vmem:[#allocation9 + $0xe4] ss:$16 sps:$4 sm:$0xff]  }
 0x783   :  { %1695 = vmatprep.subr.bf16.mxu0 %v3390_v58  ;;  %1768 = vmatprep.subr.bf16.mxu1 %v3393_v18  ;;  %v4740_v58 = vld [vmem:[#allocation9 + $0xe0] ss:$16 sps:$4 sm:$0xff]   ;;  %v4742_v18 = vld [vmem:[#allocation9 + $0xe8] ss:$16 sps:$4 sm:$0xff]  }
 0x784   :  { %1725 = vmatprep.mubr.bf16.mxu0 %v5311_v16  ;;  %1798 = vmatprep.mubr.bf16.mxu1 %v5311_v16 }
 0x786   :  { %1696 = vmatpush1.bf16.msra.mxu0 %v3388_v19  ;;  %1769 = vmatpush1.bf16.msra.mxu1 %v3391_v59 }
 0x787   :  { %1697 = vmatprep.subr.bf16.mxu0 %v3396_v60  ;;  %1770 = vmatprep.subr.bf16.mxu1 %v3399_v62  ;;  %v5329_v60 = vld [vmem:[#allocation30_spill] sm:$0xff] }
 0x78a   :  { %1698 = vmatpush1.bf16.msra.mxu0 %v3394_v54  ;;  %1771 = vmatpush1.bf16.msra.mxu1 %v3397_v63  ;;  %v5330_v54 = vld [vmem:[#allocation34_spill] sm:$0xff] }
 0x78b   :  { %1699 = vmatprep.subr.bf16.mxu0 %v3402_v8  ;;  %1772 = vmatprep.subr.bf16.mxu1 %v3405_v0 }
 0x78e   :  { %1700 = vmatpush1.bf16.msra.mxu0 %v3400_v7  ;;  %1773 = vmatpush1.bf16.msra.mxu1 %v3403_v31  ;;  %v5331_v7 = vld [vmem:[#allocation32_spill] sm:$0xff] }
 0x78f   :  { %1701 = vmatprep.subr.bf16.mxu0 %v3408_v46  ;;  %1774 = vmatprep.subr.bf16.mxu1 %v3411_v32  ;;  %v5332_v46 = vld [vmem:[#allocation35_spill] sm:$0xff] }
 0x792   :  { %1702 = vmatpush1.bf16.msra.mxu0 %v3406_v48  ;;  %1775 = vmatpush1.bf16.msra.mxu1 %v3409_v33 }
 0x793   :  { %1703 = vmatprep.subr.bf16.mxu0 %v3414_v49  ;;  %1776 = vmatprep.subr.bf16.mxu1 %v3417_v50 }
 0x796   :  { %1704 = vmatpush1.bf16.msra.mxu0 %v3412_v5  ;;  %1777 = vmatpush1.bf16.msra.mxu1 %v3415_v11 }
 0x797   :  { %1705 = vmatprep.subr.bf16.mxu0 %v3420_v43  ;;  %1778 = vmatprep.subr.bf16.mxu1 %v3423_v14 }
 0x79a   :  { %1706 = vmatpush1.bf16.msra.mxu0 %v3418_v3  ;;  %1779 = vmatpush1.bf16.msra.mxu1 %v3421_v9 }
 0x79b   :  { %1707 = vmatprep.subr.bf16.mxu0 %v3426_v15  ;;  %1780 = vmatprep.subr.bf16.mxu1 %v3429_v61 }
 0x79e   :  { %1708 = vmatpush1.bf16.msra.mxu0 %v3424_v53  ;;  %1781 = vmatpush1.bf16.msra.mxu1 %v3427_v25 }
 0x79f   :  { %2067 = vmatprep.subr.bf16.mxu0 %v4652_v6  ;;  %2108 = vmatprep.subr.bf16.mxu1 %v4654_v55 }
 0x7a1   :  { %1726 = vmatmul.mubr.bf16.vlgmr.msra.gmra.mrb[48].mxu0 %v1475_v4  ;;  %1799 = vmatmul.mubr.bf16.vlgmr.msra.gmra.mrb[48].mxu1 %v1475_v4 }
 0x7a2   :  { %1735 = vmatprep.mubr.bf16.mxu0 %v5311_v16  ;;  %1808 = vmatprep.mubr.bf16.mxu1 %v5311_v16 }
 0x7a3   :  { %2068 = vmatpush1.bf16.msra.mxu0 %v4656_v1  ;;  %2109 = vmatpush1.bf16.msra.mxu1 %v4658_v17 }
 0x7a4   :  { %2069 = vmatprep.subr.bf16.mxu0 %v4664_v13  ;;  %2110 = vmatprep.subr.bf16.mxu1 %v4666_v35 }
 0x7a7   :  { %2070 = vmatpush1.bf16.msra.mxu0 %v4668_v52  ;;  %2111 = vmatpush1.bf16.msra.mxu1 %v4670_v20 }
 0x7a8   :  { %2071 = vmatprep.subr.bf16.mxu0 %v4676_v21  ;;  %2112 = vmatprep.subr.bf16.mxu1 %v4678_v22 }
 0x7a9   :  { %1736 = vmatmul.mubr.bf16.gmra.mrb[52].mxu0 %v1476_v10  ;;  %1809 = vmatmul.mubr.bf16.gmra.mrb[52].mxu1 %v1476_v10 }
 0x7aa   :  { %1745 = vmatprep.mubr.bf16.mxu0 %v5311_v16  ;;  %1818 = vmatprep.mubr.bf16.mxu1 %v5311_v16 }
 0x7ab   :  { %2072 = vmatpush1.bf16.msra.mxu0 %v4680_v23  ;;  %2113 = vmatpush1.bf16.msra.mxu1 %v4682_v24 }
 0x7ac   :  { %2073 = vmatprep.subr.bf16.mxu0 %v4688_v26  ;;  %2114 = vmatprep.subr.bf16.mxu1 %v4690_v27 }
 0x7af   :  { %2074 = vmatpush1.bf16.msra.mxu0 %v4692_v2  ;;  %2115 = vmatpush1.bf16.msra.mxu1 %v4694_v12 }
 0x7b0   :  { %2075 = vmatprep.subr.bf16.mxu0 %v4700_v40  ;;  %2116 = vmatprep.subr.bf16.mxu1 %v4702_v42 }
 0x7b1   :  { %1746 = vmatmul.mubr.bf16.gmra.mrb[56].mxu0 %v1477_v34  ;;  %1819 = vmatmul.mubr.bf16.gmra.mrb[56].mxu1 %v1477_v34 }
 0x7b2   :  { %1755 = vmatprep.mubr.bf16.mxu0 %v5311_v16  ;;  %1828 = vmatprep.mubr.bf16.mxu1 %v5311_v16 }
 0x7b3   :  { %2076 = vmatpush1.bf16.msra.mxu0 %v4704_v28  ;;  %2117 = vmatpush1.bf16.msra.mxu1 %v4706_v44 }
 0x7b4   :  { %2077 = vmatprep.subr.bf16.mxu0 %v4712_v29  ;;  %2118 = vmatprep.subr.bf16.mxu1 %v4714_v45 }
 0x7b7   :  { %2078 = vmatpush1.bf16.msra.mxu0 %v4716_v30  ;;  %2119 = vmatpush1.bf16.msra.mxu1 %v4718_v47 }
 0x7b8   :  { %2079 = vmatprep.subr.bf16.mxu0 %v4724_v36  ;;  %2120 = vmatprep.subr.bf16.mxu1 %v4726_v38 }
 0x7bb   :  { %2080 = vmatpush1.bf16.msra.mxu0 %v4728_v39  ;;  %2121 = vmatpush1.bf16.msra.mxu1 %v4730_v51 }
 0x7bc   :  { %2081 = vmatprep.subr.bf16.mxu0 %v4736_v56  ;;  %2122 = vmatprep.subr.bf16.mxu1 %v4738_v57 }
 0x7bf   :  { %2082 = vmatpush1.bf16.msra.mxu0 %v4740_v58  ;;  %2123 = vmatpush1.bf16.msra.mxu1 %v4742_v18 }
 0x7c0   :  { %2182 = vmatprep.subr.bf16.mxu0 %v4652_v6  ;;  %2223 = vmatprep.subr.bf16.mxu1 %v4654_v55 }
 0x854   :  { %v1390_v19 = vpop.f32.mrb[44].mxu0  ;;  %v1431_v59 = vpop.f32.mrb[44].mxu1 }
 0x855   :  { %v1438_v62 = vadd.f32 %v1390_v19, %v5329_v60  ;;  %v1440_v63 = vadd.f32 %v1431_v59, %v5330_v54  ;;  %v1392_v8 = vpop.f32.mrb[45].mxu0  ;;  %v1433_v0 = vpop.f32.mrb[45].mxu1 }
 0x856   :  { %v1439_v31 = vadd.f32 %v1392_v8, %v5331_v7  ;;  %v1441_v32 = vadd.f32 %v1433_v0, %v5332_v46  ;;  %v1394_v48 = vpop.f32.mrb[46].mxu0  ;;  %v1435_v33 = vpop.f32.mrb[46].mxu1 }
 0x857   :  { %v3190_v49 = vmul.f32 -1.442695, %v1438_v62  ;;  %v1395_v50 = vpop.f32.mrb[47].mxu0  ;;  %v1436_v5 = vpop.f32.mrb[47].mxu1  ;;  %v3192_v43 = vmul.f32 -1.442695, %v1440_v63 }
 0x858   :  { %v3191_v11 = vmul.f32 -1.442695, %v1439_v31 }
 0x859   :  { %3598 = vpow2.f32 %v3190_v49 }
 0x85a   :  { %3600 = vpow2.f32 %v3191_v11 }
 0x85b   :  { %3602 = vtanh.f32 %v1441_v32 }
 0x85c   :  { %3604 = vpow2.f32 %v3192_v43 }
 0x863   :  { %v3599_v14 = vpop.eup %3598 }
 0x864   :  { %v1451_v3 = vadd.f32 1.0, %v3599_v14  ;;  %v3601_v9 = vpop.eup %3600 }
 0x865   :  { %v1452_v15 = vadd.f32 1.0, %v3601_v9  ;;  %v3603_v61 = vpop.eup %3602 }
 0x866   :  { %3606 = vrcp.f32 %v1451_v3  ;;  %v3605_v53 = vpop.eup %3604 }
 0x867   :  { %3608 = vrcp.f32 %v1452_v15  ;;  %v1453_v34 = vadd.f32 1.0, %v3605_v53 }
 0x869   :  { %3610 = vrcp.f32 %v1453_v34 }
 0x870   :  { %v3607_v25 = vpop.eup %3606 }
 0x871   :  { %v1462_v4 = vmul.f32 %v3607_v25, %v3603_v61  ;;  %v3609_v10 = vpop.eup %3608 }
 0x872   :  { %v1461_v19 = vmul.f32 %v3609_v10, %v4631_v37 }
 0x873   :  { %v3611_v11 = vpop.eup %3610 }
 0x874   :  { %v4755_v59 = vpop.f32.mrb[48].mxu0  ;;  %v4757_v60 = vpop.f32.mrb[48].mxu1  ;;  %v1463_v62 = vadd.f32 %v1462_v4, %v1461_v19 }
 0x875   :  { %v4759_v54 = vpop.f32.mrb[49].mxu0  ;;  %v4761_v63 = vpop.f32.mrb[49].mxu1 }
 0x876   :  { %v4763_v8 = vpop.f32.mrb[50].mxu0  ;;  %v4765_v0 = vpop.f32.mrb[50].mxu1  ;;  %3612 = vtanh.f32 %v1463_v62 }
 0x877   :  { %v4767_v7 = vpop.f32.mrb[51].mxu0  ;;  %v4769_v31 = vpop.f32.mrb[51].mxu1 }
 0x87c   :  { %v4771_v37 = vpop.f32.mrb[52].mxu0  ;;  %v4773_v46 = vpop.f32.mrb[52].mxu1 }
 0x87d   :  { %5333 = vst [vmem:[#allocation17_spill] sm:$0xff] %v4773_v46  ;;  %v4775_v32 = vpop.f32.mrb[53].mxu0  ;;  %v4777_v48 = vpop.f32.mrb[53].mxu1 }
 0x87e   :  { %5334 = vst [vmem:[#allocation15_spill] sm:$0xff] %v4775_v32  ;;  %5335 = vst [vmem:[#allocation18_spill] sm:$0xff] %v4777_v48  ;;  %v4779_v33 = vpop.f32.mrb[54].mxu0  ;;  %v4781_v49 = vpop.f32.mrb[54].mxu1 }
 0x87f   :  { %5336 = vst [vmem:[#allocation16_spill] sm:$0xff] %v4779_v33  ;;  %5337 = vst [vmem:[#allocation19_spill] sm:$0xff] %v4781_v49  ;;  %v4783_v50 = vpop.f32.mrb[55].mxu0  ;;  %v4785_v5 = vpop.f32.mrb[55].mxu1 }
 0x880   :  { %5338 = vst [vmem:[#allocation20_spill] sm:$0xff] %v4783_v50  ;;  %5339 = vst [vmem:[#allocation23_spill] sm:$0xff] %v4785_v5  ;;  %v3613_v43 = vpop.eup %3612 }
 0x881   :  { %v1465_v14 = vmul.f32 %v3613_v43, %v3611_v11 }
 0x883   :  { %v1478_v15 = vpack.c.bf16 %v1465_v14, %v4634_v41  ;;  %v1511_v41 = vld [vmem:[%s5277_s6] sm:$0xf] }
 0x884   :  { %v4787_v3 = vpop.f32.mrb[56].mxu0  ;;  %v4789_v9 = vpop.f32.mrb[56].mxu1 }
 0x885   :  { %5340 = vst [vmem:[#allocation21_spill] sm:$0xff] %v4787_v3  ;;  %5341 = vst [vmem:[#allocation25_spill] sm:$0xff] %v4789_v9  ;;  %v4792_v61 = vpop.f32.mrb[57].mxu0  ;;  %v4794_v53 = vpop.f32.mrb[57].mxu1  ;;  %1756 = vmatmul.mubr.bf16.gmra.mrb[60].mxu0 %v1478_v15  ;;  %1829 = vmatmul.mubr.bf16.gmra.mrb[60].mxu1 %v1478_v15 }
 0x886   :  { %5342 = vst [vmem:[#allocation22_spill] sm:$0xff] %v4792_v61  ;;  %5343 = vst [vmem:[#allocation26_spill] sm:$0xff] %v4794_v53  ;;  %v4796_v25 = vpop.f32.mrb[58].mxu0  ;;  %v4798_v4 = vpop.f32.mrb[58].mxu1  ;;  %2099 = vmatprep.mubr.bf16.mxu0 %v5311_v16  ;;  %2140 = vmatprep.mubr.bf16.mxu1 %v5311_v16 }
 0x887   :  { %5344 = vst [vmem:[#allocation24_spill] sm:$0xff] %v4796_v25  ;;  %5345 = vst [vmem:[#allocation27_spill] sm:$0xff] %v4798_v4  ;;  %v4800_v10 = vpop.f32.mrb[59].mxu0  ;;  %v4802_v34 = vpop.f32.mrb[59].mxu1 }
 0x888   :  { %5346 = vst [vmem:[#allocation28_spill] sm:$0xff] %v4800_v10  ;;  %5347 = vst [vmem:[#allocation31_spill] sm:$0xff] %v4802_v34  ;;  %v5354_v34 = vld [vmem:[#allocation14_spill] sm:$0xff] }
 0x889   :  { %v5355_v10 = vsub.s32 0, %v5354_v34  ;;  %v5356_v25 = vsub.s32 2, %v5354_v34 }
 0x88b   :  { %v4859_v4 = vrot.slane %v1511_v41, %v5355_v10  ;;  %v4863_v53 = vrot.slane %v1511_v41, %v5356_v25 }
 0x88d   :  { %2100 = vmatmul.mubr.bf16.vlgmr.msra.gmra.mrb[64].mxu0 %v5311_v16  ;;  %2141 = vmatmul.mubr.bf16.vlgmr.msra.gmra.mrb[64].mxu1 %v5311_v16  ;;  %v1728_v10 = vadd.f32 %v4755_v59, %v4859_v4 }
 0x88e   :  { %2183 = vmatpush1.bf16.msra.mxu0 %v4656_v1  ;;  %2224 = vmatpush1.bf16.msra.mxu1 %v4658_v17 }
 0x88f   :  { %2184 = vmatprep.subr.bf16.mxu0 %v4664_v13  ;;  %2225 = vmatprep.subr.bf16.mxu1 %v4666_v35 }
 0x890   :  { %2214 = vmatprep.mubr.bf16.mxu0 %v5311_v16  ;;  %2255 = vmatprep.mubr.bf16.mxu1 %v5311_v16 }
 0x892   :  { %2185 = vmatpush1.bf16.msra.mxu0 %v4668_v52  ;;  %2226 = vmatpush1.bf16.msra.mxu1 %v4670_v20 }
 0x893   :  { %2186 = vmatprep.subr.bf16.mxu0 %v4676_v21  ;;  %2227 = vmatprep.subr.bf16.mxu1 %v4678_v22 }
 0x896   :  { %2187 = vmatpush1.bf16.msra.mxu0 %v4680_v23  ;;  %2228 = vmatpush1.bf16.msra.mxu1 %v4682_v24 }
 0x897   :  { %2188 = vmatprep.subr.bf16.mxu0 %v4688_v26  ;;  %2229 = vmatprep.subr.bf16.mxu1 %v4690_v27 }
 0x89a   :  { %2189 = vmatpush1.bf16.msra.mxu0 %v4692_v2  ;;  %2230 = vmatpush1.bf16.msra.mxu1 %v4694_v12 }
 0x89b   :  { %2190 = vmatprep.subr.bf16.mxu0 %v4700_v40  ;;  %2231 = vmatprep.subr.bf16.mxu1 %v4702_v42 }
 0x89e   :  { %2191 = vmatpush1.bf16.msra.mxu0 %v4704_v28  ;;  %2232 = vmatpush1.bf16.msra.mxu1 %v4706_v44 }
 0x89f   :  { %2192 = vmatprep.subr.bf16.mxu0 %v4712_v29  ;;  %2233 = vmatprep.subr.bf16.mxu1 %v4714_v45 }
 0x8a2   :  { %2193 = vmatpush1.bf16.msra.mxu0 %v4716_v30  ;;  %2234 = vmatpush1.bf16.msra.mxu1 %v4718_v47 }
 0x8a3   :  { %2194 = vmatprep.subr.bf16.mxu0 %v4724_v36  ;;  %2235 = vmatprep.subr.bf16.mxu1 %v4726_v38 }
 0x8a6   :  { %2195 = vmatpush1.bf16.msra.mxu0 %v4728_v39  ;;  %2236 = vmatpush1.bf16.msra.mxu1 %v4730_v51 }
 0x8a7   :  { %2196 = vmatprep.subr.bf16.mxu0 %v4736_v56  ;;  %2237 = vmatprep.subr.bf16.mxu1 %v4738_v57 }
 0x8aa   :  { %2197 = vmatpush1.bf16.msra.mxu0 %v4740_v58  ;;  %2238 = vmatpush1.bf16.msra.mxu1 %v4742_v18 }
 0x8ab   :  { %2297 = vmatprep.subr.bf16.mxu0 %v4652_v6  ;;  %2338 = vmatprep.subr.bf16.mxu1 %v4654_v55 }
 0x958   :  { %v4845_v19 = vpop.f32.mrb[60].mxu0  ;;  %v4847_v62 = vpop.f32.mrb[60].mxu1 }
 0x959   :  { %5348 = vst [vmem:[#allocation29_spill] sm:$0xff] %v4845_v19  ;;  %5349 = vst [vmem:[#allocation33_spill] sm:$0xff] %v4847_v62  ;;  %v4849_v11 = vpop.f32.mrb[61].mxu0  ;;  %v4851_v43 = vpop.f32.mrb[61].mxu1 }
 0x95a   :  { %5350 = vst [vmem:[#allocation30_spill] sm:$0xff] %v4849_v11  ;;  %5351 = vst [vmem:[#allocation34_spill] sm:$0xff] %v4851_v43  ;;  %v4853_v14 = vpop.f32.mrb[62].mxu0  ;;  %v4855_v15 = vpop.f32.mrb[62].mxu1  ;;  %v5359_v11 = vsub.s32 1, %v5354_v34 }
 0x95b   :  { %5352 = vst [vmem:[#allocation32_spill] sm:$0xff] %v4853_v14  ;;  %5353 = vst [vmem:[#allocation35_spill] sm:$0xff] %v4855_v15  ;;  %v4865_v61 = vpop.f32.mrb[63].mxu0  ;;  %v4867_v19 = vpop.f32.mrb[63].mxu1  ;;  %v5360_v14 = vsub.s32 3, %v5354_v34  ;;  %v1801_v15 = vadd.f32 %v4757_v60, %v4863_v53 }
 0x95c   :  { %5357 = vst [vmem:[#allocation14_spill] sm:$0xff] %v4865_v61  ;;  %5358 = vst [vmem:[#allocation36_spill] sm:$0xff] %v4867_v19  ;;  %v4871_v62 = vrot.slane %v1511_v41, %v5359_v11 }
 0x95d   :  { %v4875_v43 = vrot.slane %v1511_v41, %v5360_v14 }
 0x95e   :  { %v1730_v25 = vadd.f32 %v4759_v54, %v4871_v62 }
 0x95f   :  { %v1803_v19 = vadd.f32 %v4761_v63, %v4875_v43 }
 0x960   :  { %v2101_v61 = vpop.f32.mrb[64].mxu0  ;;  %v2142_v9 = vpop.f32.mrb[64].mxu1 }
 0x961   :  { %v2149_v11 = vadd.f32 %v2101_v61, %v1728_v10  ;;  %v2151_v3 = vadd.f32 %v2142_v9, %v1801_v15  ;;  %v2103_v5 = vpop.f32.mrb[65].mxu0  ;;  %v2144_v34 = vpop.f32.mrb[65].mxu1 }
 0x962   :  { %v2150_v41 = vadd.f32 %v2103_v5, %v1730_v25  ;;  %v2152_v14 = vadd.f32 %v2144_v34, %v1803_v19  ;;  %v2105_v50 = vpop.f32.mrb[66].mxu0  ;;  %v2146_v49 = vpop.f32.mrb[66].mxu1  ;;  %v1734_v34 = vadd.f32 %v4767_v7, %v4871_v62 }
 0x963   :  { %v3257_v59 = vmul.f32 -1.442695, %v2149_v11  ;;  %v2106_v33 = vpop.f32.mrb[67].mxu0  ;;  %v2147_v48 = vpop.f32.mrb[67].mxu1  ;;  %v3259_v54 = vmul.f32 -1.442695, %v2151_v3  ;;  %v1805_v11 = vadd.f32 %v4765_v0, %v4863_v53 }
 0x964   :  { %v3258_v60 = vmul.f32 -1.442695, %v2150_v41  ;;  %v1807_v41 = vadd.f32 %v4769_v31, %v4875_v43 }
 0x965   :  { %3614 = vpow2.f32 %v3257_v59 }
 0x966   :  { %3616 = vpow2.f32 %v3258_v60 }
 0x967   :  { %3618 = vtanh.f32 %v2152_v14 }
 0x968   :  { %3620 = vpow2.f32 %v3259_v54 }
 0x96f   :  { %v3615_v32 = vpop.eup %3614 }
 0x970   :  { %v2162_v46 = vadd.f32 1.0, %v3615_v32  ;;  %v3617_v63 = vpop.eup %3616 }
 0x971   :  { %v2163_v9 = vadd.f32 1.0, %v3617_v63  ;;  %v3619_v61 = vpop.eup %3618 }
 0x972   :  { %3622 = vrcp.f32 %v2162_v46  ;;  %v3621_v5 = vpop.eup %3620  ;;  %v1732_v46 = vadd.f32 %v4763_v8, %v4859_v4 }
 0x973   :  { %3624 = vrcp.f32 %v2163_v9  ;;  %v2164_v15 = vadd.f32 1.0, %v3621_v5 }
 0x975   :  { %3626 = vrcp.f32 %v2164_v15 }
 0x97c   :  { %v3623_v19 = vpop.eup %3622 }
 0x97d   :  { %v2173_v50 = vmul.f32 %v3623_v19, %v3619_v61  ;;  %v3625_v49 = vpop.eup %3624 }
 0x97e   :  { %v2172_v33 = vmul.f32 0.0, %v3625_v49 }
 0x97f   :  { %v3627_v3 = vpop.eup %3626 }
 0x980   :  { %v4885_v48 = vadd.f32 %v2173_v50, %v2172_v33 }
 0x982   :  { %3628 = vtanh.f32 %v4885_v48 }
 0x98c   :  { %v3629_v32 = vpop.eup %3628 }
 0x98d   :  { %v2176_v10 = vmul.f32 %v3629_v32, %v3627_v3 }
 0x98f   :  { %v2177_v25 = vpack.c.bf16 %v2176_v10, %v2176_v10 }
 0x991   :  { %2215 = vmatmul.mubr.bf16.vlgmr.msra.gmra.mrb[68].mxu0 %v2177_v25  ;;  %2256 = vmatmul.mubr.bf16.vlgmr.msra.gmra.mrb[68].mxu1 %v2177_v25 }
 0x992   :  { %2298 = vmatpush1.bf16.msra.mxu0 %v4656_v1  ;;  %2339 = vmatpush1.bf16.msra.mxu1 %v4658_v17 }
 0x993   :  { %2299 = vmatprep.subr.bf16.mxu0 %v4664_v13  ;;  %2340 = vmatprep.subr.bf16.mxu1 %v4666_v35 }
 0x994   :  { %2329 = vmatprep.mubr.bf16.mxu0 %v5311_v16  ;;  %2370 = vmatprep.mubr.bf16.mxu1 %v5311_v16 }
 0x996   :  { %2300 = vmatpush1.bf16.msra.mxu0 %v4668_v52  ;;  %2341 = vmatpush1.bf16.msra.mxu1 %v4670_v20 }
 0x997   :  { %2301 = vmatprep.subr.bf16.mxu0 %v4676_v21  ;;  %2342 = vmatprep.subr.bf16.mxu1 %v4678_v22 }
 0x99a   :  { %2302 = vmatpush1.bf16.msra.mxu0 %v4680_v23  ;;  %2343 = vmatpush1.bf16.msra.mxu1 %v4682_v24 }
 0x99b   :  { %2303 = vmatprep.subr.bf16.mxu0 %v4688_v26  ;;  %2344 = vmatprep.subr.bf16.mxu1 %v4690_v27 }
 0x99e   :  { %2304 = vmatpush1.bf16.msra.mxu0 %v4692_v2  ;;  %2345 = vmatpush1.bf16.msra.mxu1 %v4694_v12 }
 0x99f   :  { %2305 = vmatprep.subr.bf16.mxu0 %v4700_v40  ;;  %2346 = vmatprep.subr.bf16.mxu1 %v4702_v42 }
 0x9a2   :  { %2306 = vmatpush1.bf16.msra.mxu0 %v4704_v28  ;;  %2347 = vmatpush1.bf16.msra.mxu1 %v4706_v44 }
 0x9a3   :  { %2307 = vmatprep.subr.bf16.mxu0 %v4712_v29  ;;  %2348 = vmatprep.subr.bf16.mxu1 %v4714_v45 }
 0x9a6   :  { %2308 = vmatpush1.bf16.msra.mxu0 %v4716_v30  ;;  %2349 = vmatpush1.bf16.msra.mxu1 %v4718_v47 }
 0x9a7   :  { %2309 = vmatprep.subr.bf16.mxu0 %v4724_v36  ;;  %2350 = vmatprep.subr.bf16.mxu1 %v4726_v38 }
 0x9aa   :  { %2310 = vmatpush1.bf16.msra.mxu0 %v4728_v39  ;;  %2351 = vmatpush1.bf16.msra.mxu1 %v4730_v51 }
 0x9ab   :  { %2311 = vmatprep.subr.bf16.mxu0 %v4736_v56  ;;  %2352 = vmatprep.subr.bf16.mxu1 %v4738_v57 }
 0x9ae   :  { %2312 = vmatpush1.bf16.msra.mxu0 %v4740_v58  ;;  %2353 = vmatpush1.bf16.msra.mxu1 %v4742_v18 }
 0x9af   :  { %2412 = vmatprep.subr.bf16.mxu0 %v4652_v6  ;;  %2453 = vmatprep.subr.bf16.mxu1 %v4654_v55 }
 0xa64   :  { %v2216_v14 = vpop.f32.mrb[68].mxu0  ;;  %v2257_v59 = vpop.f32.mrb[68].mxu1 }
 0xa65   :  { %v2264_v60 = vadd.f32 %v2216_v14, %v1732_v46  ;;  %v2266_v54 = vadd.f32 %v2257_v59, %v1805_v11  ;;  %v2218_v63 = vpop.f32.mrb[69].mxu0  ;;  %v2259_v9 = vpop.f32.mrb[69].mxu1 }
 0xa66   :  { %v2265_v61 = vadd.f32 %v2218_v63, %v1734_v34  ;;  %v2267_v5 = vadd.f32 %v2259_v9, %v1807_v41  ;;  %v2220_v19 = vpop.f32.mrb[70].mxu0  ;;  %v2261_v50 = vpop.f32.mrb[70].mxu1 }
 0xa67   :  { %v3260_v8 = vmul.f32 -1.442695, %v2264_v60  ;;  %v2221_v49 = vpop.f32.mrb[71].mxu0  ;;  %v2262_v15 = vpop.f32.mrb[71].mxu1  ;;  %v3262_v7 = vmul.f32 -1.442695, %v2266_v54 }
 0xa68   :  { %v3261_v0 = vmul.f32 -1.442695, %v2265_v61  ;;  %v5361_v61 = vld [vmem:[#allocation17_spill] sm:$0xff]  ;;  %v5362_v19 = vld [vmem:[#allocation15_spill] sm:$0xff] }
 0xa69   :  { %3630 = vpow2.f32 %v3260_v8  ;;  %v1740_v50 = vadd.f32 %v5362_v19, %v4871_v62  ;;  %v5363_v8 = vld [vmem:[#allocation18_spill] sm:$0xff] }
 0xa6a   :  { %3632 = vpow2.f32 %v3261_v0  ;;  %v1813_v49 = vadd.f32 %v5363_v8, %v4875_v43 }
 0xa6b   :  { %3634 = vtanh.f32 %v2267_v5  ;;  %v1811_v5 = vadd.f32 %v5361_v61, %v4863_v53 }
 0xa6c   :  { %3636 = vpow2.f32 %v3262_v7 }
 0xa73   :  { %v3631_v33 = vpop.eup %3630 }
 0xa74   :  { %v2277_v3 = vadd.f32 1.0, %v3631_v33  ;;  %v3633_v31 = vpop.eup %3632 }
 0xa75   :  { %v2278_v32 = vadd.f32 1.0, %v3633_v31  ;;  %v3635_v10 = vpop.eup %3634 }
 0xa76   :  { %3638 = vrcp.f32 %v2277_v3  ;;  %v3637_v25 = vpop.eup %3636 }
 0xa77   :  { %3640 = vrcp.f32 %v2278_v32  ;;  %v2279_v41 = vadd.f32 1.0, %v3637_v25 }
 0xa79   :  { %3642 = vrcp.f32 %v2279_v41 }
 0xa80   :  { %v3639_v46 = vpop.eup %3638 }
 0xa81   :  { %v2288_v11 = vmul.f32 %v3639_v46, %v3635_v10  ;;  %v3641_v34 = vpop.eup %3640 }
 0xa82   :  { %v2287_v14 = vmul.f32 %v3641_v34, %v4885_v48  ;;  %v1738_v48 = vadd.f32 %v4771_v37, %v4859_v4 }
 0xa83   :  { %v3643_v60 = vpop.eup %3642 }
 0xa84   :  { %v4931_v59 = vadd.f32 %v2288_v11, %v2287_v14 }
 0xa86   :  { %3644 = vtanh.f32 %v4931_v59 }
 0xa90   :  { %v3645_v54 = vpop.eup %3644 }
 0xa91   :  { %v2291_v63 = vmul.f32 %v3645_v54, %v3643_v60 }
 0xa93   :  { %v2292_v9 = vpack.c.bf16 %v2291_v63, %v2291_v63 }
 0xa95   :  { %2330 = vmatmul.mubr.bf16.vlgmr.msra.gmra.mrb[72].mxu0 %v2292_v9  ;;  %2371 = vmatmul.mubr.bf16.vlgmr.msra.gmra.mrb[72].mxu1 %v2292_v9 }
 0xa96   :  { %2413 = vmatpush1.bf16.msra.mxu0 %v4656_v1  ;;  %2454 = vmatpush1.bf16.msra.mxu1 %v4658_v17 }
 0xa97   :  { %2414 = vmatprep.subr.bf16.mxu0 %v4664_v13  ;;  %2455 = vmatprep.subr.bf16.mxu1 %v4666_v35 }
 0xa98   :  { %2444 = vmatprep.mubr.bf16.mxu0 %v5311_v16  ;;  %2485 = vmatprep.mubr.bf16.mxu1 %v5311_v16 }
 0xa9a   :  { %2415 = vmatpush1.bf16.msra.mxu0 %v4668_v52  ;;  %2456 = vmatpush1.bf16.msra.mxu1 %v4670_v20 }
 0xa9b   :  { %2416 = vmatprep.subr.bf16.mxu0 %v4676_v21  ;;  %2457 = vmatprep.subr.bf16.mxu1 %v4678_v22 }
 0xa9e   :  { %2417 = vmatpush1.bf16.msra.mxu0 %v4680_v23  ;;  %2458 = vmatpush1.bf16.msra.mxu1 %v4682_v24 }
 0xa9f   :  { %2418 = vmatprep.subr.bf16.mxu0 %v4688_v26  ;;  %2459 = vmatprep.subr.bf16.mxu1 %v4690_v27 }
 0xaa2   :  { %2419 = vmatpush1.bf16.msra.mxu0 %v4692_v2  ;;  %2460 = vmatpush1.bf16.msra.mxu1 %v4694_v12 }
 0xaa3   :  { %2420 = vmatprep.subr.bf16.mxu0 %v4700_v40  ;;  %2461 = vmatprep.subr.bf16.mxu1 %v4702_v42 }
 0xaa6   :  { %2421 = vmatpush1.bf16.msra.mxu0 %v4704_v28  ;;  %2462 = vmatpush1.bf16.msra.mxu1 %v4706_v44 }
 0xaa7   :  { %2422 = vmatprep.subr.bf16.mxu0 %v4712_v29  ;;  %2463 = vmatprep.subr.bf16.mxu1 %v4714_v45 }
 0xaaa   :  { %2423 = vmatpush1.bf16.msra.mxu0 %v4716_v30  ;;  %2464 = vmatpush1.bf16.msra.mxu1 %v4718_v47 }
 0xaab   :  { %2424 = vmatprep.subr.bf16.mxu0 %v4724_v36  ;;  %2465 = vmatprep.subr.bf16.mxu1 %v4726_v38 }
 0xaae   :  { %2425 = vmatpush1.bf16.msra.mxu0 %v4728_v39  ;;  %2466 = vmatpush1.bf16.msra.mxu1 %v4730_v51 }
 0xaaf   :  { %2426 = vmatprep.subr.bf16.mxu0 %v4736_v56  ;;  %2467 = vmatprep.subr.bf16.mxu1 %v4738_v57 }
 0xab2   :  { %2427 = vmatpush1.bf16.msra.mxu0 %v4740_v58  ;;  %2468 = vmatpush1.bf16.msra.mxu1 %v4742_v18 }
 0xab3   :  { %2527 = vmatprep.subr.bf16.mxu0 %v4652_v6  ;;  %2568 = vmatprep.subr.bf16.mxu1 %v4654_v55 }
 0xb68   :  { %v2331_v15 = vpop.f32.mrb[72].mxu0  ;;  %v2372_v0 = vpop.f32.mrb[72].mxu1 }
 0xb69   :  { %v2379_v7 = vadd.f32 %v2331_v15, %v1738_v48  ;;  %v2381_v33 = vadd.f32 %v2372_v0, %v1811_v5  ;;  %v2333_v3 = vpop.f32.mrb[73].mxu0  ;;  %v2374_v31 = vpop.f32.mrb[73].mxu1 }
 0xb6a   :  { %v2380_v32 = vadd.f32 %v2333_v3, %v1740_v50  ;;  %v2382_v10 = vadd.f32 %v2374_v31, %v1813_v49  ;;  %v2335_v25 = vpop.f32.mrb[74].mxu0  ;;  %v2376_v46 = vpop.f32.mrb[74].mxu1 }
 0xb6b   :  { %v3263_v37 = vmul.f32 -1.442695, %v2379_v7  ;;  %v2336_v11 = vpop.f32.mrb[75].mxu0  ;;  %v2377_v34 = vpop.f32.mrb[75].mxu1  ;;  %v3265_v14 = vmul.f32 -1.442695, %v2381_v33 }
 0xb6c   :  { %v3264_v41 = vmul.f32 -1.442695, %v2380_v32  ;;  %v5365_v32 = vld [vmem:[#allocation19_spill] sm:$0xff]  ;;  %v5366_v25 = vld [vmem:[#allocation20_spill] sm:$0xff] }
 0xb6d   :  { %3646 = vpow2.f32 %v3263_v37  ;;  %v1744_v46 = vadd.f32 %v5366_v25, %v4871_v62  ;;  %v5367_v37 = vld [vmem:[#allocation23_spill] sm:$0xff] }
 0xb6e   :  { %3648 = vpow2.f32 %v3264_v41  ;;  %v1817_v11 = vadd.f32 %v5367_v37, %v4875_v43 }
 0xb6f   :  { %3650 = vtanh.f32 %v2382_v10  ;;  %v1815_v10 = vadd.f32 %v5365_v32, %v4863_v53 }
 0xb70   :  { %3652 = vpow2.f32 %v3265_v14 }
 0xb77   :  { %v3647_v60 = vpop.eup %3646 }
 0xb78   :  { %v2392_v54 = vadd.f32 1.0, %v3647_v60  ;;  %v3649_v63 = vpop.eup %3648 }
 0xb79   :  { %v2393_v9 = vadd.f32 1.0, %v3649_v63  ;;  %v3651_v48 = vpop.eup %3650 }
 0xb7a   :  { %3654 = vrcp.f32 %v2392_v54  ;;  %v3653_v61 = vpop.eup %3652 }
 0xb7b   :  { %3656 = vrcp.f32 %v2393_v9  ;;  %v2394_v8 = vadd.f32 1.0, %v3653_v61 }
 0xb7d   :  { %3658 = vrcp.f32 %v2394_v8 }
 0xb84   :  { %v3655_v5 = vpop.eup %3654 }
 0xb85   :  { %v2403_v19 = vmul.f32 %v3655_v5, %v3651_v48  ;;  %v3657_v50 = vpop.eup %3656 }
 0xb86   :  { %v2402_v49 = vmul.f32 %v3657_v50, %v4931_v59  ;;  %v5364_v59 = vld [vmem:[#allocation16_spill] sm:$0xff] }
 0xb87   :  { %v3659_v0 = vpop.eup %3658  ;;  %v1742_v31 = vadd.f32 %v5364_v59, %v4859_v4 }
 0xb88   :  { %v4977_v15 = vadd.f32 %v2403_v19, %v2402_v49 }
 0xb8a   :  { %3660 = vtanh.f32 %v4977_v15 }
 0xb94   :  { %v3661_v7 = vpop.eup %3660 }
 0xb95   :  { %v2406_v33 = vmul.f32 %v3661_v7, %v3659_v0 }
 0xb97   :  { %v2407_v3 = vpack.c.bf16 %v2406_v33, %v2406_v33 }
 0xb99   :  { %2445 = vmatmul.mubr.bf16.vlgmr.msra.gmra.mrb[76].mxu0 %v2407_v3  ;;  %2486 = vmatmul.mubr.bf16.vlgmr.msra.gmra.mrb[76].mxu1 %v2407_v3 }
 0xb9a   :  { %2528 = vmatpush1.bf16.msra.mxu0 %v4656_v1  ;;  %2569 = vmatpush1.bf16.msra.mxu1 %v4658_v17 }
 0xb9b   :  { %2529 = vmatprep.subr.bf16.mxu0 %v4664_v13  ;;  %2570 = vmatprep.subr.bf16.mxu1 %v4666_v35 }
 0xb9c   :  { %2559 = vmatprep.mubr.bf16.mxu0 %v5311_v16  ;;  %2600 = vmatprep.mubr.bf16.mxu1 %v5311_v16 }
 0xb9e   :  { %2530 = vmatpush1.bf16.msra.mxu0 %v4668_v52  ;;  %2571 = vmatpush1.bf16.msra.mxu1 %v4670_v20 }
 0xb9f   :  { %2531 = vmatprep.subr.bf16.mxu0 %v4676_v21  ;;  %2572 = vmatprep.subr.bf16.mxu1 %v4678_v22 }
 0xba2   :  { %2532 = vmatpush1.bf16.msra.mxu0 %v4680_v23  ;;  %2573 = vmatpush1.bf16.msra.mxu1 %v4682_v24 }
 0xba3   :  { %2533 = vmatprep.subr.bf16.mxu0 %v4688_v26  ;;  %2574 = vmatprep.subr.bf16.mxu1 %v4690_v27 }
 0xba6   :  { %2534 = vmatpush1.bf16.msra.mxu0 %v4692_v2  ;;  %2575 = vmatpush1.bf16.msra.mxu1 %v4694_v12 }
 0xba7   :  { %2535 = vmatprep.subr.bf16.mxu0 %v4700_v40  ;;  %2576 = vmatprep.subr.bf16.mxu1 %v4702_v42 }
 0xbaa   :  { %2536 = vmatpush1.bf16.msra.mxu0 %v4704_v28  ;;  %2577 = vmatpush1.bf16.msra.mxu1 %v4706_v44 }
 0xbab   :  { %2537 = vmatprep.subr.bf16.mxu0 %v4712_v29  ;;  %2578 = vmatprep.subr.bf16.mxu1 %v4714_v45 }
 0xbae   :  { %2538 = vmatpush1.bf16.msra.mxu0 %v4716_v30  ;;  %2579 = vmatpush1.bf16.msra.mxu1 %v4718_v47 }
 0xbaf   :  { %2539 = vmatprep.subr.bf16.mxu0 %v4724_v36  ;;  %2580 = vmatprep.subr.bf16.mxu1 %v4726_v38 }
 0xbb2   :  { %2540 = vmatpush1.bf16.msra.mxu0 %v4728_v39  ;;  %2581 = vmatpush1.bf16.msra.mxu1 %v4730_v51 }
 0xbb3   :  { %2541 = vmatprep.subr.bf16.mxu0 %v4736_v56  ;;  %2582 = vmatprep.subr.bf16.mxu1 %v4738_v57 }
 0xbb6   :  { %2542 = vmatpush1.bf16.msra.mxu0 %v4740_v58  ;;  %2583 = vmatpush1.bf16.msra.mxu1 %v4742_v18 }
 0xbb7   :  { %2642 = vmatprep.subr.bf16.mxu0 %v4652_v6  ;;  %2683 = vmatprep.subr.bf16.mxu1 %v4654_v55 }
 0xc6c   :  { %v2446_v34 = vpop.f32.mrb[76].mxu0  ;;  %v2487_v41 = vpop.f32.mrb[76].mxu1 }
 0xc6d   :  { %v2494_v14 = vadd.f32 %v2446_v34, %v1742_v31  ;;  %v2496_v60 = vadd.f32 %v2487_v41, %v1815_v10  ;;  %v2448_v54 = vpop.f32.mrb[77].mxu0  ;;  %v2489_v63 = vpop.f32.mrb[77].mxu1 }
 0xc6e   :  { %v2495_v9 = vadd.f32 %v2448_v54, %v1744_v46  ;;  %v2497_v48 = vadd.f32 %v2489_v63, %v1817_v11  ;;  %v2450_v61 = vpop.f32.mrb[78].mxu0  ;;  %v2491_v5 = vpop.f32.mrb[78].mxu1 }
 0xc6f   :  { %v3266_v19 = vmul.f32 -1.442695, %v2494_v14  ;;  %v2451_v50 = vpop.f32.mrb[79].mxu0  ;;  %v2492_v8 = vpop.f32.mrb[79].mxu1  ;;  %v3268_v0 = vmul.f32 -1.442695, %v2496_v60 }
 0xc70   :  { %v3267_v49 = vmul.f32 -1.442695, %v2495_v9  ;;  %v5072_v50 = vld [vmem:[#allocation9] ss:$16 sps:$4 sm:$0xff]   ;;  %v5075_v8 = vld [vmem:[#allocation9 + $0x8] ss:$16 sps:$4 sm:$0xff]  }
 0xc71   :  { %3662 = vpow2.f32 %v3266_v19 }
 0xc72   :  { %3664 = vpow2.f32 %v3267_v49  ;;  %v5078_v49 = vld [vmem:[#allocation9 + $0x24] ss:$16 sps:$4 sm:$0xff]  }
 0xc73   :  { %3666 = vtanh.f32 %v2497_v48 }
 0xc74   :  { %3668 = vpow2.f32 %v3268_v0  ;;  %v5081_v0 = vld [vmem:[#allocation9 + $0x2c] ss:$16 sps:$4 sm:$0xff]  }
 0xc7b   :  { %v3663_v7 = vpop.eup %3662 }
 0xc7c   :  { %v2507_v33 = vadd.f32 1.0, %v3663_v7  ;;  %v3665_v3 = vpop.eup %3664  ;;  %v5086_v7 = vld [vmem:[#allocation9 + $0x20] ss:$16 sps:$4 sm:$0xff]  }
 0xc7d   :  { %v2508_v59 = vadd.f32 1.0, %v3665_v3  ;;  %v3667_v31 = vpop.eup %3666  ;;  %v5092_v3 = vld [vmem:[#allocation9 + $0x44] ss:$16 sps:$4 sm:$0xff]  }
 0xc7e   :  { %3670 = vrcp.f32 %v2507_v33  ;;  %v3669_v32 = vpop.eup %3668  ;;  %v5089_v33 = vld [vmem:[#allocation9 + $0x28] ss:$16 sps:$4 sm:$0xff]  }
 0xc7f   :  { %3672 = vrcp.f32 %v2508_v59  ;;  %v2509_v37 = vadd.f32 1.0, %v3669_v32  ;;  %v5095_v59 = vld [vmem:[#allocation9 + $0x4c] ss:$16 sps:$4 sm:$0xff]   ;;  %v5101_v32 = vld [vmem:[#allocation9 + $0x48] ss:$16 sps:$4 sm:$0xff]  }
 0xc81   :  { %3674 = vrcp.f32 %v2509_v37  ;;  %v5113_v37 = vld [vmem:[#allocation9 + $0x68] ss:$16 sps:$4 sm:$0xff]  }
 0xc88   :  { %v3671_v10 = vpop.eup %3670 }
 0xc89   :  { %v2518_v25 = vmul.f32 %v3671_v10, %v3667_v31  ;;  %v3673_v46 = vpop.eup %3672  ;;  %v5098_v31 = vld [vmem:[#allocation9 + $0x40] ss:$16 sps:$4 sm:$0xff]   ;;  %v5104_v10 = vld [vmem:[#allocation9 + $0x64] ss:$16 sps:$4 sm:$0xff]  }
 0xc8a   :  { %v2517_v11 = vmul.f32 %v3673_v46, %v4977_v15  ;;  %v5110_v46 = vld [vmem:[#allocation9 + $0x60] ss:$16 sps:$4 sm:$0xff]  }
 0xc8b   :  { %v3675_v41 = vpop.eup %3674 }
 0xc8c   :  { %v5023_v34 = vadd.f32 %v2518_v25, %v2517_v11  ;;  %v5107_v25 = vld [vmem:[#allocation9 + $0x6c] ss:$16 sps:$4 sm:$0xff]   ;;  %v5116_v11 = vld [vmem:[#allocation9 + $0x84] ss:$16 sps:$4 sm:$0xff]  }
 0xc8e   :  { %3676 = vtanh.f32 %v5023_v34 }
 0xc98   :  { %v3677_v14 = vpop.eup %3676 }
 0xc99   :  { %v2521_v60 = vmul.f32 %v3677_v14, %v3675_v41  ;;  %v5122_v41 = vld [vmem:[#allocation9 + $0x80] ss:$16 sps:$4 sm:$0xff]   ;;  %v5125_v14 = vld [vmem:[#allocation9 + $0x88] ss:$16 sps:$4 sm:$0xff]  }
 0xc9b   :  { %v2522_v54 = vpack.c.bf16 %v2521_v60, %v2521_v60  ;;  %v5128_v60 = vld [vmem:[#allocation9 + $0xa4] ss:$16 sps:$4 sm:$0xff]  }
 0xc9d   :  { %2560 = vmatmul.mubr.bf16.vlgmr.msra.gmra.mrb[80].mxu0 %v2522_v54  ;;  %2601 = vmatmul.mubr.bf16.vlgmr.msra.gmra.mrb[80].mxu1 %v2522_v54  ;;  %v5131_v54 = vld [vmem:[#allocation9 + $0xac] ss:$16 sps:$4 sm:$0xff]  }
 0xc9e   :  { %2643 = vmatpush1.bf16.msra.mxu0 %v4656_v1  ;;  %2684 = vmatpush1.bf16.msra.mxu1 %v4658_v17  ;;  %v5368_v1 = vld [vmem:[#allocation21_spill] sm:$0xff] }
 0xc9f   :  { %2644 = vmatprep.subr.bf16.mxu0 %v4664_v13  ;;  %2685 = vmatprep.subr.bf16.mxu1 %v4666_v35  ;;  %v1748_v17 = vadd.f32 %v5368_v1, %v4859_v4  ;;  %v5369_v13 = vld [vmem:[#allocation25_spill] sm:$0xff] }
 0xca0   :  { %2674 = vmatprep.mubr.bf16.mxu0 %v5311_v16  ;;  %2715 = vmatprep.mubr.bf16.mxu1 %v5311_v16  ;;  %v1821_v35 = vadd.f32 %v5369_v13, %v4863_v53  ;;  %v5134_v1 = vld [vmem:[#allocation9 + $0xa0] ss:$16 sps:$4 sm:$0xff]   ;;  %v5140_v13 = vld [vmem:[#allocation9 + $0xc4] ss:$16 sps:$4 sm:$0xff]  }
 0xca2   :  { %2645 = vmatpush1.bf16.msra.mxu0 %v4668_v52  ;;  %2686 = vmatpush1.bf16.msra.mxu1 %v4670_v20  ;;  %v5370_v52 = vld [vmem:[#allocation22_spill] sm:$0xff] }
 0xca3   :  { %2646 = vmatprep.subr.bf16.mxu0 %v4676_v21  ;;  %2687 = vmatprep.subr.bf16.mxu1 %v4678_v22  ;;  %v1750_v20 = vadd.f32 %v5370_v52, %v4871_v62  ;;  %v5371_v21 = vld [vmem:[#allocation26_spill] sm:$0xff]  ;;  %v5146_v52 = vld [vmem:[#allocation9 + $0xc0] ss:$16 sps:$4 sm:$0xff]  }
 0xca4   :  { %v1823_v22 = vadd.f32 %v5371_v21, %v4875_v43  ;;  %v5152_v21 = vld [vmem:[#allocation9 + $0xe4] ss:$16 sps:$4 sm:$0xff]  }
 0xca6   :  { %2647 = vmatpush1.bf16.msra.mxu0 %v4680_v23  ;;  %2688 = vmatpush1.bf16.msra.mxu1 %v4682_v24 }
 0xca7   :  { %2648 = vmatprep.subr.bf16.mxu0 %v4688_v26  ;;  %2689 = vmatprep.subr.bf16.mxu1 %v4690_v27 }
 0xcaa   :  { %2649 = vmatpush1.bf16.msra.mxu0 %v4692_v2  ;;  %2690 = vmatpush1.bf16.msra.mxu1 %v4694_v12 }
 0xcab   :  { %2650 = vmatprep.subr.bf16.mxu0 %v4700_v40  ;;  %2691 = vmatprep.subr.bf16.mxu1 %v4702_v42 }
 0xcae   :  { %2651 = vmatpush1.bf16.msra.mxu0 %v4704_v28  ;;  %2692 = vmatpush1.bf16.msra.mxu1 %v4706_v44 }
 0xcaf   :  { %2652 = vmatprep.subr.bf16.mxu0 %v4712_v29  ;;  %2693 = vmatprep.subr.bf16.mxu1 %v4714_v45 }
 0xcb2   :  { %2653 = vmatpush1.bf16.msra.mxu0 %v4716_v30  ;;  %2694 = vmatpush1.bf16.msra.mxu1 %v4718_v47 }
 0xcb3   :  { %2654 = vmatprep.subr.bf16.mxu0 %v4724_v36  ;;  %2695 = vmatprep.subr.bf16.mxu1 %v4726_v38 }
 0xcb6   :  { %2655 = vmatpush1.bf16.msra.mxu0 %v4728_v39  ;;  %2696 = vmatpush1.bf16.msra.mxu1 %v4730_v51 }
 0xcb7   :  { %2656 = vmatprep.subr.bf16.mxu0 %v4736_v56  ;;  %2697 = vmatprep.subr.bf16.mxu1 %v4738_v57 }
 0xcba   :  { %2657 = vmatpush1.bf16.msra.mxu0 %v4740_v58  ;;  %2698 = vmatpush1.bf16.msra.mxu1 %v4742_v18 }
 0xcbb   :  { %2757 = vmatprep.subr.bf16.mxu0 %v4652_v6  ;;  %2798 = vmatprep.subr.bf16.mxu1 %v4654_v55 }
 0xd70   :  { %v2561_v23 = vpop.f32.mrb[80].mxu0  ;;  %v2602_v24 = vpop.f32.mrb[80].mxu1 }
 0xd71   :  { %v2609_v26 = vadd.f32 %v2561_v23, %v1748_v17  ;;  %v2611_v27 = vadd.f32 %v2602_v24, %v1821_v35  ;;  %v2563_v2 = vpop.f32.mrb[81].mxu0  ;;  %v2604_v6 = vpop.f32.mrb[81].mxu1  ;;  %v5137_v17 = vld [vmem:[#allocation9 + $0xa8] ss:$16 sps:$4 sm:$0xff]   ;;  %v5143_v35 = vld [vmem:[#allocation9 + $0xcc] ss:$16 sps:$4 sm:$0xff]  }
 0xd72   :  { %v2610_v12 = vadd.f32 %v2563_v2, %v1750_v20  ;;  %v2612_v55 = vadd.f32 %v2604_v6, %v1823_v22  ;;  %v2565_v40 = vpop.f32.mrb[82].mxu0  ;;  %v2606_v42 = vpop.f32.mrb[82].mxu1  ;;  %v5149_v20 = vld [vmem:[#allocation9 + $0xc8] ss:$16 sps:$4 sm:$0xff]   ;;  %v5155_v22 = vld [vmem:[#allocation9 + $0xec] ss:$16 sps:$4 sm:$0xff]  }
 0xd73   :  { %v3269_v28 = vmul.f32 -1.442695, %v2609_v26  ;;  %v2566_v44 = vpop.f32.mrb[83].mxu0  ;;  %v2607_v29 = vpop.f32.mrb[83].mxu1  ;;  %v3271_v30 = vmul.f32 -1.442695, %v2611_v27 }
 0xd74   :  { %v3270_v45 = vmul.f32 -1.442695, %v2610_v12  ;;  %v5158_v23 = vld [vmem:[#allocation9 + $0xe0] ss:$16 sps:$4 sm:$0xff]   ;;  %v5161_v24 = vld [vmem:[#allocation9 + $0xe8] ss:$16 sps:$4 sm:$0xff]  }
 0xd75   :  { %3678 = vpow2.f32 %v3269_v28  ;;  %v3808_v26 = vld [vmem:[#allocation9 + $0x4] ss:$16 sps:$4 sm:$0xff]   ;;  %v3809_v27 = vld [vmem:[#allocation9 + $0xc] ss:$16 sps:$4 sm:$0xff]  }
 0xd76   :  { %3680 = vpow2.f32 %v3270_v45  ;;  %v5372_v2 = vld [vmem:[#allocation24_spill] sm:$0xff]  ;;  %v5373_v12 = vld [vmem:[#allocation27_spill] sm:$0xff] }
 0xd77   :  { %3682 = vtanh.f32 %v2612_v55  ;;  %v1752_v6 = vadd.f32 %v5372_v2, %v4859_v4  ;;  %v1825_v55 = vadd.f32 %v5373_v12, %v4863_v53  ;;  %v5374_v40 = vld [vmem:[#allocation28_spill] sm:$0xff]  ;;  %v5375_v28 = vld [vmem:[#allocation31_spill] sm:$0xff] }
 0xd78   :  { %3684 = vpow2.f32 %v3271_v30  ;;  %v1754_v42 = vadd.f32 %v5374_v40, %v4871_v62  ;;  %v1827_v44 = vadd.f32 %v5375_v28, %v4875_v43 }
 0xd7f   :  { %v3679_v47 = vpop.eup %3678 }
 0xd80   :  { %v2622_v36 = vadd.f32 1.0, %v3679_v47  ;;  %v3681_v38 = vpop.eup %3680 }
 0xd81   :  { %v2623_v39 = vadd.f32 1.0, %v3681_v38  ;;  %v3683_v51 = vpop.eup %3682 }
 0xd82   :  { %3686 = vrcp.f32 %v2622_v36  ;;  %v3685_v56 = vpop.eup %3684 }
 0xd83   :  { %3688 = vrcp.f32 %v2623_v39  ;;  %v2624_v15 = vadd.f32 1.0, %v3685_v56 }
 0xd85   :  { %3690 = vrcp.f32 %v2624_v15 }
 0xd8c   :  { %v3687_v57 = vpop.eup %3686 }
 0xd8d   :  { %v2633_v58 = vmul.f32 %v3687_v57, %v3683_v51  ;;  %v3689_v18 = vpop.eup %3688 }
 0xd8e   :  { %v2632_v63 = vmul.f32 %v3689_v18, %v5023_v34  ;;  %v5119_v34 = vld [vmem:[#allocation9 + $0x8c] ss:$16 sps:$4 sm:$0xff]  }
 0xd8f   :  { %v3691_v48 = vpop.eup %3690 }
 0xd90   :  { %v5069_v9 = vadd.f32 %v2633_v58, %v2632_v63 }
 0xd92   :  { %3692 = vtanh.f32 %v5069_v9 }
 0xd9c   :  { %v3693_v61 = vpop.eup %3692 }
 0xd9d   :  { %v2636_v5 = vmul.f32 %v3693_v61, %v3691_v48 }
 0xd9f   :  { %v2637_v19 = vpack.c.bf16 %v2636_v5, %v2636_v5 }
 0xda1   :  { %2675 = vmatmul.mubr.bf16.vlgmr.msra.gmra.mrb[84].mxu0 %v2637_v19  ;;  %2716 = vmatmul.mubr.bf16.vlgmr.msra.gmra.mrb[84].mxu1 %v2637_v19 }
 0xda2   :  { %2758 = vmatpush1.bf16.msra.mxu0 %v5072_v50  ;;  %2799 = vmatpush1.bf16.msra.mxu1 %v5075_v8 }
 0xda3   :  { %2759 = vmatprep.subr.bf16.mxu0 %v5078_v49  ;;  %2800 = vmatprep.subr.bf16.mxu1 %v5081_v0 }
 0xda4   :  { %2789 = vmatprep.mubr.bf16.mxu0 %v5311_v16  ;;  %2830 = vmatprep.mubr.bf16.mxu1 %v5311_v16 }
 0xda6   :  { %2760 = vmatpush1.bf16.msra.mxu0 %v5086_v7  ;;  %2801 = vmatpush1.bf16.msra.mxu1 %v5089_v33 }
 0xda7   :  { %2761 = vmatprep.subr.bf16.mxu0 %v5092_v3  ;;  %2802 = vmatprep.subr.bf16.mxu1 %v5095_v59 }
 0xdaa   :  { %2762 = vmatpush1.bf16.msra.mxu0 %v5098_v31  ;;  %2803 = vmatpush1.bf16.msra.mxu1 %v5101_v32 }
 0xdab   :  { %2763 = vmatprep.subr.bf16.mxu0 %v5104_v10  ;;  %2804 = vmatprep.subr.bf16.mxu1 %v5107_v25 }
 0xdae   :  { %2764 = vmatpush1.bf16.msra.mxu0 %v5110_v46  ;;  %2805 = vmatpush1.bf16.msra.mxu1 %v5113_v37 }
 0xdaf   :  { %2765 = vmatprep.subr.bf16.mxu0 %v5116_v11  ;;  %2806 = vmatprep.subr.bf16.mxu1 %v5119_v34 }
 0xdb2   :  { %2766 = vmatpush1.bf16.msra.mxu0 %v5122_v41  ;;  %2807 = vmatpush1.bf16.msra.mxu1 %v5125_v14 }
 0xdb3   :  { %2767 = vmatprep.subr.bf16.mxu0 %v5128_v60  ;;  %2808 = vmatprep.subr.bf16.mxu1 %v5131_v54 }
 0xdb6   :  { %2768 = vmatpush1.bf16.msra.mxu0 %v5134_v1  ;;  %2809 = vmatpush1.bf16.msra.mxu1 %v5137_v17 }
 0xdb7   :  { %2769 = vmatprep.subr.bf16.mxu0 %v5140_v13  ;;  %2810 = vmatprep.subr.bf16.mxu1 %v5143_v35 }
 0xdba   :  { %2770 = vmatpush1.bf16.msra.mxu0 %v5146_v52  ;;  %2811 = vmatpush1.bf16.msra.mxu1 %v5149_v20 }
 0xdbb   :  { %2771 = vmatprep.subr.bf16.mxu0 %v5152_v21  ;;  %2812 = vmatprep.subr.bf16.mxu1 %v5155_v22 }
 0xdbe   :  { %2772 = vmatpush1.bf16.msra.mxu0 %v5158_v23  ;;  %2813 = vmatpush1.bf16.msra.mxu1 %v5161_v24 }
 0xdbf   :  { %2872 = vmatprep.subr.bf16.mxu0 %v3808_v26  ;;  %2913 = vmatprep.subr.bf16.mxu1 %v3809_v27 }
 0xe74   :  { %v2676_v29 = vpop.f32.mrb[84].mxu0  ;;  %v2717_v45 = vpop.f32.mrb[84].mxu1 }
 0xe75   :  { %v2724_v30 = vadd.f32 %v2676_v29, %v1752_v6  ;;  %v2726_v47 = vadd.f32 %v2717_v45, %v1825_v55  ;;  %v2678_v36 = vpop.f32.mrb[85].mxu0  ;;  %v2719_v38 = vpop.f32.mrb[85].mxu1 }
 0xe76   :  { %v2725_v39 = vadd.f32 %v2678_v36, %v1754_v42  ;;  %v2727_v51 = vadd.f32 %v2719_v38, %v1827_v44  ;;  %v2680_v56 = vpop.f32.mrb[86].mxu0  ;;  %v2721_v57 = vpop.f32.mrb[86].mxu1 }
 0xe77   :  { %v3272_v58 = vmul.f32 -1.442695, %v2724_v30  ;;  %v2681_v18 = vpop.f32.mrb[87].mxu0  ;;  %v2722_v15 = vpop.f32.mrb[87].mxu1  ;;  %v3274_v48 = vmul.f32 -1.442695, %v2726_v47 }
 0xe78   :  { %v3273_v63 = vmul.f32 -1.442695, %v2725_v39  ;;  %v3911_v18 = vmov 0.0   ;;  %v3479_v15 = vld [vmem:[%s5278_s7 + $0x8] sm:$0xff]  }
 0xe79   :  { %3694 = vpow2.f32 %v3272_v58  ;;  %v3478_v58 = vld [vmem:[%s5278_s7] sm:$0xff]  }
 0xe7a   :  { %3696 = vpow2.f32 %v3273_v63  ;;  %v3480_v63 = vld [vmem:[%s5278_s7 + $0x10] sm:$0xff]  }
 0xe7b   :  { %3698 = vtanh.f32 %v2727_v51 }
 0xe7c   :  { %3700 = vpow2.f32 %v3274_v48  ;;  %v3481_v48 = vld [vmem:[%s5278_s7 + $0x18] sm:$0xff]  }
 0xe83   :  { %v3695_v61 = vpop.eup %3694 }
 0xe84   :  { %v2737_v5 = vadd.f32 1.0, %v3695_v61  ;;  %v3697_v19 = vpop.eup %3696  ;;  %v3482_v61 = vld [vmem:[%s5278_s7 + $0x20] sm:$0xff]  }
 0xe85   :  { %v2738_v26 = vadd.f32 1.0, %v3697_v19  ;;  %v3699_v27 = vpop.eup %3698  ;;  %v3484_v19 = vld [vmem:[%s5278_s7 + $0x30] sm:$0xff]  }
 0xe86   :  { %3702 = vrcp.f32 %v2737_v5  ;;  %v3701_v2 = vpop.eup %3700  ;;  %v3483_v5 = vld [vmem:[%s5278_s7 + $0x28] sm:$0xff]  }
 0xe87   :  { %3704 = vrcp.f32 %v2738_v26  ;;  %v2739_v40 = vadd.f32 1.0, %v3701_v2  ;;  %v3485_v26 = vld [vmem:[%s5278_s7 + $0x38] sm:$0xff]  }
 0xe89   :  { %3706 = vrcp.f32 %v2739_v40 }
 0xe90   :  { %v3703_v6 = vpop.eup %3702 }
 0xe91   :  { %v2748_v12 = vmul.f32 %v3703_v6, %v3699_v27  ;;  %v3705_v55 = vpop.eup %3704  ;;  %v5380_v27 = vld [vmem:[#allocation32_spill] sm:$0xff]  ;;  %v5381_v6 = vld [vmem:[#allocation35_spill] sm:$0xff] }
 0xe92   :  { %v2747_v42 = vmul.f32 %v3705_v55, %v5069_v9  ;;  %v1762_v2 = vadd.f32 %v5380_v27, %v4859_v4  ;;  %v5382_v55 = vld [vmem:[#allocation14_spill] sm:$0xff] }
 0xe93   :  { %v3707_v44 = vpop.eup %3706  ;;  %v1764_v40 = vadd.f32 %v5382_v55, %v4871_v62 }
 0xe94   :  { %v5173_v28 = vadd.f32 %v2748_v12, %v2747_v42  ;;  %v1835_v12 = vadd.f32 %v5381_v6, %v4863_v53  ;;  %v5383_v42 = vld [vmem:[#allocation36_spill] sm:$0xff] }
 0xe96   :  { %3708 = vtanh.f32 %v5173_v28 }
 0xea0   :  { %v3709_v29 = vpop.eup %3708 }
 0xea1   :  { %v2751_v45 = vmul.f32 %v3709_v29, %v3707_v44 }
 0xea3   :  { %v2752_v30 = vpack.c.bf16 %v2751_v45, %v2751_v45 }
 0xea5   :  { %2790 = vmatmul.mubr.bf16.vlgmr.msra.gmra.mrb[88].mxu0 %v2752_v30  ;;  %2831 = vmatmul.mubr.bf16.vlgmr.msra.gmra.mrb[88].mxu1 %v2752_v30 }
 0xea6   :  { %2873 = vmatpush1.bf16.msra.mxu0 %v5072_v50  ;;  %2914 = vmatpush1.bf16.msra.mxu1 %v5075_v8  ;;  %v5377_v50 = vld [vmem:[#allocation33_spill] sm:$0xff] }
 0xea7   :  { %2874 = vmatprep.subr.bf16.mxu0 %v5078_v49  ;;  %2915 = vmatprep.subr.bf16.mxu1 %v5081_v0  ;;  %v1831_v8 = vadd.f32 %v5377_v50, %v4863_v53  ;;  %v5378_v49 = vld [vmem:[#allocation30_spill] sm:$0xff] }
 0xea8   :  { %2904 = vmatprep.mubr.bf16.mxu0 %v5311_v16  ;;  %2945 = vmatprep.mubr.bf16.mxu1 %v5311_v16  ;;  %v5376_v16 = vld [vmem:[#allocation29_spill] sm:$0xff]  ;;  %v1760_v0 = vadd.f32 %v5378_v49, %v4871_v62 }
 0xea9   :  { %v1758_v9 = vadd.f32 %v5376_v16, %v4859_v4 }
 0xeaa   :  { %2875 = vmatpush1.bf16.msra.mxu0 %v5086_v7  ;;  %2916 = vmatpush1.bf16.msra.mxu1 %v5089_v33  ;;  %v5379_v7 = vld [vmem:[#allocation34_spill] sm:$0xff] }
 0xeab   :  { %2876 = vmatprep.subr.bf16.mxu0 %v5092_v3  ;;  %2917 = vmatprep.subr.bf16.mxu1 %v5095_v59  ;;  %v1833_v33 = vadd.f32 %v5379_v7, %v4875_v43 }
 0xeae   :  { %2877 = vmatpush1.bf16.msra.mxu0 %v5098_v31  ;;  %2918 = vmatpush1.bf16.msra.mxu1 %v5101_v32 }
 0xeaf   :  { %2878 = vmatprep.subr.bf16.mxu0 %v5104_v10  ;;  %2919 = vmatprep.subr.bf16.mxu1 %v5107_v25 }
 0xeb2   :  { %2879 = vmatpush1.bf16.msra.mxu0 %v5110_v46  ;;  %2920 = vmatpush1.bf16.msra.mxu1 %v5113_v37 }
 0xeb3   :  { %2880 = vmatprep.subr.bf16.mxu0 %v5116_v11  ;;  %2921 = vmatprep.subr.bf16.mxu1 %v5119_v34 }
 0xeb6   :  { %2881 = vmatpush1.bf16.msra.mxu0 %v5122_v41  ;;  %2922 = vmatpush1.bf16.msra.mxu1 %v5125_v14 }
 0xeb7   :  { %2882 = vmatprep.subr.bf16.mxu0 %v5128_v60  ;;  %2923 = vmatprep.subr.bf16.mxu1 %v5131_v54 }
 0xeba   :  { %2883 = vmatpush1.bf16.msra.mxu0 %v5134_v1  ;;  %2924 = vmatpush1.bf16.msra.mxu1 %v5137_v17 }
 0xebb   :  { %2884 = vmatprep.subr.bf16.mxu0 %v5140_v13  ;;  %2925 = vmatprep.subr.bf16.mxu1 %v5143_v35 }
 0xebe   :  { %2885 = vmatpush1.bf16.msra.mxu0 %v5146_v52  ;;  %2926 = vmatpush1.bf16.msra.mxu1 %v5149_v20 }
 0xebf   :  { %2886 = vmatprep.subr.bf16.mxu0 %v5152_v21  ;;  %2927 = vmatprep.subr.bf16.mxu1 %v5155_v22 }
 0xec2   :  { %2887 = vmatpush1.bf16.msra.mxu0 %v5158_v23  ;;  %2928 = vmatpush1.bf16.msra.mxu1 %v5161_v24 }
 0xec3   :  { %3299 = vmatprep.subr.bf16.mxu0 %v3911_v18 }
 0xf78   :  { %v2791_v3 = vpop.f32.mrb[88].mxu0  ;;  %v2832_v59 = vpop.f32.mrb[88].mxu1 }
 0xf79   :  { %v2839_v31 = vadd.f32 %v2791_v3, %v1758_v9  ;;  %v2841_v32 = vadd.f32 %v2832_v59, %v1831_v8  ;;  %v2793_v10 = vpop.f32.mrb[89].mxu0  ;;  %v2834_v25 = vpop.f32.mrb[89].mxu1 }
 0xf7a   :  { %v2840_v46 = vadd.f32 %v2793_v10, %v1760_v0  ;;  %v2842_v37 = vadd.f32 %v2834_v25, %v1833_v33  ;;  %v2795_v11 = vpop.f32.mrb[90].mxu0  ;;  %v2836_v34 = vpop.f32.mrb[90].mxu1 }
 0xf7b   :  { %v3275_v41 = vmul.f32 -1.442695, %v2839_v31  ;;  %v2796_v14 = vpop.f32.mrb[91].mxu0  ;;  %v2837_v60 = vpop.f32.mrb[91].mxu1  ;;  %v3277_v1 = vmul.f32 -1.442695, %v2841_v32 }
 0xf7c   :  { %v3276_v54 = vmul.f32 -1.442695, %v2840_v46 }
 0xf7d   :  { %3710 = vpow2.f32 %v3275_v41 }
 0xf7e   :  { %3712 = vpow2.f32 %v3276_v54 }
 0xf7f   :  { %3714 = vtanh.f32 %v2842_v37 }
 0xf80   :  { %3716 = vpow2.f32 %v3277_v1 }
 0xf87   :  { %v3711_v17 = vpop.eup %3710 }
 0xf88   :  { %v2852_v13 = vadd.f32 1.0, %v3711_v17  ;;  %v3713_v35 = vpop.eup %3712  ;;  %v3281_v17 = vld [vmem:[%s5279_s8] ss:$0 sm:$0xff]  ;;  %s3913_s8 = smov [#allocation10]  }
 0xf89   :  { %v2853_v52 = vadd.f32 1.0, %v3713_v35  ;;  %v3715_v20 = vpop.eup %3714  ;;  %s3113_s21 = sshll.u32 %s3913_s8, 4  ;;  %s3114_s21 = int_to_ptr.vmem [resolvable:$true] %s3113_s21 }
 0xf8a   :  { %3718 = vrcp.f32 %v2852_v13  ;;  %v3717_v21 = vpop.eup %3716  ;;  %s3876_s1 = scalar_lea.vmem %s3114_s21, 128  ;;  %p3881_p11 = scmp.lt.s32.totalorder %s3114_s21, %s3114_s21 }
 0xf8b   :  { %3720 = vrcp.f32 %v2853_v52  ;;  %v2854_v47 = vadd.f32 1.0, %v3717_v21  ;;  %p3877_p10 = scmp.ne.s32.totalorder %s3114_s21, %s3876_s1  ;;  %p3882_p12 = scmp.lt.s32.totalorder %s3876_s1, %s3876_s1 }
 0xf8d   :  { %3722 = vrcp.f32 %v2854_v47  ;;  %p3883_p13 = por %p3882_p12, %p3881_p11 }
 0xf8f   :  { %p3884_p0 = pnand %p3883_p13, %p3877_p10 }
 0xf94   :  { %v3719_v22 = vpop.eup %3718 }
 0xf95   :  { %v2863_v23 = vmul.f32 %v3719_v22, %v3715_v20  ;;  %v3721_v24 = vpop.eup %3720 }
 0xf96   :  { %v2862_v36 = vmul.f32 %v3721_v24, %v5173_v28  ;;  %v1837_v28 = vadd.f32 %v5383_v42, %v4875_v43 }
 0xf97   :  { %v3723_v39 = vpop.eup %3722 }
 0xf98   :  { %v5217_v38 = vadd.f32 %v2863_v23, %v2862_v36 }
 0xf9a   :  { %3724 = vtanh.f32 %v5217_v38 }
 0xfa4   :  { %v3725_v51 = vpop.eup %3724 }
 0xfa5   :  { %v2866_v56 = vmul.f32 %v3725_v51, %v3723_v39 }
 0xfa7   :  { %v2867_v57 = vpack.c.bf16 %v2866_v56, %v2866_v56 }
 0xfa9   :  { %2905 = vmatmul.mubr.bf16.vlgmr.msra.gmra.mrb[92].mxu0 %v2867_v57  ;;  %2946 = vmatmul.mubr.bf16.vlgmr.msra.gmra.mrb[92].mxu1 %v2867_v57 }
 0xfaa   :  { %3300 = vmatpush3.bf16.msra.mxu0 %v3478_v58  ;;  %3315 = vmatprep.mubr.msk.bf16.mxu0 %vm3912_vm2, %v3911_v18 }
 0xfab   :  { %3301 = vmatprep.subr.bf16.mxu0 %v3911_v18 }
 0xfae   :  { %3302 = vmatpush3.bf16.msra.mxu0 %v3479_v15 }
 0xfaf   :  { %3303 = vmatprep.subr.bf16.mxu0 %v3911_v18 }
 0xfb2   :  { %3304 = vmatpush3.bf16.msra.mxu0 %v3480_v63 }
 0xfb3   :  { %3305 = vmatprep.subr.bf16.mxu0 %v3911_v18 }
 0xfb6   :  { %3306 = vmatpush3.bf16.msra.mxu0 %v3481_v48 }
 0xfb7   :  { %3307 = vmatprep.subr.bf16.mxu0 %v3911_v18 }
 0xfba   :  { %3308 = vmatpush3.bf16.msra.mxu0 %v3482_v61 }
 0xfbb   :  { %3309 = vmatprep.subr.bf16.mxu0 %v3911_v18 }
 0xfbe   :  { %3310 = vmatpush3.bf16.msra.mxu0 %v3483_v5 }
 0xfbf   :  { %3311 = vmatprep.subr.bf16.mxu0 %v3911_v18 }
 0xfc2   :  { %3312 = vmatpush3.bf16.msra.mxu0 %v3484_v19 }
 0xfc3   :  { %3313 = vmatprep.subr.bf16.mxu0 %v3911_v18 }
 0xfc6   :  { %3314 = vmatpush3.bf16.msra.mxu0 %v3485_v26 }
0x107c   :  { %v2906_v44 = vpop.f32.mrb[92].mxu0  ;;  %v2947_v29 = vpop.f32.mrb[92].mxu1 }
0x107d   :  { %v2954_v45 = vadd.f32 %v2906_v44, %v1762_v2  ;;  %v2956_v30 = vadd.f32 %v2947_v29, %v1835_v12  ;;  %v2908_v16 = vpop.f32.mrb[93].mxu0  ;;  %v2949_v9 = vpop.f32.mrb[93].mxu1 }
0x107e   :  { %v2955_v50 = vadd.f32 %v2908_v16, %v1764_v40  ;;  %v2957_v8 = vadd.f32 %v2949_v9, %v1837_v28  ;;  %v2910_v49 = vpop.f32.mrb[94].mxu0  ;;  %v2951_v0 = vpop.f32.mrb[94].mxu1 }
0x107f   :  { %v3278_v4 = vmul.f32 -1.442695, %v2954_v45  ;;  %v2911_v7 = vpop.f32.mrb[95].mxu0  ;;  %v2952_v33 = vpop.f32.mrb[95].mxu1  ;;  %v3280_v62 = vmul.f32 -1.442695, %v2956_v30 }
0x1080   :  { %v3279_v53 = vmul.f32 -1.442695, %v2955_v50 }
0x1081   :  { %3726 = vpow2.f32 %v3278_v4 }
0x1082   :  { %3728 = vpow2.f32 %v3279_v53 }
0x1083   :  { %3730 = vtanh.f32 %v2957_v8 }
0x1084   :  { %3732 = vpow2.f32 %v3280_v62 }
0x108b   :  { %v3727_v3 = vpop.eup %3726 }
0x108c   :  { %v2967_v59 = vadd.f32 1.0, %v3727_v3  ;;  %v3729_v43 = vpop.eup %3728 }
0x108d   :  { %v2968_v31 = vadd.f32 1.0, %v3729_v43  ;;  %v3731_v32 = vpop.eup %3730 }
0x108e   :  { %3734 = vrcp.f32 %v2967_v59  ;;  %v3733_v10 = vpop.eup %3732 }
0x108f   :  { %3736 = vrcp.f32 %v2968_v31  ;;  %v2969_v11 = vadd.f32 1.0, %v3733_v10 }
0x1091   :  { %3738 = vrcp.f32 %v2969_v11 }
0x1098   :  { %v3735_v25 = vpop.eup %3734 }
0x1099   :  { %v2978_v46 = vmul.f32 %v3735_v25, %v3731_v32  ;;  %v3737_v37 = vpop.eup %3736 }
0x109a   :  { %v2977_v34 = vmul.f32 %v3737_v37, %v5217_v38 }
0x109b   :  { %v3739_v14 = vpop.eup %3738 }
0x109c   :  { %v2979_v41 = vadd.f32 %v2978_v46, %v2977_v34 }
0x109e   :  { %3740 = vtanh.f32 %v2979_v41 }
0x10a8   :  { %v3741_v60 = vpop.eup %3740 }
0x10a9   :  { %v2981_v54 = vmul.f32 %v3741_v60, %v3739_v14 }
0x10ab   :  { %v2982_v1 = vpack.c.bf16 %v2981_v54, %v2981_v54 }
0x10ad   :  { %3316 = vmatmul.mubr.bf16.vlgmr.msra.gmra.mrb[96].mxu0 %v2982_v1 }
0x1180   :  { %v3088_v13 = vpop.f32.mrb[96].mxu0 }
0x1181   :  { %v3089_v35 = vadd.f32 %v3281_v17, %v3088_v13  ;;  %v3317_v52 = vpop.f32.mrb[97].mxu0 }
0x1182   :  { %v3091_v20 = vpop.f32.mrb[98].mxu0 }
0x1183   :  { %v3318_v21 = vpop.f32.mrb[99].mxu0  ;;  %v3095_v22 = vsel %vm3094_vm3, %v3089_v35, -inf }
0x1184   :  { %3096 = vmax.xlane.f32.xlu0 %v3095_v22 }
0x1211   :  { %v3097_v23 = vpop.xlane.xlu0 %3096 }
0x1212   :  { %v3098_v24 = vsub.f32 %v3089_v35, %v3097_v23 }
0x1214   :  { %v3099_v47 = vmul.f32 1.442695, %v3098_v24 }
0x1216   :  { %3742 = vpow2.f32 %v3099_v47 }
0x1220   :  { %v3743_v36 = vpop.eup %3742 }
0x1221   :  { %v3101_v38 = vsel %vm3094_vm3, %v3743_v36, 0.0 }
0x1222   :  { %3102 = vadd.xlane.f32.xlu0 %v3101_v38 }
0x12af   :  { %v3103_v39 = vpop.xlane.xlu0 %3102 }
0x12b0   :  { %3744 = vrcp.f32 %v3103_v39 }
0x12ba   :  { %v3745_v51 = vpop.eup %3744 }
0x12bb   :  { %v3105_v56 = vmul.f32 %v3745_v51, %v3743_v36 }
0x12bd   :  { %3106 = vst.msk [vmem:[#allocation10] sm:$0xff] %vm3094_vm3, %v3105_v56 }
0x12be   :  { %3887 = shalt.err (!%p3884_p0)
}
0x12bf   :  { %s3888_s29 = scalar_lea.hbm %s5280_s9, 128 }
0x12c0   :  { %p3889_p1 = scmp.ne.s32.totalorder %s5280_s9, %s3888_s29  ;;  %p3892_p2 = scmp.lt.u32.totalorder %s3888_s29, %s5280_s9 }
0x12c2   :  { %p3894_p3 = pnand %p3892_p2, %p3889_p1 }
0x12c4   :  { %3897 = shalt.err (!%p3894_p3)
}
0x12c5   :  { %3116 = dma.vmem_to_hbm [thread:$0]  %s3114_s21, 128, %s5280_s9, [#allocation6]  }
0x12c6   :  { %3902 = dma.done.wait [#allocation6], 128  }
0x12c7   :  { %3903 = vsyncadd [#allocation6], 4294967168 }
0x12c8   :  { %3120 = vsyncpa [#allocation5], 1 }
0x12c9   :  { %3121 = vsyncpa [#allocation8], 1 }
0x12ca   :  { %3122 = vsyncpa [#allocation6], 1 }

</bundles_post_ra>
